<compile_context>
chip_gen: v6e
topology: v6e:2x2x1
jax: 0.10.0
libtpu: 0.0.40
codegen_flags: <defaults>
</compile_context>

<pallas_src>
import jax
import jax.numpy as jnp
from jax.experimental import pallas as pl
from jax.experimental.pallas import tpu as pltpu


def _round_up(x, m):
    return (x + m - 1) // m * m


# ------------------------------ Pallas kernel ------------------------------ #
def make_denoise_kernel(in_ch, inner_ch, out_ch, Wp, MARGIN, OUT_LANES, BLK, GOFF):
    def kernel(x_ref, m_ref, w0_ref, w1_ref, w2_ref, w3_ref, a012_ref, a3_ref,
               o_ref, stg_ref, col_ref):
        m = m_ref[...]                                           # (1, OUT_LANES)

        # Scatter one channel group's padded feature maps into its 9 tap rows
        # of the im2col buffer; filler rows are constant 1.0 (bias / alignment).
        def scatter(read, g, nch):
            parts = []
            for kh in range(3):
                for kw in range(3):
                    d = (kh - 1) * Wp + (kw - 1)
                    parts.append(read(d))                        # (nch, OUT_LANES)
            fill = BLK[g] - 9 * nch
            if fill > 0:
                parts.append(jnp.ones((fill, OUT_LANES), jnp.float32))
            col_ref[GOFF[g]:GOFF[g] + BLK[g], :] = jnp.concatenate(parts, axis=0)

        # group 0: the (pre-padded, margined) input image slabs
        scatter(lambda d: x_ref[0, :, MARGIN + d:MARGIN + d + OUT_LANES], 0, in_ch)

        def conv(w_ref, alpha, ks):
            # single MXU matmul per stage (bias folded into the ones row),
            # bf16 operands, f32 accumulation.
            y = jnp.dot(w_ref[0].astype(jnp.bfloat16),
                        col_ref[0:ks, :].astype(jnp.bfloat16),
                        preferred_element_type=jnp.float32)
            return jnp.where(y > 0.0, y, alpha * y)              # PReLU

        w_refs = (w0_ref, w1_ref, w2_ref)
        for s in range(3):
            y = conv(w_refs[s], a012_ref[s], GOFF[s + 1])
            # keep zero halos / drop tail lanes (select => NaN-safe vs stale scratch)
            y = jnp.where(m > 0.0, y, 0.0)
            stg_ref[:, MARGIN:MARGIN + OUT_LANES] = y
            scatter(lambda d: stg_ref[:, MARGIN + d:MARGIN + d + OUT_LANES],
                    s + 1, inner_ch)

        # stage 3: conv + PReLU + residual(x); lane-dense 128-aligned store
        y3 = conv(w3_ref, a3_ref[...], GOFF[4])
        o_ref[0] = (y3 + x_ref[0, :, MARGIN:MARGIN + OUT_LANES]).astype(o_ref.dtype)

    return kernel


# ----------------------------- parameter setup ----------------------------- #
def init_params(key, in_ch, inner_ch, out_ch):
    cins = (in_ch, in_ch + inner_ch, in_ch + 2 * inner_ch, in_ch + 3 * inner_ch)
    couts = (inner_ch, inner_ch, inner_ch, out_ch)
    ks = jax.random.split(key, 12)
    p = {}
    for i in range(4):
        Lfc = couts[i] * (cins[i] * 9 + 1)          # HyperConv.fc = Linear(1, Lfc)
        p[f"fc{i}_w"] = 0.1 * jax.random.normal(ks[2 * i], (Lfc,), jnp.float32)
        p[f"fc{i}_b"] = 0.1 * jax.random.normal(ks[2 * i + 1], (Lfc,), jnp.float32)
        p[f"alpha{i}"] = 0.1 + 0.3 * jax.random.uniform(ks[8 + i], (couts[i],),
                                                        jnp.float32)
    return p


def _hyper_wb(fcw, fcb, scale, cout, cin):
    tot = fcw * scale + fcb
    wl = cout * cin * 9
    return tot[:wl].reshape(cout, cin, 3, 3), tot[wl:]


# --------------------------------- forward --------------------------------- #
def denoise_block_forward(params, levels, xs, in_ch, inner_ch, out_ch):
    assert out_ch == in_ch, "residual add requires out_channels == in_channels"
    L = len(levels)
    x = jnp.stack(xs, 0)                                    # (L, N, Cin, H, W)
    _, N, _, H, W = x.shape
    Wp = W + 2
    F0 = (H + 2) * Wp                                       # padded image, flattened
    NF0 = N * F0                                            # batch folded into lanes
    OUT_LANES = _round_up(NF0, 128)
    MARGIN = _round_up(Wp + 1, 128)                         # covers all signed tap shifts
    WS_LANES = 2 * MARGIN + OUT_LANES

    # im2col row layout: [x taps | out0 taps | out1 taps | out2 taps]; each group
    # padded to a multiple of 8 rows, padding rows hold 1.0 (first one = bias row).
    BLK = [_round_up(9 * in_ch + 1, 8)] + [_round_up(9 * inner_ch, 8)] * 3
    GOFF = [0]
    for b in BLK:
        GOFF.append(GOFF[-1] + b)
    KTOT = GOFF[4]

    # ---- input: zero-pad spatially, fold batch into the lane axis, add margins ----
    xp = jnp.pad(x, ((0, 0), (0, 0), (0, 0), (1, 1), (1, 1)))          # (L,N,C,H+2,Wp)
    xp = jnp.transpose(xp, (0, 2, 1, 3, 4)).reshape(L, in_ch, NF0)     # (L,C,N*F0)
    xp = jnp.pad(xp, ((0, 0), (0, 0), (MARGIN, WS_LANES - MARGIN - NF0)))

    # ---- interior-pixel mask over the folded lane axis ----
    idx = jnp.arange(OUT_LANES, dtype=jnp.int32)
    j = idx % F0
    hp, wp = j // Wp, j % Wp
    valid = (idx < NF0) & (hp >= 1) & (hp <= H) & (wp >= 1) & (wp <= W)
    mask = valid.astype(jnp.float32).reshape(1, OUT_LANES)

    # ---- hyper weights per level, packed as (Cout, K_s) with bias folded in ----
    cins = (in_ch, in_ch + inner_ch, in_ch + 2 * inner_ch, in_ch + 3 * inner_ch)
    couts = (inner_ch, inner_ch, inner_ch, out_ch)
    # per stage: (group channel count, torch-channel offset) for groups 0..s,
    # torch concat orders: [x], [x|o0], [o1|x|o0], [o2|o1|x|o0]
    stage_groups = (
        ((in_ch, 0),),
        ((in_ch, 0), (inner_ch, in_ch)),
        ((in_ch, inner_ch), (inner_ch, inner_ch + in_ch), (inner_ch, 0)),
        ((in_ch, 2 * inner_ch), (inner_ch, 2 * inner_ch + in_ch),
         (inner_ch, inner_ch), (inner_ch, 0)),
    )

    def pack_stage(Wc, b, s):
        cout = couts[s]
        P = jnp.zeros((cout, GOFF[s + 1]), jnp.float32)
        for g, (nch, toff) in enumerate(stage_groups[s]):
            blk = jnp.transpose(Wc[:, toff:toff + nch], (0, 2, 3, 1)).reshape(cout, 9 * nch)
            P = P.at[:, GOFF[g]:GOFF[g] + 9 * nch].set(blk)
        return P.at[:, 9 * in_ch].set(b)        # bias column (first ones row of x group)

    w_per_stage = [[] for _ in range(4)]
    for lv in levels:
        sc = float(lv) / 255.0
        for i in range(4):
            Wc, b = _hyper_wb(params[f"fc{i}_w"], params[f"fc{i}_b"], sc, couts[i], cins[i])
            w_per_stage[i].append(pack_stage(Wc, b, i))
    w0, w1, w2, w3 = (jnp.stack(wl, 0) for wl in w_per_stage)           # (L,Cout_s,K_s)

    a012 = jnp.stack([params["alpha0"], params["alpha1"], params["alpha2"]], 0)[..., None]
    a3 = params["alpha3"][:, None]

    kernel = make_denoise_kernel(in_ch, inner_ch, out_ch, Wp, MARGIN, OUT_LANES, BLK, GOFF)

    # ---- VMEM budget: double-buffered blocks + scratch, clamped to chip VMEM ----
    block_bytes = 4 * (in_ch * WS_LANES + OUT_LANES
                       + sum(couts[i] * GOFF[i + 1] for i in range(4))
                       + 3 * inner_ch + out_ch + out_ch * OUT_LANES)
    scratch_bytes = 4 * (inner_ch * WS_LANES + KTOT * OUT_LANES)
    need = 2 * block_bytes + scratch_bytes + (2 << 20)
    try:
        cap = int(getattr(pltpu.get_tpu_info(), "vmem_capacity_bytes", 0)) or (64 << 20)
    except Exception:
        cap = 64 << 20
    vmem_limit = int(min(0.85 * cap, max(4 << 20, 2 * need)))

    flops = 2 * L * OUT_LANES * sum(couts[i] * GOFF[i + 1] for i in range(4))
    bytes_accessed = int(4 * (xp.size + mask.size + w0.size + w1.size + w2.size
                              + w3.size + a012.size + a3.size
                              + L * out_ch * OUT_LANES))

    out_flat = pl.pallas_call(
        kernel,
        out_shape=jax.ShapeDtypeStruct((L, out_ch, OUT_LANES), jnp.float32),
        grid=(L,),
        in_specs=[
            pl.BlockSpec((1, in_ch, WS_LANES), lambda l: (l, 0, 0)),
            pl.BlockSpec((1, OUT_LANES), lambda l: (0, 0)),
            pl.BlockSpec((1, couts[0], GOFF[1]), lambda l: (l, 0, 0)),
            pl.BlockSpec((1, couts[1], GOFF[2]), lambda l: (l, 0, 0)),
            pl.BlockSpec((1, couts[2], GOFF[3]), lambda l: (l, 0, 0)),
            pl.BlockSpec((1, couts[3], GOFF[4]), lambda l: (l, 0, 0)),
            pl.BlockSpec((3, inner_ch, 1), lambda l: (0, 0, 0)),
            pl.BlockSpec((out_ch, 1), lambda l: (0, 0)),
        ],
        out_specs=pl.BlockSpec((1, out_ch, OUT_LANES), lambda l: (l, 0, 0)),
        scratch_shapes=[pltpu.VMEM((inner_ch, WS_LANES), jnp.float32),   # stage staging
                        pltpu.VMEM((KTOT, OUT_LANES), jnp.float32)],     # im2col
        compiler_params=pltpu.CompilerParams(
            dimension_semantics=("parallel",),
            vmem_limit_bytes=vmem_limit),
        cost_estimate=pl.CostEstimate(flops=flops, transcendentals=0,
                                      bytes_accessed=bytes_accessed),
    )(xp, mask, w0, w1, w2, w3, a012, a3)

    # unfold lanes -> (N, H+2, Wp), drop the zero-pad border, split the level list
    out = out_flat[:, :, :NF0].reshape(L, out_ch, N, H + 2, Wp)
    out = jnp.transpose(out, (0, 2, 1, 3, 4))[:, :, :, 1:H + 1, 1:W + 1]
    return [out[i] for i in range(L)]


# ------------------------------- pure-JAX ref ------------------------------- #
def ref_level(params, scale, x, in_ch, inner_ch, out_ch):
    def hconv(fcw, fcb, xin, cin, cout):
        Wc, bc = _hyper_wb(fcw, fcb, scale, cout, cin)
        y = jax.lax.conv_general_dilated(xin, Wc, (1, 1), ((1, 1), (1, 1)),
                                         precision=jax.lax.Precision.HIGHEST)
        return y + bc[None, :, None, None]

    def prelu(y, a):
        a = a[None, :, None, None]
        return jnp.where(y > 0, y, a * y)

    o0 = prelu(hconv(params["fc0_w"], params["fc0_b"], x, in_ch, inner_ch),
               params["alpha0"])
    c0 = jnp.concatenate([x, o0], 1)
    o1 = prelu(hconv(params["fc1_w"], params["fc1_b"], c0, in_ch + inner_ch, inner_ch),
               params["alpha1"])
    c1 = jnp.concatenate([o1, c0], 1)
    o2 = prelu(hconv(params["fc2_w"], params["fc2_b"], c1, in_ch + 2 * inner_ch, inner_ch),
               params["alpha2"])
    c2 = jnp.concatenate([o2, c1], 1)
    o3 = prelu(hconv(params["fc3_w"], params["fc3_b"], c2, in_ch + 3 * inner_ch, out_ch),
               params["alpha3"])
    return o3 + x


# ----------------------------------- main ----------------------------------- #
if __name__ == "__main__":
    in_ch, inner_ch, out_ch = 4, 4, 4            # residual requires out_ch == in_ch
    levels = [15.0, 25.0]
    N, H, W = 2, 16, 16

    key = jax.random.PRNGKey(0)
    kp, kx1, kx2 = jax.random.split(key, 3)
    params = init_params(kp, in_ch, inner_ch, out_ch)

    xs = [jax.random.normal(kx1, (N, in_ch, H, W), jnp.float32),
          jax.random.normal(kx2, (N, in_ch, H, W), jnp.float32)]

    outs = denoise_block_forward(params, levels, xs, in_ch, inner_ch, out_ch)
    outs = [jax.block_until_ready(o) for o in outs]

    # correctness check against the pure-JAX (f32) reference; kernel uses bf16 MXU
    for lv, xin, o in zip(levels, xs, outs):
        r = ref_level(params, float(lv) / 255.0, xin, in_ch, inner_ch, out_ch)
        assert o.shape == (N, out_ch, H, W)
        err = float(jnp.max(jnp.abs(o - r)))
        assert jnp.allclose(o, r, atol=2e-2, rtol=2e-2), f"max abs err = {err}"

    print("KERNEL_OK")
</pallas_src>

<mosaic_0001>
module attributes {stable_mosaic.version = 11 : i64} {
  func.func @kernel(%arg0: i32, %arg1: memref<1x4x1024xf32, #tpu.memory_space<vmem>>, %arg2: memref<1x768xf32, #tpu.memory_space<vmem>>, %arg3: memref<1x4x40xf32, #tpu.memory_space<vmem>>, %arg4: memref<1x4x80xf32, #tpu.memory_space<vmem>>, %arg5: memref<1x4x120xf32, #tpu.memory_space<vmem>>, %arg6: memref<1x4x160xf32, #tpu.memory_space<vmem>>, %arg7: memref<3x4x1xf32, #tpu.memory_space<vmem>>, %arg8: memref<4x1xf32, #tpu.memory_space<vmem>>, %arg9: memref<1x4x768xf32, #tpu.memory_space<vmem>>, %arg10: memref<4x1024xf32, #tpu.memory_space<vmem>>, %arg11: memref<160x768xf32, #tpu.memory_space<vmem>>) attributes {dimension_semantics = [#tpu.dimension_semantics<parallel>], iteration_bounds = array<i64: 2>, scalar_prefetch = 0 : i64, scratch_operands = 2 : i64, tpu.core_type = #tpu.core_type<tc>, window_params = [{transform_indices = @transform_0, window_bounds = array<i64: 1, 4, 1024>}, {pipeline_mode = #tpu.pipeline_mode<synchronous>, transform_indices = @transform_1, window_bounds = array<i64: 1, 768>}, {transform_indices = @transform_2, window_bounds = array<i64: 1, 4, 40>}, {transform_indices = @transform_3, window_bounds = array<i64: 1, 4, 80>}, {transform_indices = @transform_4, window_bounds = array<i64: 1, 4, 120>}, {transform_indices = @transform_5, window_bounds = array<i64: 1, 4, 160>}, {pipeline_mode = #tpu.pipeline_mode<synchronous>, transform_indices = @transform_6, window_bounds = array<i64: 3, 4, 1>}, {pipeline_mode = #tpu.pipeline_mode<synchronous>, transform_indices = @transform_7, window_bounds = array<i64: 4, 1>}, {transform_indices = @transform_8, window_bounds = array<i64: 1, 4, 768>}]} {
    %c0 = arith.constant 0 : index
    %c0_0 = arith.constant 0 : index
    %0 = vector.load %arg2[%c0, %c0_0] : memref<1x768xf32, #tpu.memory_space<vmem>>, vector<1x768xf32>
    %c0_1 = arith.constant 0 : index
    %c0_2 = arith.constant 0 : index
    %c109 = arith.constant 109 : index
    %1 = vector.load %arg1[%c0_1, %c0_2, %c109] : memref<1x4x1024xf32, #tpu.memory_space<vmem>>, vector<1x4x768xf32>
    %2 = vector.shape_cast %1 : vector<1x4x768xf32> to vector<4x768xf32>
    %c0_3 = arith.constant 0 : index
    %c0_4 = arith.constant 0 : index
    %c110 = arith.constant 110 : index
    %3 = vector.load %arg1[%c0_3, %c0_4, %c110] : memref<1x4x1024xf32, #tpu.memory_space<vmem>>, vector<1x4x768xf32>
    %4 = vector.shape_cast %3 : vector<1x4x768xf32> to vector<4x768xf32>
    %c0_5 = arith.constant 0 : index
    %c0_6 = arith.constant 0 : index
    %c111 = arith.constant 111 : index
    %5 = vector.load %arg1[%c0_5, %c0_6, %c111] : memref<1x4x1024xf32, #tpu.memory_space<vmem>>, vector<1x4x768xf32>
    %6 = vector.shape_cast %5 : vector<1x4x768xf32> to vector<4x768xf32>
    %c0_7 = arith.constant 0 : index
    %c0_8 = arith.constant 0 : index
    %c127 = arith.constant 127 : index
    %7 = vector.load %arg1[%c0_7, %c0_8, %c127] : memref<1x4x1024xf32, #tpu.memory_space<vmem>>, vector<1x4x768xf32>
    %8 = vector.shape_cast %7 : vector<1x4x768xf32> to vector<4x768xf32>
    %c0_9 = arith.constant 0 : index
    %c0_10 = arith.constant 0 : index
    %c128 = arith.constant 128 : index
    %9 = vector.load %arg1[%c0_9, %c0_10, %c128] : memref<1x4x1024xf32, #tpu.memory_space<vmem>>, vector<1x4x768xf32>
    %10 = vector.shape_cast %9 : vector<1x4x768xf32> to vector<4x768xf32>
    %c0_11 = arith.constant 0 : index
    %c0_12 = arith.constant 0 : index
    %c129 = arith.constant 129 : index
    %11 = vector.load %arg1[%c0_11, %c0_12, %c129] : memref<1x4x1024xf32, #tpu.memory_space<vmem>>, vector<1x4x768xf32>
    %12 = vector.shape_cast %11 : vector<1x4x768xf32> to vector<4x768xf32>
    %c0_13 = arith.constant 0 : index
    %c0_14 = arith.constant 0 : index
    %c145 = arith.constant 145 : index
    %13 = vector.load %arg1[%c0_13, %c0_14, %c145] : memref<1x4x1024xf32, #tpu.memory_space<vmem>>, vector<1x4x768xf32>
    %14 = vector.shape_cast %13 : vector<1x4x768xf32> to vector<4x768xf32>
    %c0_15 = arith.constant 0 : index
    %c0_16 = arith.constant 0 : index
    %c146 = arith.constant 146 : index
    %15 = vector.load %arg1[%c0_15, %c0_16, %c146] : memref<1x4x1024xf32, #tpu.memory_space<vmem>>, vector<1x4x768xf32>
    %16 = vector.shape_cast %15 : vector<1x4x768xf32> to vector<4x768xf32>
    %c0_17 = arith.constant 0 : index
    %c0_18 = arith.constant 0 : index
    %c147 = arith.constant 147 : index
    %17 = vector.load %arg1[%c0_17, %c0_18, %c147] : memref<1x4x1024xf32, #tpu.memory_space<vmem>>, vector<1x4x768xf32>
    %18 = vector.shape_cast %17 : vector<1x4x768xf32> to vector<4x768xf32>
    %cst = arith.constant 1.000000e+00 : f32
    %19 = vector.broadcast %cst : f32 to vector<4x768xf32>
    %20 = tpu.concatenate %2, %4, %6, %8, %10, %12, %14, %16, %18, %19 in 0 : vector<4x768xf32>, vector<4x768xf32>, vector<4x768xf32>, vector<4x768xf32>, vector<4x768xf32>, vector<4x768xf32>, vector<4x768xf32>, vector<4x768xf32>, vector<4x768xf32>, vector<4x768xf32> -> vector<40x768xf32>
    %c0_19 = arith.constant 0 : index
    %c0_20 = arith.constant 0 : index
    %21 = vector.load %arg11[%c0_19, %c0_20] : memref<160x768xf32, #tpu.memory_space<vmem>>, vector<40x768xf32>
    tpu.vector_store %arg11[%c0_19, %c0_20], %20 {strides = array<i32>} : memref<160x768xf32, #tpu.memory_space<vmem>>, vector<40x768xf32>,
    %c0_21 = arith.constant 0 : index
    %c0_22 = arith.constant 0 : index
    %c0_23 = arith.constant 0 : index
    %22 = vector.load %arg7[%c0_21, %c0_22, %c0_23] : memref<3x4x1xf32, #tpu.memory_space<vmem>>, vector<1x4x1xf32>
    %23 = vector.shape_cast %22 : vector<1x4x1xf32> to vector<4x1xf32>
    %c0_24 = arith.constant 0 : index
    %c0_25 = arith.constant 0 : index
    %c0_26 = arith.constant 0 : index
    %24 = vector.load %arg3[%c0_24, %c0_25, %c0_26] : memref<1x4x40xf32, #tpu.memory_space<vmem>>, vector<1x4x40xf32>
    %25 = vector.shape_cast %24 : vector<1x4x40xf32> to vector<4x40xf32>
    %26 = arith.truncf %25 : vector<4x40xf32> to vector<4x40xbf16>
    %c0_27 = arith.constant 0 : index
    %c0_28 = arith.constant 0 : index
    %27 = vector.load %arg11[%c0_27, %c0_28] : memref<160x768xf32, #tpu.memory_space<vmem>>, vector<40x768xf32>
    %28 = arith.truncf %27 : vector<40x768xf32> to vector<40x768xbf16>
    %cst_29 = arith.constant dense<0.000000e+00> : vector<4x768xf32>
    %29 = tpu.matmul %26, %28, %cst_29 {dimension_numbers = #tpu.dot_dimension_numbers<[1], [0], [0], [1], [0, 0, 1, 1], [], []>} : vector<4x40xbf16>, vector<40x768xbf16>, vector<4x768xf32> -> vector<4x768xf32>
    %cst_30 = arith.constant 0.000000e+00 : f32
    %30 = vector.broadcast %cst_30 : f32 to vector<4x768xf32>
    %31 = arith.cmpf ogt, %29, %30 : vector<4x768xf32>
    %32 = vector.broadcast %23 : vector<4x1xf32> to vector<4x768xf32>
    %33 = arith.mulf %32, %29 : vector<4x768xf32>
    %34 = arith.select %31, %29, %33 : vector<4x768xi1>, vector<4x768xf32>
    %cst_31 = arith.constant 0.000000e+00 : f32
    %35 = vector.broadcast %cst_31 : f32 to vector<1x768xf32>
    %36 = arith.cmpf ogt, %0, %35 : vector<1x768xf32>
    %cst_32 = arith.constant 0.000000e+00 : f32
    %37 = vector.shape_cast %36 : vector<1x768xi1> to vector<1x768xi1>
    %38 = vector.broadcast %37 : vector<1x768xi1> to vector<4x768xi1>
    %39 = vector.broadcast %cst_32 : f32 to vector<4x768xf32>
    %40 = arith.select %38, %34, %39 : vector<4x768xi1>, vector<4x768xf32>
    %c0_33 = arith.constant 0 : index
    %c128_34 = arith.constant 128 : index
    %41 = vector.load %arg10[%c0_33, %c128_34] : memref<4x1024xf32, #tpu.memory_space<vmem>>, vector<4x768xf32>
    tpu.vector_store %arg10[%c0_33, %c128_34], %40 {strides = array<i32>} : memref<4x1024xf32, #tpu.memory_space<vmem>>, vector<4x768xf32>,
    %c0_35 = arith.constant 0 : index
    %c109_36 = arith.constant 109 : index
    %42 = vector.load %arg10[%c0_35, %c109_36] : memref<4x1024xf32, #tpu.memory_space<vmem>>, vector<4x768xf32>
    %c0_37 = arith.constant 0 : index
    %c110_38 = arith.constant 110 : index
    %43 = vector.load %arg10[%c0_37, %c110_38] : memref<4x1024xf32, #tpu.memory_space<vmem>>, vector<4x768xf32>
    %c0_39 = arith.constant 0 : index
    %c111_40 = arith.constant 111 : index
    %44 = vector.load %arg10[%c0_39, %c111_40] : memref<4x1024xf32, #tpu.memory_space<vmem>>, vector<4x768xf32>
    %c0_41 = arith.constant 0 : index
    %c127_42 = arith.constant 127 : index
    %45 = vector.load %arg10[%c0_41, %c127_42] : memref<4x1024xf32, #tpu.memory_space<vmem>>, vector<4x768xf32>
    %c0_43 = arith.constant 0 : index
    %c128_44 = arith.constant 128 : index
    %46 = vector.load %arg10[%c0_43, %c128_44] : memref<4x1024xf32, #tpu.memory_space<vmem>>, vector<4x768xf32>
    %c0_45 = arith.constant 0 : index
    %c129_46 = arith.constant 129 : index
    %47 = vector.load %arg10[%c0_45, %c129_46] : memref<4x1024xf32, #tpu.memory_space<vmem>>, vector<4x768xf32>
    %c0_47 = arith.constant 0 : index
    %c145_48 = arith.constant 145 : index
    %48 = vector.load %arg10[%c0_47, %c145_48] : memref<4x1024xf32, #tpu.memory_space<vmem>>, vector<4x768xf32>
    %c0_49 = arith.constant 0 : index
    %c146_50 = arith.constant 146 : index
    %49 = vector.load %arg10[%c0_49, %c146_50] : memref<4x1024xf32, #tpu.memory_space<vmem>>, vector<4x768xf32>
    %c0_51 = arith.constant 0 : index
    %c147_52 = arith.constant 147 : index
    %50 = vector.load %arg10[%c0_51, %c147_52] : memref<4x1024xf32, #tpu.memory_space<vmem>>, vector<4x768xf32>
    %cst_53 = arith.constant 1.000000e+00 : f32
    %51 = vector.broadcast %cst_53 : f32 to vector<4x768xf32>
    %52 = tpu.concatenate %42, %43, %44, %45, %46, %47, %48, %49, %50, %51 in 0 : vector<4x768xf32>, vector<4x768xf32>, vector<4x768xf32>, vector<4x768xf32>, vector<4x768xf32>, vector<4x768xf32>, vector<4x768xf32>, vector<4x768xf32>, vector<4x768xf32>, vector<4x768xf32> -> vector<40x768xf32>
    %c40 = arith.constant 40 : index
    %c0_54 = arith.constant 0 : index
    %53 = vector.load %arg11[%c40, %c0_54] : memref<160x768xf32, #tpu.memory_space<vmem>>, vector<40x768xf32>
    tpu.vector_store %arg11[%c40, %c0_54], %52 {strides = array<i32>} : memref<160x768xf32, #tpu.memory_space<vmem>>, vector<40x768xf32>,
    %c1 = arith.constant 1 : index
    %c0_55 = arith.constant 0 : index
    %c0_56 = arith.constant 0 : index
    %54 = vector.load %arg7[%c1, %c0_55, %c0_56] : memref<3x4x1xf32, #tpu.memory_space<vmem>>, vector<1x4x1xf32>
    %55 = vector.shape_cast %54 : vector<1x4x1xf32> to vector<4x1xf32>
    %c0_57 = arith.constant 0 : index
    %c0_58 = arith.constant 0 : index
    %c0_59 = arith.constant 0 : index
    %56 = vector.load %arg4[%c0_57, %c0_58, %c0_59] : memref<1x4x80xf32, #tpu.memory_space<vmem>>, vector<1x4x80xf32>
    %57 = vector.shape_cast %56 : vector<1x4x80xf32> to vector<4x80xf32>
    %58 = arith.truncf %57 : vector<4x80xf32> to vector<4x80xbf16>
    %c0_60 = arith.constant 0 : index
    %c0_61 = arith.constant 0 : index
    %59 = vector.load %arg11[%c0_60, %c0_61] : memref<160x768xf32, #tpu.memory_space<vmem>>, vector<80x768xf32>
    %60 = arith.truncf %59 : vector<80x768xf32> to vector<80x768xbf16>
    %cst_62 = arith.constant dense<0.000000e+00> : vector<4x768xf32>
    %61 = tpu.matmul %58, %60, %cst_62 {dimension_numbers = #tpu.dot_dimension_numbers<[1], [0], [0], [1], [0, 0, 1, 1], [], []>} : vector<4x80xbf16>, vector<80x768xbf16>, vector<4x768xf32> -> vector<4x768xf32>
    %cst_63 = arith.constant 0.000000e+00 : f32
    %62 = vector.broadcast %cst_63 : f32 to vector<4x768xf32>
    %63 = arith.cmpf ogt, %61, %62 : vector<4x768xf32>
    %64 = vector.broadcast %55 : vector<4x1xf32> to vector<4x768xf32>
    %65 = arith.mulf %64, %61 : vector<4x768xf32>
    %66 = arith.select %63, %61, %65 : vector<4x768xi1>, vector<4x768xf32>
    %cst_64 = arith.constant 0.000000e+00 : f32
    %67 = vector.broadcast %cst_64 : f32 to vector<1x768xf32>
    %68 = arith.cmpf ogt, %0, %67 : vector<1x768xf32>
    %cst_65 = arith.constant 0.000000e+00 : f32
    %69 = vector.shape_cast %68 : vector<1x768xi1> to vector<1x768xi1>
    %70 = vector.broadcast %69 : vector<1x768xi1> to vector<4x768xi1>
    %71 = vector.broadcast %cst_65 : f32 to vector<4x768xf32>
    %72 = arith.select %70, %66, %71 : vector<4x768xi1>, vector<4x768xf32>
    %c0_66 = arith.constant 0 : index
    %c128_67 = arith.constant 128 : index
    %73 = vector.load %arg10[%c0_66, %c128_67] : memref<4x1024xf32, #tpu.memory_space<vmem>>, vector<4x768xf32>
    tpu.vector_store %arg10[%c0_66, %c128_67], %72 {strides = array<i32>} : memref<4x1024xf32, #tpu.memory_space<vmem>>, vector<4x768xf32>,
    %c0_68 = arith.constant 0 : index
    %c109_69 = arith.constant 109 : index
    %74 = vector.load %arg10[%c0_68, %c109_69] : memref<4x1024xf32, #tpu.memory_space<vmem>>, vector<4x768xf32>
    %c0_70 = arith.constant 0 : index
    %c110_71 = arith.constant 110 : index
    %75 = vector.load %arg10[%c0_70, %c110_71] : memref<4x1024xf32, #tpu.memory_space<vmem>>, vector<4x768xf32>
    %c0_72 = arith.constant 0 : index
    %c111_73 = arith.constant 111 : index
    %76 = vector.load %arg10[%c0_72, %c111_73] : memref<4x1024xf32, #tpu.memory_space<vmem>>, vector<4x768xf32>
    %c0_74 = arith.constant 0 : index
    %c127_75 = arith.constant 127 : index
    %77 = vector.load %arg10[%c0_74, %c127_75] : memref<4x1024xf32, #tpu.memory_space<vmem>>, vector<4x768xf32>
    %c0_76 = arith.constant 0 : index
    %c128_77 = arith.constant 128 : index
    %78 = vector.load %arg10[%c0_76, %c128_77] : memref<4x1024xf32, #tpu.memory_space<vmem>>, vector<4x768xf32>
    %c0_78 = arith.constant 0 : index
    %c129_79 = arith.constant 129 : index
    %79 = vector.load %arg10[%c0_78, %c129_79] : memref<4x1024xf32, #tpu.memory_space<vmem>>, vector<4x768xf32>
    %c0_80 = arith.constant 0 : index
    %c145_81 = arith.constant 145 : index
    %80 = vector.load %arg10[%c0_80, %c145_81] : memref<4x1024xf32, #tpu.memory_space<vmem>>, vector<4x768xf32>
    %c0_82 = arith.constant 0 : index
    %c146_83 = arith.constant 146 : index
    %81 = vector.load %arg10[%c0_82, %c146_83] : memref<4x1024xf32, #tpu.memory_space<vmem>>, vector<4x768xf32>
    %c0_84 = arith.constant 0 : index
    %c147_85 = arith.constant 147 : index
    %82 = vector.load %arg10[%c0_84, %c147_85] : memref<4x1024xf32, #tpu.memory_space<vmem>>, vector<4x768xf32>
    %cst_86 = arith.constant 1.000000e+00 : f32
    %83 = vector.broadcast %cst_86 : f32 to vector<4x768xf32>
    %84 = tpu.concatenate %74, %75, %76, %77, %78, %79, %80, %81, %82, %83 in 0 : vector<4x768xf32>, vector<4x768xf32>, vector<4x768xf32>, vector<4x768xf32>, vector<4x768xf32>, vector<4x768xf32>, vector<4x768xf32>, vector<4x768xf32>, vector<4x768xf32>, vector<4x768xf32> -> vector<40x768xf32>
    %c80 = arith.constant 80 : index
    %c0_87 = arith.constant 0 : index
    %85 = vector.load %arg11[%c80, %c0_87] : memref<160x768xf32, #tpu.memory_space<vmem>>, vector<40x768xf32>
    tpu.vector_store %arg11[%c80, %c0_87], %84 {strides = array<i32>} : memref<160x768xf32, #tpu.memory_space<vmem>>, vector<40x768xf32>,
    %c2 = arith.constant 2 : index
    %c0_88 = arith.constant 0 : index
    %c0_89 = arith.constant 0 : index
    %86 = vector.load %arg7[%c2, %c0_88, %c0_89] : memref<3x4x1xf32, #tpu.memory_space<vmem>>, vector<1x4x1xf32>
    %87 = vector.shape_cast %86 : vector<1x4x1xf32> to vector<4x1xf32>
    %c0_90 = arith.constant 0 : index
    %c0_91 = arith.constant 0 : index
    %c0_92 = arith.constant 0 : index
    %88 = vector.load %arg5[%c0_90, %c0_91, %c0_92] : memref<1x4x120xf32, #tpu.memory_space<vmem>>, vector<1x4x120xf32>
    %89 = vector.shape_cast %88 : vector<1x4x120xf32> to vector<4x120xf32>
    %90 = arith.truncf %89 : vector<4x120xf32> to vector<4x120xbf16>
    %c0_93 = arith.constant 0 : index
    %c0_94 = arith.constant 0 : index
    %91 = vector.load %arg11[%c0_93, %c0_94] : memref<160x768xf32, #tpu.memory_space<vmem>>, vector<120x768xf32>
    %92 = arith.truncf %91 : vector<120x768xf32> to vector<120x768xbf16>
    %cst_95 = arith.constant dense<0.000000e+00> : vector<4x768xf32>
    %93 = tpu.matmul %90, %92, %cst_95 {dimension_numbers = #tpu.dot_dimension_numbers<[1], [0], [0], [1], [0, 0, 1, 1], [], []>} : vector<4x120xbf16>, vector<120x768xbf16>, vector<4x768xf32> -> vector<4x768xf32>
    %cst_96 = arith.constant 0.000000e+00 : f32
    %94 = vector.broadcast %cst_96 : f32 to vector<4x768xf32>
    %95 = arith.cmpf ogt, %93, %94 : vector<4x768xf32>
    %96 = vector.broadcast %87 : vector<4x1xf32> to vector<4x768xf32>
    %97 = arith.mulf %96, %93 : vector<4x768xf32>
    %98 = arith.select %95, %93, %97 : vector<4x768xi1>, vector<4x768xf32>
    %cst_97 = arith.constant 0.000000e+00 : f32
    %99 = vector.broadcast %cst_97 : f32 to vector<1x768xf32>
    %100 = arith.cmpf ogt, %0, %99 : vector<1x768xf32>
    %cst_98 = arith.constant 0.000000e+00 : f32
    %101 = vector.shape_cast %100 : vector<1x768xi1> to vector<1x768xi1>
    %102 = vector.broadcast %101 : vector<1x768xi1> to vector<4x768xi1>
    %103 = vector.broadcast %cst_98 : f32 to vector<4x768xf32>
    %104 = arith.select %102, %98, %103 : vector<4x768xi1>, vector<4x768xf32>
    %c0_99 = arith.constant 0 : index
    %c128_100 = arith.constant 128 : index
    %105 = vector.load %arg10[%c0_99, %c128_100] : memref<4x1024xf32, #tpu.memory_space<vmem>>, vector<4x768xf32>
    tpu.vector_store %arg10[%c0_99, %c128_100], %104 {strides = array<i32>} : memref<4x1024xf32, #tpu.memory_space<vmem>>, vector<4x768xf32>,
    %c0_101 = arith.constant 0 : index
    %c109_102 = arith.constant 109 : index
    %106 = vector.load %arg10[%c0_101, %c109_102] : memref<4x1024xf32, #tpu.memory_space<vmem>>, vector<4x768xf32>
    %c0_103 = arith.constant 0 : index
    %c110_104 = arith.constant 110 : index
    %107 = vector.load %arg10[%c0_103, %c110_104] : memref<4x1024xf32, #tpu.memory_space<vmem>>, vector<4x768xf32>
    %c0_105 = arith.constant 0 : index
    %c111_106 = arith.constant 111 : index
    %108 = vector.load %arg10[%c0_105, %c111_106] : memref<4x1024xf32, #tpu.memory_space<vmem>>, vector<4x768xf32>
    %c0_107 = arith.constant 0 : index
    %c127_108 = arith.constant 127 : index
    %109 = vector.load %arg10[%c0_107, %c127_108] : memref<4x1024xf32, #tpu.memory_space<vmem>>, vector<4x768xf32>
    %c0_109 = arith.constant 0 : index
    %c128_110 = arith.constant 128 : index
    %110 = vector.load %arg10[%c0_109, %c128_110] : memref<4x1024xf32, #tpu.memory_space<vmem>>, vector<4x768xf32>
    %c0_111 = arith.constant 0 : index
    %c129_112 = arith.constant 129 : index
    %111 = vector.load %arg10[%c0_111, %c129_112] : memref<4x1024xf32, #tpu.memory_space<vmem>>, vector<4x768xf32>
    %c0_113 = arith.constant 0 : index
    %c145_114 = arith.constant 145 : index
    %112 = vector.load %arg10[%c0_113, %c145_114] : memref<4x1024xf32, #tpu.memory_space<vmem>>, vector<4x768xf32>
    %c0_115 = arith.constant 0 : index
    %c146_116 = arith.constant 146 : index
    %113 = vector.load %arg10[%c0_115, %c146_116] : memref<4x1024xf32, #tpu.memory_space<vmem>>, vector<4x768xf32>
    %c0_117 = arith.constant 0 : index
    %c147_118 = arith.constant 147 : index
    %114 = vector.load %arg10[%c0_117, %c147_118] : memref<4x1024xf32, #tpu.memory_space<vmem>>, vector<4x768xf32>
    %cst_119 = arith.constant 1.000000e+00 : f32
    %115 = vector.broadcast %cst_119 : f32 to vector<4x768xf32>
    %116 = tpu.concatenate %106, %107, %108, %109, %110, %111, %112, %113, %114, %115 in 0 : vector<4x768xf32>, vector<4x768xf32>, vector<4x768xf32>, vector<4x768xf32>, vector<4x768xf32>, vector<4x768xf32>, vector<4x768xf32>, vector<4x768xf32>, vector<4x768xf32>, vector<4x768xf32> -> vector<40x768xf32>
    %c120 = arith.constant 120 : index
    %c0_120 = arith.constant 0 : index
    %117 = vector.load %arg11[%c120, %c0_120] : memref<160x768xf32, #tpu.memory_space<vmem>>, vector<40x768xf32>
    tpu.vector_store %arg11[%c120, %c0_120], %116 {strides = array<i32>} : memref<160x768xf32, #tpu.memory_space<vmem>>, vector<40x768xf32>,
    %c0_121 = arith.constant 0 : index
    %c0_122 = arith.constant 0 : index
    %118 = vector.load %arg8[%c0_121, %c0_122] : memref<4x1xf32, #tpu.memory_space<vmem>>, vector<4x1xf32>
    %c0_123 = arith.constant 0 : index
    %c0_124 = arith.constant 0 : index
    %c0_125 = arith.constant 0 : index
    %119 = vector.load %arg6[%c0_123, %c0_124, %c0_125] : memref<1x4x160xf32, #tpu.memory_space<vmem>>, vector<1x4x160xf32>
    %120 = vector.shape_cast %119 : vector<1x4x160xf32> to vector<4x160xf32>
    %121 = arith.truncf %120 : vector<4x160xf32> to vector<4x160xbf16>
    %c0_126 = arith.constant 0 : index
    %c0_127 = arith.constant 0 : index
    %122 = vector.load %arg11[%c0_126, %c0_127] : memref<160x768xf32, #tpu.memory_space<vmem>>, vector<160x768xf32>
    %123 = arith.truncf %122 : vector<160x768xf32> to vector<160x768xbf16>
    %cst_128 = arith.constant dense<0.000000e+00> : vector<4x768xf32>
    %124 = tpu.matmul %121, %123, %cst_128 {dimension_numbers = #tpu.dot_dimension_numbers<[1], [0], [0], [1], [0, 0, 1, 1], [], []>} : vector<4x160xbf16>, vector<160x768xbf16>, vector<4x768xf32> -> vector<4x768xf32>
    %cst_129 = arith.constant 0.000000e+00 : f32
    %125 = vector.broadcast %cst_129 : f32 to vector<4x768xf32>
    %126 = arith.cmpf ogt, %124, %125 : vector<4x768xf32>
    %127 = vector.broadcast %118 : vector<4x1xf32> to vector<4x768xf32>
    %128 = arith.mulf %127, %124 : vector<4x768xf32>
    %129 = arith.select %126, %124, %128 : vector<4x768xi1>, vector<4x768xf32>
    %c0_130 = arith.constant 0 : index
    %c0_131 = arith.constant 0 : index
    %c128_132 = arith.constant 128 : index
    %130 = vector.load %arg1[%c0_130, %c0_131, %c128_132] : memref<1x4x1024xf32, #tpu.memory_space<vmem>>, vector<1x4x768xf32>
    %131 = vector.shape_cast %130 : vector<1x4x768xf32> to vector<4x768xf32>
    %132 = arith.addf %129, %131 : vector<4x768xf32>
    %c0_133 = arith.constant 0 : index
    %c0_134 = arith.constant 0 : index
    %c0_135 = arith.constant 0 : index
    %133 = vector.load %arg9[%c0_133, %c0_134, %c0_135] : memref<1x4x768xf32, #tpu.memory_space<vmem>>, vector<1x4x768xf32>
    %134 = vector.shape_cast %133 : vector<1x4x768xf32> to vector<4x768xf32>
    %135 = vector.shape_cast %132 : vector<4x768xf32> to vector<1x4x768xf32>
    tpu.vector_store %arg9[%c0_133, %c0_134, %c0_135], %135 {strides = array<i32>} : memref<1x4x768xf32, #tpu.memory_space<vmem>>, vector<1x4x768xf32>,
    return
  }
  func.func @transform_0(%arg0: i32) -> (i32, i32, i32) {
    %c0_i32 = arith.constant 0 : i32
    %c0_i32_0 = arith.constant 0 : i32
    %c0_i32_1 = arith.constant 0 : i32
    return %arg0, %c0_i32, %c0_i32_0 : i32, i32, i32
  }
  func.func @transform_1(%arg0: i32) -> (i32, i32) {
    %c0_i32 = arith.constant 0 : i32
    %c0_i32_0 = arith.constant 0 : i32
    %c0_i32_1 = arith.constant 0 : i32
    return %c0_i32, %c0_i32_0 : i32, i32
  }
  func.func @transform_2(%arg0: i32) -> (i32, i32, i32) {
    %c0_i32 = arith.constant 0 : i32
    %c0_i32_0 = arith.constant 0 : i32
    %c0_i32_1 = arith.constant 0 : i32
    return %arg0, %c0_i32, %c0_i32_0 : i32, i32, i32
  }
  func.func @transform_3(%arg0: i32) -> (i32, i32, i32) {
    %c0_i32 = arith.constant 0 : i32
    %c0_i32_0 = arith.constant 0 : i32
    %c0_i32_1 = arith.constant 0 : i32
    return %arg0, %c0_i32, %c0_i32_0 : i32, i32, i32
  }
  func.func @transform_4(%arg0: i32) -> (i32, i32, i32) {
    %c0_i32 = arith.constant 0 : i32
    %c0_i32_0 = arith.constant 0 : i32
    %c0_i32_1 = arith.constant 0 : i32
    return %arg0, %c0_i32, %c0_i32_0 : i32, i32, i32
  }
  func.func @transform_5(%arg0: i32) -> (i32, i32, i32) {
    %c0_i32 = arith.constant 0 : i32
    %c0_i32_0 = arith.constant 0 : i32
    %c0_i32_1 = arith.constant 0 : i32
    return %arg0, %c0_i32, %c0_i32_0 : i32, i32, i32
  }
  func.func @transform_6(%arg0: i32) -> (i32, i32, i32) {
    %c0_i32 = arith.constant 0 : i32
    %c0_i32_0 = arith.constant 0 : i32
    %c0_i32_1 = arith.constant 0 : i32
    %c0_i32_2 = arith.constant 0 : i32
    return %c0_i32, %c0_i32_0, %c0_i32_1 : i32, i32, i32
  }
  func.func @transform_7(%arg0: i32) -> (i32, i32) {
    %c0_i32 = arith.constant 0 : i32
    %c0_i32_0 = arith.constant 0 : i32
    %c0_i32_1 = arith.constant 0 : i32
    return %c0_i32, %c0_i32_0 : i32, i32
  }
  func.func @transform_8(%arg0: i32) -> (i32, i32, i32) {
    %c0_i32 = arith.constant 0 : i32
    %c0_i32_0 = arith.constant 0 : i32
    %c0_i32_1 = arith.constant 0 : i32
    return %arg0, %c0_i32, %c0_i32_0 : i32, i32, i32
  }
}

</mosaic_0001>

<bundles_post_ra>
// kernel: tpu_custom_call.1
= control target key start
LH: loop header
LB: loop body
LE: loop exit
PB: predicated region body
PF: predicated region fallthrough
CT: control target
= control target key end

     0   :  { %s7054_s0 = inlined_call_operand.hbm [shape: f32[2,4,1024], index: 0, kind: input, shape index: {}]   ;;  %s7055_s1 = inlined_call_operand.hbm [shape: f32[1,768], index: 1, kind: input, shape index: {}]   ;;  %s7056_s2 = inlined_call_operand.vmem [shape: f32[2,4,40], index: 2, kind: input, shape index: {}]   ;;  %s7057_s3 = inlined_call_operand.hbm [shape: f32[2,4,80], index: 3, kind: input, shape index: {}]   ;;  %s7058_s4 = inlined_call_operand.hbm [shape: f32[2,4,120], index: 4, kind: input, shape index: {}]   ;;  %s7059_s5 = inlined_call_operand.vmem [shape: f32[2,4,160], index: 5, kind: input, shape index: {}]   ;;  %s7060_s6 = inlined_call_operand.vmem [shape: f32[3,4,1], index: 6, kind: input, shape index: {}]   ;;  %s7061_s7 = inlined_call_operand.vmem [shape: f32[4,1], index: 7, kind: input, shape index: {}]   ;;  %s7062_s8 = inlined_call_operand.hbm [shape: f32[2,4,768], index: 8, kind: output, shape index: {}]  }
   0x1   :  { %7143 = sst [smem:[#allocation47_spill]] %s7054_s0 }
   0x2   :  { %7144 = sst [smem:[#allocation48_spill]] %s7057_s3 }
   0x3   :  { %13 = vsyncpa [#allocation5], 0 }
   0x4   :  { %15 = vsyncpa [#allocation5 + $0x1], 0 }
   0x5   :  { %16 = vsyncpa [#allocation8], 0 }
   0x6   :  { %17 = vsyncpa [#allocation6], 0 }
   0x7   :  { %19 = vsyncpa [#allocation6 + $0x1], 0  ;;  %s5033_s27 = smov 0   ;;  %s5035_s28 = smov 0  }
   0x8   :  { %s5037_s29 = smov 0   ;;  %s5039_s30 = smov 0  }
   0x9 LB: > { %7145 = sst [smem:[#allocation16_spill]] %s4967_s29  ;;  %s5054_s9 = sadd.s32 1, %s4971_s30   ;;  %s4971_s30 = sphi %s5039_s30, %s7356_s30   ;;  %s4967_s29 = sphi %s5037_s29, %s7358_s29   ;;  %s4963_s28 = sphi %s5035_s28, %s7360_s28   ;;  %s4959_s27 = sphi %s5033_s27, %s7359_s27  }
   0xa   : > { %7146 = sst [smem:[#allocation17_spill]] %s4971_s30  ;;  %s32_s10 = sadd.s32 1, %s4967_s29 }
   0xb   : > { %7147 = sst [smem:[#allocation18_spill]] %s5054_s9  ;;  %s29_s11 = ssub.s32 %s4971_s30, %s5054_s9 }
   0xc   : > { %p7063_p0 = scmp.ne.s32.totalorder %s4967_s29, %s4963_s28  ;;  %p30_p1 = scmp.eq.s32.totalorder %s29_s11, 0 }
   0xd   : > { %p40_p2 = scmp.eq.s32.totalorder %s4971_s30, 0  ;;  %p3866_p4 = scmp.lt.s32.totalorder %s4971_s30, 2 }
   0xe   : > { %s5065_s12 = scalar_select %p30_p1, %s4967_s29, %s32_s10  }
   0xf   : > { %p41_p5 = por %p40_p2, %p7063_p0  ;;  %s279_s13 = sand.u32 1, %s4971_s30  }
  0x10   : > { %7148 = sst [smem:[#allocation19_spill]] %s5065_s12  ;;  %s281_s14 = sand.u32 1, %s4967_s29  }
  0x11   : > { %s3793_s15 = sshll.u32 %s281_s14, 5  ;;  %s3831_s16 = sshll.u32 %s4971_s30, 9 }
  0x12   : > { %s7149_s0 = sld [smem:[#allocation47_spill]]  ;;  %s283_s20 = scalar_lea.vmem [#allocation4], %s3793_s15 }
  0x13   : > { %s291_s21 = sshll.u32 %s283_s20, 4  ;;  %p5078_p6 = pnand %p3866_p4, %p41_p5  ;;  %s292_s21 = int_to_ptr.vmem [resolvable:$true] %s291_s21 }
  0x14   : > { %s5082_s23 = sshll.u32 %s281_s14, 2  ;;  %s5084_s24 = scalar_lea.sflag [#allocation5], %s279_s13 }
  0x15   : > { %p5090_p8 = pneg %p5078_p6 }
  0x18   : > { %s5076_s19 = scalar_lea.hbm %s7149_s0, %s3831_s16  ;;  %s4794_s15 = scalar_lea.hbm %s7149_s0, 1024 }
  0x19   : > { %s4789_s25 = scalar_lea.hbm %s5076_s19, 512  ;;  %p4795_p11 = scmp.lt.s32.totalorder %s5076_s19, %s7149_s0 }
  0x1a   : > { %p4790_p7 = scmp.ne.s32.totalorder %s5076_s19, %s4789_s25  ;;  %p4796_p12 = scmp.lt.s32.totalorder %s4794_s15, %s4789_s25 }
  0x1c   : > { %p4792_p9 = pnand %p5090_p8, %p4790_p7  ;;  %p4797_p13 = por %p4796_p12, %p4795_p11 }
  0x1e   : > { %p4793_p10 = pneg %p4792_p9 }
  0x20   : > { %p4798_p1 = pnand %p4797_p13, %p4793_p10 }
  0x22   : > { %4801 = shalt.err (!%p4798_p1)
}
  0x23   : > { %s4802_s13 = scalar_lea.vmem %s292_s21, 512  ;;  %s4973_s17 = smov [#allocation4]  }
  0x24   : > { %p4803_p2 = scmp.ne.s32.totalorder %s292_s21, %s4802_s13  ;;  %s4807_s18 = sshll.u32 %s4973_s17, 4  ;;  %s4808_s18 = int_to_ptr.vmem [resolvable:$false] %s4807_s18 }
  0x25   : > { %s4809_s20 = scalar_lea.vmem %s4808_s18, 1024  ;;  %p4810_p7 = scmp.lt.s32.totalorder %s292_s21, %s4808_s18 }
  0x26   : > { %p4805_p4 = pnand %p4803_p2, %p5090_p8  ;;  %p4811_p9 = scmp.lt.s32.totalorder %s4809_s20, %s4802_s13 }
  0x28   : > { %p4806_p5 = pneg %p4805_p4  ;;  %p4812_p3 = por %p4811_p9, %p4810_p7 }
  0x2a   : > { %p4813_p0 = pnand %p4812_p3, %p4806_p5 }
  0x2c   : > { %4816 = shalt.err (!%p4813_p0)
}
  0x2d   : > { %3854 = dma.hbm_to_vmem [thread:$0]  (!%p5078_p6), %s5076_s19, 512, %s292_s21, %s5084_s24  }
  0x2e   : > { %s3797_s25 = sshll.u32 %s4971_s30, 6  ;;  %s309_s10 = scalar_lea.vmem [#allocation9], %s5082_s23 }
  0x2f   : > { %s316_s11 = sshll.u32 %s309_s10, 4  ;;  %s7152_s3 = sld [smem:[#allocation48_spill]]  ;;  %s317_s11 = int_to_ptr.vmem [resolvable:$true] %s316_s11 }
  0x35   : > { %s314_s14 = scalar_lea.hbm %s7152_s3, %s3797_s25  ;;  %s4822_s20 = scalar_lea.hbm %s7152_s3, 128 }
  0x36   : > { %s4817_s13 = scalar_lea.hbm %s314_s14, 64  ;;  %p4823_p11 = scmp.lt.s32.totalorder %s314_s14, %s7152_s3 }
  0x37   : > { %p4818_p0 = scmp.ne.s32.totalorder %s314_s14, %s4817_s13  ;;  %p4824_p12 = scmp.lt.s32.totalorder %s4822_s20, %s4817_s13 }
  0x39   : > { %p4820_p3 = pnand %p4818_p0, %p5090_p8  ;;  %p4825_p13 = por %p4824_p12, %p4823_p11 }
  0x3b   : > { %p4821_p10 = pneg %p4820_p3 }
  0x3d   : > { %p4826_p1 = pnand %p4825_p13, %p4821_p10 }
  0x3f   : > { %4829 = shalt.err (!%p4826_p1)
}
  0x40   : > { %s4830_s21 = scalar_lea.vmem %s317_s11, 64  ;;  %s4974_s10 = smov [#allocation9]  }
  0x41   : > { %p4831_p2 = scmp.ne.s32.totalorder %s317_s11, %s4830_s21  ;;  %s4835_s15 = sshll.u32 %s4974_s10, 4  ;;  %s4836_s15 = int_to_ptr.vmem [resolvable:$false] %s4835_s15 }
  0x42   : > { %s4837_s16 = scalar_lea.vmem %s4836_s15, 128  ;;  %p4838_p7 = scmp.lt.s32.totalorder %s317_s11, %s4836_s15 }
  0x43   : > { %p4833_p4 = pnand %p4831_p2, %p5090_p8  ;;  %p4839_p9 = scmp.lt.s32.totalorder %s4837_s16, %s4830_s21 }
  0x45   : > { %p4834_p5 = pneg %p4833_p4  ;;  %p4840_p0 = por %p4839_p9, %p4838_p7 }
  0x47   : > { %p4841_p3 = pnand %p4840_p0, %p4834_p5 }
  0x49   : > { %4844 = shalt.err (!%p4841_p3)
}
  0x4a   : > { %3857 = dma.hbm_to_vmem [thread:$0]  (!%p5078_p6), %s314_s14, 64, %s317_s11, %s5084_s24  }
  0x4b   : > { %s5130_s0 = sadd.s32 4294967295, %s4971_s30   ;;  %s3789_s13 = sadd.s32 4294967294, %s4971_s30  }
  0x4c   : > { %p45_p10 = scmp.ne.s32.totalorder %s4963_s28, %s4959_s27  ;;  %p7065_p11 = scmp.eq.s32.totalorder %s5130_s0, 0 }
  0x4d   : > { %p236_p12 = scmp.eq.s32.totalorder %s5130_s0, 1  ;;  %p242_p13 = scmp.eq.s32.totalorder %s3789_s13, 1 }
  0x4e   : > { %p5139_p1 = por %p7065_p11, %p45_p10  ;;  %p3790_p2 = scmp.ge.s32.totalorder %s4971_s30, 1 }
  0x4f   : > { %p7154_p4 = scmp.ne.s32.totalorder %s4967_s29, %s4963_s28  ;;  %p5151_p7 = por %p242_p13, %p45_p10 }
  0x50   : > { %s7153_s17 = scalar_select %p5139_p1, 1, 0 }
  0x51   : > { %p5147_p5 = por %p236_p12, %p7154_p4  ;;  %p249_p9 = scmp.lt.s32.totalorder %s4971_s30, 3 }
  0x52   : > { %s7156_s14 = scalar_select %p5151_p7, 1, 0 }
  0x53   : > { %s7155_s11 = scalar_select %p5147_p5, 1, 0 }
  0x54   : > { %p5156_p0 = pnand %p3790_p2, %p249_p9  ;;  %s4975_s20 = smov [#allocation7]  }
  0x55   : > { %s262_s19 = sshll.u32 %s4975_s20, 4  ;;  %s5165_s15 = scalar_lea.hbm %s7058_s4, %s3797_s25  ;;  %s5170_s19 = int_to_ptr.vmem [resolvable:$true] %s262_s19 }
  0x56   : > { %s7157_s18 = scalar_select %p5156_p0, 1, 0 }
  0x57   : > { %p3847_p3 = pneg %p5156_p0  ;;  %s327_s16 = scalar_lea.vmem [#allocation10], %s5082_s23 }
  0x58   : > { %s334_s13 = sshll.u32 %s327_s16, 4  ;;  %s4845_s20 = scalar_lea.hbm %s5165_s15, 64  ;;  %s335_s13 = int_to_ptr.vmem [resolvable:$true] %s334_s13 }
  0x59   : > { %p5174_p10 = pnand %p3847_p3, %p7065_p11  ;;  %p4846_p12 = scmp.ne.s32.totalorder %s5165_s15, %s4845_s20 }
  0x5a   : > { %s4850_s10 = scalar_lea.hbm %s7058_s4, 128  ;;  %p4851_p4 = scmp.lt.s32.totalorder %s5165_s15, %s7058_s4 }
  0x5b   : > { %s7158_s3 = scalar_select %p5174_p10, 1, 0 }
  0x5c   : > { %p4848_p13 = pnand %p4846_p12, %p5090_p8  ;;  %p4852_p9 = scmp.lt.s32.totalorder %s4850_s10, %s4845_s20 }
  0x5e   : > { %p4849_p2 = pneg %p4848_p13  ;;  %p4853_p7 = por %p4852_p9, %p4851_p4 }
  0x60   : > { %p4854_p5 = pnand %p4853_p7, %p4849_p2 }
  0x62   : > { %4857 = shalt.err (!%p4854_p5)
}
  0x63   : > { %s4858_s16 = scalar_lea.vmem %s335_s13, 64  ;;  %s4976_s29 = smov [#allocation10]  }
  0x64   : > { %p4859_p3 = scmp.ne.s32.totalorder %s335_s13, %s4858_s16  ;;  %s4863_s9 = sshll.u32 %s4976_s29, 4  ;;  %s4864_s9 = int_to_ptr.vmem [resolvable:$false] %s4863_s9 }
  0x65   : > { %s4865_s30 = scalar_lea.vmem %s4864_s9, 128  ;;  %p4866_p12 = scmp.lt.s32.totalorder %s335_s13, %s4864_s9 }
  0x66   : > { %p4861_p11 = pnand %p4859_p3, %p5090_p8  ;;  %p4867_p13 = scmp.lt.s32.totalorder %s4865_s30, %s4858_s16 }
  0x68   : > { %p4862_p1 = pneg %p4861_p11  ;;  %p4868_p0 = por %p4867_p13, %p4866_p12 }
  0x6a   : > { %p4869_p10 = pnand %p4868_p0, %p4862_p1 }
  0x6c   : > { %4872 = shalt.err (!%p4869_p10)
}
  0x6d   : > { %3860 = dma.hbm_to_vmem [thread:$0]  (!%p5078_p6), %s5165_s15, 64, %s335_s13, %s5084_s24  }
  0x6e   : > { %p7159_p8 = scmp.ne.s32.totalorder %s7158_s3, 0  ;;  %s4884_s12 = scalar_lea.vmem %s5170_s19, 96 }
  0x6f   : > { %p4885_p5 = scmp.ne.s32.totalorder %s5170_s19, %s4884_s12  ;;  %p4892_p4 = scmp.lt.s32.totalorder %s5170_s19, %s5170_s19 }
  0x70   : > { %p4875_p11 = pneg %p7159_p8  ;;  %p4893_p9 = scmp.lt.s32.totalorder %s4884_s12, %s4884_s12 }
  0x72   : > { %p4887_p7 = pnand %p4885_p5, %p4875_p11  ;;  %p4894_p1 = por %p4893_p9, %p4892_p4 }
  0x74   : > { %p4888_p2 = pneg %p4887_p7 }
  0x76   : > { %p4895_p0 = pnand %p4894_p1, %p4888_p2 }
  0x78   : > { %4898 = shalt.err (!%p4895_p0)
}
  0x79   : > { %3850 = dma.hbm_to_vmem [thread:$0]  (!%p7159_p8), %s7055_s1, 96, %s5170_s19, [#allocation8]  }
  0x7a   : > { %p7160_p6 = scmp.ne.s32.totalorder %s7157_s18, 0 }
  0x7c   : > { %351 = sbr.rel (%p7160_p6) target bundleno = 2278 (0x8e6), region = 52 }
  0x81   : > { %s353_s9 = sand.u32 1, %s5130_s0   ;;  %s5211_s22 = sand.u32 1, %s4963_s28  }
  0x82   : > { %s3801_s24 = sshll.u32 %s5211_s22, 5  ;;  %s354_s26 = scalar_lea.sflag [#allocation5], %s353_s9 }
  0x83   : > { %s5214_s15 = scalar_lea.vmem [#allocation4], %s3801_s24  ;;  %p7161_p10 = scmp.ne.s32.totalorder %s7153_s17, 0 }
  0x85   : > { %4942 = dma.done.wait (%p7161_p10), %s354_s26, 512  }
  0x86   : > { %4944 = vsyncadd (%p7161_p10), %s354_s26, 4294966784  ;;  %p7162_p3 = scmp.eq.s32.totalorder %s5130_s0, 0 }
  0x88   : > { %4946 = dma.done.wait (%p7162_p3), [#allocation8], 96   ;;  %p7163_p12 = pmov %p7162_p3 }
  0x89   : > { %s3803_s3 = sshll.u32 %s5211_s22, 2 }
  0x8a   : > { %4948 = vsyncadd (%p7163_p12), [#allocation8], 4294967200  ;;  %s5227_s18 = scalar_lea.vmem [#allocation9], %s3803_s3 }
  0x8b   : > { %4950 = dma.done.wait (%p7161_p10), %s354_s26, 128  }
  0x8c   : > { %4952 = vsyncadd (%p7161_p10), %s354_s26, 4294967168  ;;  %v449_v0 = vld [vmem:[%s5214_s15 + $0x4] sm:$0xff]  ;;  %v450_v1 = vld [vmem:[%s5214_s15 + $0xc] sm:$0xff]  ;;  %s4977_s19 = smov 90   ;;  %s4978_s13 = smov 109   ;;  %vm691_vm0 = vcmask 736256  }
  0x8d   : > { %v618_v2 = vcombine.high %v449_v0, %v449_v0  ;;  %v619_v3 = vcombine.high %v450_v1, %v450_v1  ;;  %v586_v6 = vcombine.low %v449_v0, %v449_v0  ;;  %v587_v7 = vcombine.low %v450_v1, %v450_v1  ;;  %s4979_s17 = smov 108   ;;  %v5242_v10 = vld [vmem:[%s5214_s15] sm:$0xff]  ;;  %v5245_v11 = vld [vmem:[%s5214_s15 + $0x8] sm:$0xff]  ;;  %s4980_s20 = smov 92   ;;  %v448_v20 = vld [vmem:[%s5214_s15 + $0x14] sm:$0xff] }
  0x8e   : > { %v464_v12 = vcombine.low %v5245_v11, %v5245_v11  ;;  %v463_v13 = vcombine.low %v5242_v10, %v5242_v10  ;;  %v5255_v14 = vcombine.high %v5245_v11, %v5245_v11  ;;  %s4981_s25 = smov 91   ;;  %v5263_v17 = vcombine.high %v5242_v10, %v5242_v10  ;;  %s4982_s21 = smov 127   ;;  %v5277_v24 = vld [vmem:[%s5214_s15 + $0x10] sm:$0xff]  ;;  %v452_v30 = vld [vmem:[%s5214_s15 + $0x1c] sm:$0xf] }
  0x8f   : > { %v3912_v4 = vpack.i.bf16 %v618_v2, %v449_v0  ;;  %v3917_v5 = vpack.i.bf16 %v619_v3, %v450_v1  ;;  %v3932_v8 = vpack.i.bf16 %v449_v0, %v586_v6  ;;  %v3937_v9 = vpack.i.bf16 %v450_v1, %v587_v7  ;;  %s4983_s10 = smov 126   ;;  %s4984_s23 = smov 110   ;;  %v5300_v33 = vld [vmem:[%s5214_s15 + $0x18] sm:$0xf] }
  0x90   : > { %v3962_v15 = vpack.i.bf16 %v464_v12, %v5242_v10  ;;  %v3967_v16 = vpack.i.bf16 %v463_v13, %v5245_v11  ;;  %v3977_v18 = vpack.i.bf16 %v5242_v10, %v5255_v14  ;;  %v3972_v19 = vpack.i.bf16 %v5245_v11, %v5263_v17  ;;  %s4985_s16 = smov 19   ;;  %p431_p13 = scmp.lt.s32.totalorder %s5130_s0, 1 }
  0x91   : > { %3913 = vrot.lane.b32.xlu0 %v3912_v4, %s4977_s19  ;;  %3923 = vrot.lane.b32.xlu1 %v3912_v4, %s4978_s13  ;;  %v556_v21 = vcombine.high %v448_v20, %v448_v20  ;;  %v588_v23 = vcombine.low %v448_v20, %v448_v20  ;;  %v465_v26 = vcombine.low %v5277_v24, %v5277_v24  ;;  %vm705_vm1 = vcmask 1043456   ;;  %s379_s26 = scalar_lea.vmem [#allocation10], %s3803_s3  ;;  %p7352_p11 = scmp.ne.s32.totalorder %s7155_s11, 0 }
  0x92   : > { %v5288_v28 = vcombine.high %v5277_v24, %v5277_v24  ;;  %v589_v31 = vcombine.low %v452_v30, %v452_v30  ;;  %v466_v34 = vcombine.low %v5300_v33, %v5300_v33  ;;  %vm569_vm2 = vcmask 891904   ;;  %s5535_s30 = scalar_select %p431_p13, %s5130_s0, 1 }
  0x93   : > { %v3997_v22 = vpack.i.bf16 %v556_v21, %v448_v20  ;;  %v4002_v25 = vpack.i.bf16 %v448_v20, %v588_v23  ;;  %v4012_v27 = vpack.i.bf16 %v5277_v24, %v465_v26  ;;  %vm604_vm3 = vcmask 883712  }
  0x94   : > { %v4017_v29 = vpack.i.bf16 %v5288_v28, %v5277_v24  ;;  %v4027_v32 = vpack.i.bf16 %v589_v31, %v448_v20  ;;  %vm635_vm4 = vcmask 752640   ;;  %vm663_vm5 = vcmask 744448   ;;  %s3805_s9 = sshll.u32 %s5535_s30, 2  ;;  %s3832_s3 = sshll.u32 %s5535_s30, 3 }
  0x95   : > { %3918 = vrot.lane.b32.xlu0 %v3917_v5, %s4977_s19  ;;  %3928 = vrot.lane.b32.xlu1 %v3917_v5, %s4978_s13  ;;  %vm481_vm6 = vcmask 1039360   ;;  %vm7097_vm7 = vcmask 1031168   ;;  %vm7128_vm8 = vcmask 900096   ;;  %vm7094_vm9 = vcmask 154624   ;;  %s434_s12 = scalar_lea.vmem %s7056_s2, %s3805_s9  ;;  %s4987_s9 = smov [#allocation11]  }
  0x96   : > { %vm988_vm10 = vcmask 326656  }
  0x99   : > { %3933 = vrot.lane.b32.xlu0 %v3932_v8, %s4979_s17  ;;  %3938 = vrot.lane.b32.xlu1 %v3937_v9, %s4979_s17 }
  0x9d   : > { %3943 = vrot.lane.b32.xlu0 %v3912_v4, %s4980_s20  ;;  %3948 = vrot.lane.b32.xlu1 %v3917_v5, %s4980_s20 }
  0xa1   : > { %3953 = vrot.lane.b32.xlu0 %v3932_v8, %s4981_s25  ;;  %3958 = vrot.lane.b32.xlu1 %v3937_v9, %s4981_s25 }
  0xa5   : > { %3963 = vrot.lane.b32.xlu0 %v3962_v15, %s4982_s21  ;;  %3968 = vrot.lane.b32.xlu1 %v3967_v16, %s4982_s21 }
  0xa9   : > { %3978 = vrot.lane.b32.xlu1 %v3977_v18, %s4983_s10  ;;  %3973 = vrot.lane.b32.xlu0 %v3972_v19, %s4983_s10 }
  0xad   : > { %3988 = vrot.lane.b32.xlu1 %v3967_v16, %s4984_s23  ;;  %3983 = vrot.lane.b32.xlu0 %v3962_v15, %s4984_s23 }
  0xb1   : > { %3998 = vrot.lane.b32.xlu1 %v3997_v22, %s4978_s13  ;;  %3993 = vrot.lane.b32.xlu0 %v3997_v22, %s4977_s19 }
  0xb5   : > { %4008 = vrot.lane.b32.xlu1 %v3997_v22, %s4980_s20  ;;  %4003 = vrot.lane.b32.xlu0 %v4002_v25, %s4979_s17 }
  0xb9   : > { %4013 = vrot.lane.b32.xlu1 %v4012_v27, %s4982_s21  ;;  %657 = vrot.lane.b32.xlu0 %v588_v23, %s4981_s25 }
  0xbd   : > { %4023 = vrot.lane.b32.xlu1 %v4012_v27, %s4984_s23  ;;  %4018 = vrot.lane.b32.xlu0 %v4017_v29, %s4983_s10 }
  0xc1   : > { %602 = vrot.lane.b32.xlu1 %v589_v31, %s4979_s17  ;;  %689 = vrot.lane.b32.xlu0 %v452_v30, %s4977_s19 }
  0xc5   : > { %4028 = vrot.lane.b32.xlu1 %v4027_v32, %s4981_s25  ;;  %633 = vrot.lane.b32.xlu0 %v452_v30, %s4980_s20 }
  0xc9   : > { %507 = vrot.lane.b32.xlu1 %v5300_v33, %s4983_s10  ;;  %479 = vrot.lane.b32.xlu0 %v466_v34, %s4982_s21 }
  0xcd   : > { %535 = vrot.lane.b32.xlu0 %v466_v34, %s4984_s23 }
 0x103   : > { %v3914_v35 = vpop.permute.xlu0 %3913  ;;  %v3924_v36 = vpop.permute.xlu1 %3923 }
 0x104   : > { %v3916_v37 = vunpack.i.h.bf16 %v3914_v35  ;;  %v3915_v38 = vunpack.i.l.bf16 %v3914_v35  ;;  %v3926_v46 = vunpack.i.h.bf16 %v3924_v36  ;;  %v3925_v47 = vunpack.i.l.bf16 %v3924_v36 }
 0x106   : > { %v692_v39 = vsel %vm691_vm0, %v3915_v38, %v3916_v37  ;;  %v734_v40 = vsel %vm705_vm1, %v3915_v38, 1.0  ;;  %v570_v53 = vsel %vm569_vm2, %v3925_v47, %v3926_v46 }
 0x107   : > { %v5312_v41 = vpop.permute.xlu0 %3918  ;;  %v5314_v42 = vpop.permute.xlu1 %3928  ;;  %v735_v43 = vsel %vm705_vm1, %v692_v39, 1.0 }
 0x108   : > { %v3920_v44 = vunpack.i.l.bf16 %v5312_v41  ;;  %v4032_v45 = vpack.i.bf16 %v735_v43, %v734_v40  ;;  %v3930_v0 = vunpack.i.l.bf16 %v5314_v42  ;;  %v3921_v29 = vunpack.i.h.bf16 %v5312_v41 }
 0x10a   : > { %4033 = vrot.lane.b32.xlu1 %v4032_v45, %s4985_s16  ;;  %v693_v52 = vsel %vm691_vm0, %v3916_v37, %v3920_v44  ;;  %v571_v16 = vsel %vm569_vm2, %v3926_v46, %v3930_v0  ;;  %v3931_v45 = vunpack.i.h.bf16 %v5314_v42 }
 0x10b   : > { %v3934_v48 = vpop.permute.xlu0 %3933  ;;  %v5319_v49 = vpop.permute.xlu1 %3938  ;;  %v736_v58 = vsel %vm705_vm1, %v693_v52, 1.0 }
 0x10c   : > { %v3936_v50 = vunpack.i.h.bf16 %v3934_v48  ;;  %v3935_v51 = vunpack.i.l.bf16 %v3934_v48  ;;  %v3940_v59 = vunpack.i.l.bf16 %v5319_v49  ;;  %v3941_v35 = vunpack.i.h.bf16 %v5319_v49 }
 0x10e   : > { %v605_v54 = vsel %vm604_vm3, %v3935_v51, %v3936_v50  ;;  %v606_v6 = vsel %vm604_vm3, %v3936_v50, %v3940_v59  ;;  %v720_v23 = vsel %vm705_vm1, %v3925_v47, %v3935_v51  ;;  %v694_v47 = vsel %vm691_vm0, %v3920_v44, %v3921_v29 }
 0x10f   : > { %v3944_v55 = vpop.permute.xlu0 %3943  ;;  %v5326_v56 = vpop.permute.xlu1 %3948  ;;  %v721_v57 = vsel %vm705_vm1, %v570_v53, %v605_v54  ;;  %v722_v22 = vsel %vm705_vm1, %v571_v16, %v606_v6  ;;  %v607_v41 = vsel %vm604_vm3, %v3940_v59, %v3941_v35 }
 0x110   : > { %v4037_v60 = vpack.i.bf16 %v721_v57, %v736_v58  ;;  %v3946_v61 = vunpack.i.h.bf16 %v3944_v55  ;;  %v3945_v62 = vunpack.i.l.bf16 %v3944_v55  ;;  %v3950_v63 = vunpack.i.l.bf16 %v5326_v56 }
 0x112   : > { %4038 = vrot.lane.b32.xlu0 %v4037_v60, %s4985_s16  ;;  %v636_v7 = vsel %vm635_vm4, %v3945_v62, %v3946_v61  ;;  %v637_v9 = vsel %vm635_vm4, %v3946_v61, %v3950_v63  ;;  %v3951_v61 = vunpack.i.h.bf16 %v5326_v56 }
 0x113   : > { %v3954_v1 = vpop.permute.xlu0 %3953  ;;  %v5334_v2 = vpop.permute.xlu1 %3958 }
 0x114   : > { %v3956_v3 = vunpack.i.h.bf16 %v3954_v1  ;;  %v3955_v4 = vunpack.i.l.bf16 %v3954_v1  ;;  %v3960_v5 = vunpack.i.l.bf16 %v5334_v2  ;;  %v3961_v6 = vunpack.i.h.bf16 %v5334_v2 }
 0x116   : > { %v664_v8 = vsel %vm663_vm5, %v3955_v4, %v3956_v3  ;;  %v665_v12 = vsel %vm663_vm5, %v3956_v3, %v3960_v5  ;;  %v727_v34 = vsel %vm705_vm1, %v3945_v62, %v3955_v4 }
 0x117   : > { %v3964_v13 = vpop.permute.xlu0 %3963  ;;  %v5346_v15 = vpop.permute.xlu1 %3968  ;;  %v728_v18 = vsel %vm705_vm1, %v636_v7, %v664_v8  ;;  %v729_v19 = vsel %vm705_vm1, %v637_v9, %v665_v12 }
 0x118   : > { %v3966_v20 = vunpack.i.h.bf16 %v3964_v13  ;;  %v3965_v21 = vunpack.i.l.bf16 %v3964_v13  ;;  %v4042_v25 = vpack.i.bf16 %v728_v18, %v722_v22  ;;  %v4047_v26 = vpack.i.bf16 %v720_v23, %v729_v19 }
 0x119   : > { %v3971_v36 = vunpack.i.h.bf16 %v5346_v15  ;;  %v3970_v37 = vunpack.i.l.bf16 %v5346_v15  ;;  %v572_v22 = vsel %vm569_vm2, %v3930_v0, %v3931_v45  ;;  %v638_v0 = vsel %vm635_vm4, %v3950_v63, %v3951_v61 }
 0x11a   : > { %v483_v27 = vsel %vm481_vm6, %v3965_v21, %v3966_v20  ;;  %4043 = vrot.lane.b32.xlu1 %v4042_v25, %s4985_s16  ;;  %4048 = vrot.lane.b32.xlu0 %v4047_v26, %s4985_s16  ;;  %v737_v26 = vsel %vm705_vm1, %v694_v47, 1.0 }
 0x11b   : > { %v5359_v30 = vpop.permute.xlu1 %3978  ;;  %v3974_v31 = vpop.permute.xlu0 %3973  ;;  %v707_v32 = vsel %vm705_vm1, %v5263_v17, %v483_v27  ;;  %v484_v54 = vsel %vm481_vm6, %v3966_v20, %v3970_v37  ;;  %v482_v55 = vsel %vm481_vm6, %v3971_v36, %v3965_v21  ;;  %v7075_v21 = vmov 0  }
 0x11c   : > { %v4052_v38 = vpack.i.bf16 %v707_v32, %v727_v34  ;;  %v3980_v39 = vunpack.i.l.bf16 %v5359_v30  ;;  %v3976_v40 = vunpack.i.h.bf16 %v3974_v31  ;;  %v3975_v43 = vunpack.i.l.bf16 %v3974_v31  ;;  %1042 = vmatprep.mubr.bf16.mxu0 %v7075_v21  ;;  %4117 = vset.pattern.permute.xlu1 %v7075_v21 }
 0x11d   : > { %v3981_v53 = vunpack.i.h.bf16 %v5359_v30  ;;  %v708_v8 = vsel %vm705_vm1, %v5245_v11, %v484_v54  ;;  %v706_v9 = vsel %vm705_vm1, %v5242_v10, %v482_v55  ;;  %v723_v27 = vsel %vm705_vm1, %v572_v22, %v607_v41  ;;  %1824 = vmatprep.mubr.bf16.mxu1 %v7075_v21  ;;  %4728 = vset.pattern.permute.xlu0 %v7075_v21 }
 0x11e   : > { %4053 = vrot.lane.b32.xlu1 %v4052_v38, %s4985_s16  ;;  %v511_v44 = vsel %vm7097_vm7, %v3975_v43, %v3976_v40  ;;  %v512_v58 = vsel %vm7097_vm7, %v3976_v40, %v3980_v39 }
 0x11f   : > { %v5370_v46 = vpop.permute.xlu1 %3988  ;;  %v3984_v17 = vpop.permute.xlu0 %3983  ;;  %v510_v16 = vsel %vm7097_vm7, %v3981_v53, %v3975_v43 }
 0x120   : > { %v3991_v48 = vunpack.i.h.bf16 %v5370_v46  ;;  %v3990_v50 = vunpack.i.l.bf16 %v5370_v46  ;;  %v3986_v51 = vunpack.i.h.bf16 %v3984_v17  ;;  %v3985_v52 = vunpack.i.l.bf16 %v3984_v17 }
 0x122   : > { %v539_v57 = vsel %vm7128_vm8, %v3985_v52, %v3986_v51  ;;  %v540_v60 = vsel %vm7128_vm8, %v3986_v51, %v3990_v50  ;;  %v538_v4 = vsel %vm7128_vm8, %v3991_v48, %v3985_v52 }
 0x123   : > { %v5394_v62 = vpop.permute.xlu1 %3998  ;;  %v5396_v1 = vpop.permute.xlu0 %3993  ;;  %v714_v59 = vsel %vm705_vm1, %v511_v44, %v539_v57  ;;  %v715_v3 = vsel %vm705_vm1, %v512_v58, %v540_v60  ;;  %v713_v19 = vsel %vm705_vm1, %v510_v16, %v538_v4 }
 0x124   : > { %v3995_v7 = vunpack.i.l.bf16 %v5396_v1  ;;  %v4057_v12 = vpack.i.bf16 %v714_v59, %v708_v8  ;;  %v4062_v13 = vpack.i.bf16 %v706_v9, %v715_v3  ;;  %v4000_v18 = vunpack.i.l.bf16 %v5394_v62 }
 0x125   : > { %v4067_v31 = vpack.i.bf16 %v737_v26, %v713_v19  ;;  %v3996_v32 = vunpack.i.h.bf16 %v5396_v1  ;;  %v4001_v57 = vunpack.i.h.bf16 %v5394_v62 }
 0x126   : > { %v695_v20 = vsel %vm691_vm0, %v3921_v29, %v3995_v7  ;;  %4058 = vrot.lane.b32.xlu0 %v4057_v12, %s4985_s16  ;;  %4063 = vrot.lane.b32.xlu1 %v4062_v13, %s4985_s16  ;;  %v666_v29 = vsel %vm663_vm5, %v3960_v5, %v3961_v6  ;;  %v573_v2 = vsel %vm569_vm2, %v3931_v45, %v4000_v18 }
 0x127   : > { %v5414_v11 = vpop.permute.xlu1 %4008  ;;  %v5416_v10 = vpop.permute.xlu0 %4003  ;;  %v738_v23 = vsel %vm705_vm1, %v695_v20, 1.0  ;;  %v730_v38 = vsel %vm705_vm1, %v638_v0, %v666_v29  ;;  %v696_v45 = vsel %vm691_vm0, %v3995_v7, %v3996_v32 }
 0x128   : > { %v4005_v25 = vunpack.i.l.bf16 %v5416_v10  ;;  %v4072_v42 = vpack.i.bf16 %v723_v27, %v738_v23  ;;  %v4010_v34 = vunpack.i.l.bf16 %v5414_v11  ;;  %v4006_v48 = vunpack.i.h.bf16 %v5416_v10 }
 0x129   : > { %v4011_v12 = vunpack.i.h.bf16 %v5414_v11 }
 0x12a   : > { %v608_v5 = vsel %vm604_vm3, %v3941_v35, %v4005_v25  ;;  %4068 = vrot.lane.b32.xlu0 %v4067_v31, %s4985_s16  ;;  %4073 = vrot.lane.b32.xlu1 %v4072_v42, %s4985_s16  ;;  %v639_v35 = vsel %vm635_vm4, %v3951_v61, %v4010_v34  ;;  %v609_v46 = vsel %vm604_vm3, %v4005_v25, %v4006_v48 }
 0x12b   : > { %v4014_v56 = vpop.permute.xlu1 %4013  ;;  %v658_v63 = vpop.permute.xlu0 %657  ;;  %v724_v36 = vsel %vm705_vm1, %v573_v2, %v608_v5  ;;  %v640_v62 = vsel %vm635_vm4, %v4010_v34, %v4011_v12 }
 0x12c   : > { %v4016_v40 = vunpack.i.h.bf16 %v4014_v56  ;;  %v4015_v43 = vunpack.i.l.bf16 %v4014_v56  ;;  %v667_v17 = vsel %vm663_vm5, %v3961_v6, %v658_v63  ;;  %v4077_v47 = vpack.i.bf16 %v730_v38, %v724_v36 }
 0x12d   : > { %v731_v54 = vsel %vm705_vm1, %v639_v35, %v667_v17 }
 0x12e   : > { %v485_v49 = vsel %vm481_vm6, %v3970_v37, %v4015_v43  ;;  %4078 = vrot.lane.b32.xlu0 %v4077_v47, %s4985_s16  ;;  %v486_v55 = vsel %vm481_vm6, %v4015_v43, %v4016_v40 }
 0x12f   : > { %v4024_v51 = vpop.permute.xlu1 %4023  ;;  %v4019_v52 = vpop.permute.xlu0 %4018  ;;  %v709_v53 = vsel %vm705_vm1, %v5255_v14, %v485_v49  ;;  %v710_v4 = vsel %vm705_vm1, %v5277_v24, %v486_v55  ;;  %v574_v24 = vsel %vm569_vm2, %v4000_v18, %v4001_v57 }
 0x130   : > { %v4026_v15 = vunpack.i.h.bf16 %v4024_v51  ;;  %v4025_v41 = vunpack.i.l.bf16 %v4024_v51  ;;  %v4021_v37 = vunpack.i.h.bf16 %v4019_v52  ;;  %v4020_v44 = vunpack.i.l.bf16 %v4019_v52 }
 0x131   : > { %v4082_v58 = vpack.i.bf16 %v709_v53, %v731_v54  ;;  %v725_v13 = vsel %vm705_vm1, %v574_v24, %v609_v46 }
 0x132   : > { %v513_v60 = vsel %vm7097_vm7, %v3980_v39, %v4020_v44  ;;  %v541_v61 = vsel %vm7128_vm8, %v3990_v50, %v4025_v41  ;;  %v514_v14 = vsel %vm7097_vm7, %v4020_v44, %v4021_v37  ;;  %v542_v1 = vsel %vm7128_vm8, %v4025_v41, %v4026_v15 }
 0x133   : > { %4083 = vrot.lane.b32.xlu1 %v4082_v58, %s4985_s16  ;;  %v603_v59 = vpop.permute.xlu1 %602  ;;  %v690_v3 = vpop.permute.xlu0 %689  ;;  %v716_v6 = vsel %vm705_vm1, %v513_v60, %v541_v61  ;;  %v717_v30 = vsel %vm705_vm1, %v514_v14, %v542_v1  ;;  %v739_v39 = vsel %vm705_vm1, %v696_v45, 1.0 }
 0x134   : > { %v697_v50 = vsel %vm691_vm0, %v3996_v32, %v690_v3  ;;  %v4087_v7 = vpack.i.bf16 %v716_v6, %v710_v4  ;;  %v4092_v8 = vpack.i.bf16 %v739_v39, %v717_v30  ;;  %v610_v20 = vsel %vm604_vm3, %v4006_v48, %v603_v59 }
 0x135   : > { %v740_v9 = vsel %vm705_vm1, %v697_v50, 1.0  ;;  %v726_v11 = vsel %vm705_vm1, %v4001_v57, %v610_v20 }
 0x136   : > { %4088 = vrot.lane.b32.xlu0 %v4087_v7, %s4985_s16  ;;  %v4097_v10 = vpack.i.bf16 %v725_v13, %v740_v9 }
 0x137   : > { %4093 = vrot.lane.b32.xlu1 %v4092_v8, %s4985_s16  ;;  %v4029_v16 = vpop.permute.xlu1 %4028  ;;  %v634_v19 = vpop.permute.xlu0 %633 }
 0x138   : > { %v4031_v22 = vunpack.i.h.bf16 %v4029_v16  ;;  %v4030_v23 = vunpack.i.l.bf16 %v4029_v16  ;;  %v641_v29 = vsel %vm635_vm4, %v4011_v12, %v634_v19 }
 0x13a   : > { %v669_v25 = vsel %vm663_vm5, %v4030_v23, %v4031_v22  ;;  %4098 = vrot.lane.b32.xlu0 %v4097_v10, %s4985_s16  ;;  %v668_v18 = vsel %vm663_vm5, %v658_v63, %v4030_v23  ;;  %v938_v22 = vld [vmem:[%s434_s12] sm:$0xf] }
 0x13b   : > { %v480_v26 = vpop.permute.xlu0 %479  ;;  %v732_v27 = vsel %vm705_vm1, %v640_v62, %v668_v18  ;;  %v733_v0 = vsel %vm705_vm1, %v641_v29, %v669_v25  ;;  %v508_v32 = vpop.permute.xlu1 %507  ;;  %v5561_v29 = vpack.c.bf16 %v938_v22, %v938_v22 }
 0x13c   : > { %v487_v31 = vsel %vm481_vm6, %v4016_v40, %v480_v26  ;;  %v4102_v42 = vpack.i.bf16 %v732_v27, %v726_v11  ;;  %v712_v5 = vsel %vm705_vm1, %v5300_v33, %v480_v26  ;;  %v515_v63 = vsel %vm7097_vm7, %v4021_v37, %v508_v32 }
 0x13d   : > { %v711_v2 = vsel %vm705_vm1, %v5288_v28, %v487_v31  ;;  %v937_v28 = vld [vmem:[%s7060_s6] sm:$0xf] }
 0x13e   : > { %4103 = vrot.lane.b32.xlu1 %v4102_v42, %s4985_s16  ;;  %v4107_v34 = vpack.i.bf16 %v711_v2, %v733_v0 }
 0x13f   : > { %v536_v56 = vpop.permute.xlu0 %535 }
 0x140   : > { %v543_v36 = vsel %vm7128_vm8, %v4026_v15, %v536_v56  ;;  %4108 = vrot.lane.b32.xlu0 %v4107_v34, %s4985_s16  ;;  %v719_v40 = vsel %vm705_vm1, %v508_v32, %v536_v56 }
 0x141   : > { %v718_v38 = vsel %vm705_vm1, %v515_v63, %v543_v36 }
 0x142   : > { %v4112_v43 = vpack.i.bf16 %v718_v38, %v712_v5 }
 0x144   : > { %4113 = vrot.lane.b32.xlu1 %v4112_v43, %s4985_s16  ;;  %802 = vrot.lane.b32.xlu0 %v719_v40, %s4985_s16 }
 0x148   : > { %1141 = vperm.xlu1 %4117, %v937_v28  }
 0x17c   : > { %v4034_v33 = vpop.permute.xlu1 %4033 }
 0x17d   : > { %v4036_v17 = vunpack.i.h.bf16 %v4034_v33  ;;  %v4035_v47 = vunpack.i.l.bf16 %v4034_v33 }
 0x17f   : > { %v5509_v49 = vsel %vm7094_vm9, %v4035_v47, %v4036_v17 }
 0x180   : > { %v982_v48 = vpack.c.bf16 %v5509_v49, %v5509_v49 }
 0x182   : > { %v993_v53 = vsel %vm705_vm1, %v982_v48, 0 }
 0x184   : > { %v4039_v35 = vpop.permute.xlu0 %4038 }
 0x185   : > { %v4040_v45 = vunpack.i.l.bf16 %v4039_v35  ;;  %v4041_v15 = vunpack.i.h.bf16 %v4039_v35 }
 0x187   : > { %v5514_v51 = vsel %vm7094_vm9, %v4036_v17, %v4040_v45 }
 0x188   : > { %v983_v52 = vpack.c.bf16 %v5514_v51, %v5514_v51 }
 0x18a   : > { %3808 = vmatprep.subr.msk.bf16.mxu0 %vm705_vm1, %v983_v52 }
 0x18b   : > { %1021 = vmatpush1.bf16.msra.mxu0 %v993_v53 }
 0x18c   : > { %v5520_v54 = vpop.permute.xlu1 %4043  ;;  %v4049_v55 = vpop.permute.xlu0 %4048 }
 0x18d   : > { %v4046_v41 = vunpack.i.h.bf16 %v5520_v54  ;;  %v4045_v37 = vunpack.i.l.bf16 %v5520_v54  ;;  %v4050_v44 = vunpack.i.l.bf16 %v4049_v55  ;;  %v4051_v58 = vunpack.i.h.bf16 %v4049_v55 }
 0x18f   : > { %v860_v57 = vsel %vm7094_vm9, %v4041_v15, %v4045_v37  ;;  %v866_v60 = vsel %vm7094_vm9, %v4046_v41, %v4050_v44  ;;  %v859_v59 = vsel %vm7094_vm9, %v4051_v58, %v4041_v15 }
 0x190   : > { %v4054_v61 = vpop.permute.xlu1 %4053  ;;  %v5526_v14 = vpack.c.bf16 %v866_v60, %v860_v57 }
 0x191   : > { %v4055_v1 = vunpack.i.l.bf16 %v4054_v61  ;;  %v4056_v39 = vunpack.i.h.bf16 %v4054_v61 }
 0x192   : > { %1022 = vmatprep.subr.bf16.mxu0 %v5526_v14 }
 0x193   : > { %v865_v3 = vsel %vm7094_vm9, %v4055_v1, %v4046_v41 }
 0x194   : > { %v5532_v4 = vpack.c.bf16 %v865_v3, %v859_v59 }
 0x196   : > { %1023 = vmatpush1.bf16.msra.mxu0 %v5532_v4 }
 0x198   : > { %v4059_v6 = vpop.permute.xlu0 %4058  ;;  %v4064_v30 = vpop.permute.xlu1 %4063 }
 0x199   : > { %v4061_v46 = vunpack.i.h.bf16 %v4059_v6  ;;  %v4060_v50 = vunpack.i.l.bf16 %v4059_v6  ;;  %v4065_v7 = vunpack.i.l.bf16 %v4064_v30  ;;  %v4066_v9 = vunpack.i.h.bf16 %v4064_v30 }
 0x19b   : > { %v848_v8 = vsel %vm7094_vm9, %v4056_v39, %v4060_v50  ;;  %v854_v12 = vsel %vm7094_vm9, %v4061_v46, %v4065_v7  ;;  %v847_v23 = vsel %vm7094_vm9, %v4066_v9, %v4056_v39 }
 0x19c   : > { %v4069_v24 = vpop.permute.xlu0 %4068  ;;  %v4074_v13 = vpop.permute.xlu1 %4073  ;;  %v5544_v16 = vpack.c.bf16 %v854_v12, %v848_v8 }
 0x19d   : > { %v4071_v19 = vunpack.i.h.bf16 %v4069_v24  ;;  %v4070_v20 = vunpack.i.l.bf16 %v4069_v24  ;;  %v4075_v10 = vunpack.i.l.bf16 %v4074_v13  ;;  %v4076_v32 = vunpack.i.h.bf16 %v4074_v13 }
 0x19e   : > { %1024 = vmatprep.subr.bf16.mxu0 %v5544_v16 }
 0x19f   : > { %v853_v25 = vsel %vm7094_vm9, %v4070_v20, %v4061_v46  ;;  %v5550_v62 = vsel %vm7094_vm9, %v4071_v19, %v4075_v10  ;;  %v5553_v18 = vsel %vm7094_vm9, %v4040_v45, %v4071_v19  ;;  %v861_v43 = vsel %vm7094_vm9, %v4045_v37, %v4076_v32 }
 0x1a0   : > { %v5555_v11 = vpop.permute.xlu0 %4078  ;;  %v5557_v26 = vpack.c.bf16 %v853_v25, %v847_v23  ;;  %v985_v27 = vpack.c.bf16 %v5550_v62, %v5550_v62  ;;  %v984_v31 = vpack.c.bf16 %v5553_v18, %v5553_v18 }
 0x1a1   : > { %v4081_v42 = vunpack.i.h.bf16 %v5555_v11  ;;  %v4080_v0 = vunpack.i.l.bf16 %v5555_v11 }
 0x1a2   : > { %7164 = vst [vmem:[#allocation20_spill] sm:$0xff] %v5557_v26  ;;  %1025 = vmatpush1.bf16.msra.mxu0 %v5557_v26  ;;  %v999_v5 = vsel %vm705_vm1, %v984_v31, 0 }
 0x1a3   : > { %3810 = vmatprep.subr.msk.bf16.mxu0 %vm705_vm1, %v985_v27  ;;  %v867_v56 = vsel %vm7094_vm9, %v4050_v44, %v4081_v42  ;;  %v862_v36 = vsel %vm7094_vm9, %v4076_v32, %v4080_v0 }
 0x1a4   : > { %v5579_v48 = vpack.c.bf16 %v867_v56, %v861_v43 }
 0x1a5   : > { %v4084_v2 = vpop.permute.xlu1 %4083  ;;  %3809 = vmatmul.mubr.msk.bf16.vlgmr.msra.gmra.mxu0 %vm988_vm10, %v5561_v29 }
 0x1a6   : > { %v4085_v34 = vunpack.i.l.bf16 %v4084_v2  ;;  %v4086_v63 = vunpack.i.h.bf16 %v4084_v2  ;;  %1062 = vmatpush1.bf16.msra.mxu0 %v999_v5  ;;  %1083 = vmatprep.mubr.bf16.mxu0 %v7075_v21  ;;  %7166 = vst [vmem:[#allocation22_spill] sm:$0xff] %v5579_v48  ;;  %v1158_v2 = vlaneseq }
 0x1a8   : > { %v868_v38 = vsel %vm7094_vm9, %v4081_v42, %v4085_v34  ;;  %v4089_v40 = vpop.permute.xlu0 %4088  ;;  %v849_v52 = vsel %vm7094_vm9, %v4060_v50, %v4086_v63  ;;  %v1159_v5 = vshrl.u32 %v1158_v2, 7 }
 0x1a9   : > { %v4091_v28 = vunpack.i.h.bf16 %v4089_v40  ;;  %v4090_v33 = vunpack.i.l.bf16 %v4089_v40  ;;  %v4094_v17 = vpop.permute.xlu1 %4093  ;;  %v5577_v47 = vpack.c.bf16 %v868_v38, %v862_v36 }
 0x1aa   : > { %v4096_v35 = vunpack.i.h.bf16 %v4094_v17  ;;  %v4095_v45 = vunpack.i.l.bf16 %v4094_v17  ;;  %v1160_v56 = vsub.s32 0, %v1159_v5 }
 0x1ab   : > { %7165 = vst [vmem:[#allocation21_spill] sm:$0xff] %v5577_v47  ;;  %v850_v53 = vsel %vm7094_vm9, %v4086_v63, %v4090_v33  ;;  %v855_v54 = vsel %vm7094_vm9, %v4065_v7, %v4091_v28  ;;  %1063 = vmatprep.subr.bf16.mxu0 %v5577_v47  ;;  %v1164_v63 = vsub.s32 1, %v1159_v5 }
 0x1ac   : > { %v856_v55 = vsel %vm7094_vm9, %v4091_v28, %v4095_v45  ;;  %1064 = vmatpush1.bf16.msra.mxu0 %v5579_v48  ;;  %v4099_v15 = vpop.permute.xlu0 %4098  ;;  %v5587_v41 = vpack.c.bf16 %v855_v54, %v849_v52  ;;  %v5590_v37 = vsel %vm7094_vm9, %v4075_v10, %v4096_v35 }
 0x1ad   : > { %v4100_v44 = vunpack.i.l.bf16 %v4099_v15  ;;  %v5592_v57 = vpack.c.bf16 %v856_v55, %v850_v53  ;;  %v986_v60 = vpack.c.bf16 %v5590_v37, %v5590_v37  ;;  %v4101_v6 = vunpack.i.h.bf16 %v4099_v15 }
 0x1ae   : > { %7167 = vst [vmem:[#allocation23_spill] sm:$0xff] %v5587_v41 }
 0x1af   : > { %7168 = vst [vmem:[#allocation24_spill] sm:$0xff] %v5592_v57  ;;  %v5595_v58 = vsel %vm7094_vm9, %v4096_v35, %v4100_v44  ;;  %1065 = vmatprep.subr.bf16.mxu0 %v5592_v57  ;;  %v1005_v46 = vsel %vm705_vm1, %v986_v60, 0  ;;  %v863_v12 = vsel %vm7094_vm9, %v4080_v0, %v4101_v6  ;;  %v5631_v0 = vld [vmem:[#allocation2 + $0x1c] sm:$0xf]  ;;  %v1168_v44 = vsub.s32 2, %v1159_v5 }
 0x1b0   : > { %1066 = vmatpush1.bf16.msra.mxu0 %v5587_v41  ;;  %v4104_v61 = vpop.permute.xlu1 %4103  ;;  %v987_v1 = vpack.c.bf16 %v5595_v58, %v5595_v58  ;;  %v5635_v32 = vcombine.low %v5631_v0, %v5631_v0  ;;  %1395 = vrot.lane.b32.xlu1 %v5631_v0, %s4980_s20  ;;  %v1172_v60 = vsub.s32 3, %v1159_v5 }
 0x1b1   : > { %v4106_v59 = vunpack.i.h.bf16 %v4104_v61  ;;  %v4105_v3 = vunpack.i.l.bf16 %v4104_v61 }
 0x1b2   : > { %v4109_v30 = vpop.permute.xlu0 %4108  ;;  %3812 = vmatprep.subr.msk.bf16.mxu0 %vm705_vm1, %v987_v1  ;;  %1422 = vrot.lane.b32.xlu0 %v5635_v32, %s4981_s25 }
 0x1b3   : > { %v4110_v39 = vunpack.i.l.bf16 %v4109_v30  ;;  %3811 = vmatmul.mubr.msk.bf16.vlgmr.msra.gmra.mxu0 %vm988_vm10, %v5561_v29  ;;  %v869_v50 = vsel %vm7094_vm9, %v4085_v34, %v4106_v59  ;;  %v864_v7 = vsel %vm7094_vm9, %v4101_v6, %v4105_v3  ;;  %v4111_v8 = vunpack.i.h.bf16 %v4109_v30  ;;  %v441_v34 = vld [vmem:[#allocation7] sm:$0x3f] }
 0x1b4   : > { %1103 = vmatpush1.bf16.msra.mxu0 %v1005_v46  ;;  %1124 = vmatprep.mubr.bf16.mxu0 %v7075_v21  ;;  %v5614_v22 = vpack.c.bf16 %v869_v50, %v863_v12  ;;  %vm1156_vm11 = vcmp.gt.f32.partialorder %v441_v34, 0.0 }
 0x1b5   : > { %v870_v9 = vsel %vm7094_vm9, %v4106_v59, %v4110_v39  ;;  %v851_v23 = vsel %vm7094_vm9, %v4090_v33, %v4111_v8 }
 0x1b6   : > { %v4114_v24 = vpop.permute.xlu1 %4113  ;;  %v803_v13 = vpop.permute.xlu0 %802  ;;  %v5612_v19 = vpack.c.bf16 %v870_v9, %v864_v7  ;;  %7170 = vst [vmem:[#allocation26_spill] sm:$0xff] %v5614_v22 }
 0x1b7   : > { %v4116_v20 = vunpack.i.h.bf16 %v4114_v24  ;;  %v4115_v10 = vunpack.i.l.bf16 %v4114_v24 }
 0x1b8   : > { %7169 = vst [vmem:[#allocation25_spill] sm:$0xff] %v5612_v19  ;;  %1104 = vmatprep.subr.bf16.mxu0 %v5612_v19 }
 0x1b9   : > { %v857_v25 = vsel %vm7094_vm9, %v4095_v45, %v4116_v20  ;;  %v852_v11 = vsel %vm7094_vm9, %v4111_v8, %v4115_v10  ;;  %v858_v27 = vsel %vm7094_vm9, %v4116_v20, %v803_v13  ;;  %1105 = vmatpush1.bf16.msra.mxu0 %v5614_v22 }
 0x1ba   : > { %v5622_v31 = vpack.c.bf16 %v858_v27, %v852_v11  ;;  %v5624_v42 = vpack.c.bf16 %v857_v25, %v851_v23  ;;  %v1176_v23 = vsub.s32 4, %v1159_v5  ;;  %v1180_v25 = vsub.s32 5, %v1159_v5 }
 0x1bc   : > { %7171 = vst [vmem:[#allocation27_spill] sm:$0xff] %v5622_v31  ;;  %7172 = vst [vmem:[#allocation28_spill] sm:$0xff] %v5624_v42  ;;  %1106 = vmatprep.subr.bf16.mxu0 %v5622_v31 }
 0x1bd   : > { %1107 = vmatpush1.bf16.msra.mxu0 %v5624_v42 }
 0x1c0   : > { %3813 = vmatmul.mubr.msk.bf16.vlgmr.msra.gmra.mxu0 %vm988_vm10, %v5561_v29  ;;  %v1157_v29 = vsel %vm1156_vm11, 1, %v7075_v21 }
 0x1c1   : > { %1865 = vmatprep.mubr.bf16.mxu0 %v7075_v21  ;;  %v5642_v38 = vrot.slane %v1157_v29, %v1160_v56  ;;  %v5644_v40 = vrot.slane %v1157_v29, %v1164_v63  ;;  %v5652_v1 = vrot.slane %v1157_v29, %v1168_v44  ;;  %v5654_v6 = vrot.slane %v1157_v29, %v1172_v60 }
 0x1c2   : > { %v5665_v11 = vrot.slane %v1157_v29, %v1176_v23  ;;  %v5667_v27 = vrot.slane %v1157_v29, %v1180_v25 }
 0x1c3   : > { %v1142_v36 = vpop.permute.xlu1 %1141  ;;  %7173 = vst [vmem:[#allocation29_spill] sm:$0xff] %v5642_v38  ;;  %7174 = vst [vmem:[#allocation30_spill] sm:$0xff] %v5644_v40  ;;  %vm7096_vm13 = vcmp.eq.s32.totalorder %v5642_v38, 1  ;;  %vm7095_vm15 = vcmp.eq.s32.totalorder %v5644_v40, 1  ;;  %vm7074_vm11 = vcmp.eq.s32.totalorder %v5652_v1, 1 }
 0x1c4   : > { %7175 = vst [vmem:[#allocation31_spill] sm:$0xff] %v5652_v1  ;;  %7176 = vst [vmem:[#allocation32_spill] sm:$0xff] %v5654_v6 }
 0x1c5   : > { %7177 = vst [vmem:[#allocation33_spill] sm:$0xff] %v5665_v11  ;;  %7178 = vst [vmem:[#allocation34_spill] sm:$0xff] %v5667_v27 }
 0x265   : > { %v1044_v43 = vpop.f32.mrf.mxu0 }
 0x266   : > { %vm1133_vm12 = vcmp.gt.f32.partialorder %v1044_v43, 0.0  ;;  %v1144_v28 = vmul.f32 %v1142_v36, %v1044_v43 }
 0x267   : > { %v1046_v33 = vpop.f32.mrf.mxu0 }
 0x268   : > { %v1150_v17 = vsel %vm1133_vm12, %v1044_v43, %v1144_v28  ;;  %vm1134_vm14 = vcmp.gt.f32.partialorder %v1046_v33, 0.0  ;;  %v1145_v35 = vmul.f32 %v1142_v36, %v1046_v33 }
 0x269   : > { %v1048_v45 = vpop.f32.mrf.mxu0  ;;  %v1188_v53 = vsel %vm7096_vm13, %v1150_v17, 0.0 }
 0x26a   : > { %v1151_v52 = vsel %vm1134_vm14, %v1046_v33, %v1145_v35  ;;  %v4772_v3 = vcombine.low %v1188_v53, %v1188_v53  ;;  %vm7073_vm14 = vcmp.eq.s32.totalorder %v5654_v6, 1 }
 0x26b   : > { %v1189_v54 = vsel %vm7095_vm15, %v1151_v52, 0.0  ;;  %v1049_v55 = vpop.f32.mrf.mxu0 }
 0x26c   : > { %v1200_v15 = vcombine.low %v1188_v53, %v1189_v54  ;;  %v4771_v61 = vcombine.low %v1189_v54, %v1189_v54 }
 0x26e   : > { %1206 = vst [vmem:[#allocation2 + $0x4] sm:$0xff] %v1200_v15  ;;  %v4118_v59 = vpack.i.bf16 %v4771_v61, %v1200_v15  ;;  %v4123_v50 = vpack.i.bf16 %v1200_v15, %v4772_v3 }
 0x270   : > { %4119 = vrot.lane.b32.xlu0 %v4118_v59, %s4980_s20 }
 0x273   : > { %v1085_v30 = vpop.f32.mrf.mxu0 }
 0x274   : > { %vm1135_vm10 = vcmp.gt.f32.partialorder %v1085_v30, 0.0  ;;  %v1146_v39 = vmul.f32 %v1142_v36, %v1085_v30  ;;  %4124 = vrot.lane.b32.xlu0 %v4123_v50, %s4981_s25 }
 0x275   : > { %v1087_v46 = vpop.f32.mrf.mxu0  ;;  %v5669_v2 = vld [vmem:[#allocation2] sm:$0xff] }
 0x276   : > { %v1152_v7 = vsel %vm1135_vm10, %v1085_v30, %v1146_v39  ;;  %vm1136_vm12 = vcmp.gt.f32.partialorder %v1087_v46, 0.0  ;;  %v1147_v8 = vmul.f32 %v1142_v36, %v1087_v46  ;;  %v1230_v5 = vcombine.low %v5669_v2, %v5669_v2 }
 0x277   : > { %v1089_v9 = vpop.f32.mrf.mxu0  ;;  %v1190_v24 = vsel %vm7074_vm11, %v1152_v7, 0.0  ;;  %v5677_v43 = vcombine.high %v5669_v2, %v5669_v2  ;;  %vm1187_vm11 = vcmp.eq.s32.totalorder %v5667_v27, 1 }
 0x278   : > { %v1153_v12 = vsel %vm1136_vm12, %v1087_v46, %v1147_v8  ;;  %4129 = vrot.lane.b32.xlu0 %v4118_v59, %s4977_s19  ;;  %vm1186_vm12 = vcmp.eq.s32.totalorder %v5665_v11, 1 }
 0x279   : > { %v1191_v13 = vsel %vm7073_vm14, %v1153_v12, 0.0  ;;  %v1090_v20 = vpop.f32.mrf.mxu0 }
 0x27a   : > { %v1201_v10 = vcombine.low %v1190_v24, %v1191_v13  ;;  %v4773_v44 = vcombine.low %v1191_v13, %v1191_v13 }
 0x27c   : > { %1207 = vst [vmem:[#allocation2 + $0xc] sm:$0xff] %v1201_v10  ;;  %4134 = vrot.lane.b32.xlu0 %v4118_v59, %s4978_s13  ;;  %v4158_v61 = vpack.i.bf16 %v4773_v44, %v1201_v10  ;;  %v4774_v59 = vcombine.low %v1190_v24, %v1190_v24 }
 0x27e   : > { %v4163_v3 = vpack.i.bf16 %v1201_v10, %v4774_v59 }
 0x280   : > { %v1126_v34 = vpop.f32.mrf.mxu0  ;;  %4139 = vrot.lane.b32.xlu0 %v4123_v50, %s4979_s17 }
 0x281   : > { %vm1137_vm10 = vcmp.gt.f32.partialorder %v1126_v34, 0.0  ;;  %v1148_v56 = vmul.f32 %v1142_v36, %v1126_v34 }
 0x282   : > { %v1128_v63 = vpop.f32.mrf.mxu0 }
 0x283   : > { %v1154_v28 = vsel %vm1137_vm10, %v1126_v34, %v1148_v56  ;;  %vm1138_vm14 = vcmp.gt.f32.partialorder %v1128_v63, 0.0  ;;  %v1149_v29 = vmul.f32 %v1142_v36, %v1128_v63  ;;  %v5680_v33 = vld [vmem:[#allocation2 + $0x8] sm:$0xff] }
 0x284   : > { %v4148_v17 = vpack.i.bf16 %v1230_v5, %v5680_v33  ;;  %v4143_v35 = vpack.i.bf16 %v5680_v33, %v5677_v43  ;;  %v1130_v45 = vpop.f32.mrf.mxu0  ;;  %v1231_v53 = vcombine.low %v5680_v33, %v5680_v33  ;;  %v1192_v54 = vsel %vm1186_vm12, %v1154_v28, 0.0 }
 0x285   : > { %v1155_v52 = vsel %vm1138_vm14, %v1128_v63, %v1149_v29  ;;  %v5706_v46 = vcombine.high %v5680_v33, %v5680_v33  ;;  %v4776_v24 = vcombine.low %v1192_v54, %v1192_v54  ;;  %v5747_v45 = vpop.permute.xlu1 %1395  ;;  %vm1788_vm14 = vcmask 654336  }
 0x286   : > { %v1193_v36 = vsel %vm1187_vm11, %v1155_v52, 0.0  ;;  %4149 = vrot.lane.b32.xlu1 %v4148_v17, %s4984_s23  ;;  %v1131_v55 = vpop.f32.mrf.mxu0  ;;  %4144 = vrot.lane.b32.xlu0 %v4143_v35, %s4983_s10  ;;  %v4178_v60 = vpack.i.bf16 %v1231_v53, %v5669_v2 }
 0x287   : > { %v1202_v15 = vcombine.low %v1192_v54, %v1193_v36  ;;  %v4775_v39 = vcombine.low %v1193_v36, %v1193_v36  ;;  %v4173_v8 = vpack.i.bf16 %v5669_v2, %v5706_v46 }
 0x289   : > { %1208 = vst [vmem:[#allocation2 + $0x14] sm:$0xff] %v1202_v15  ;;  %v4198_v50 = vpack.i.bf16 %v4775_v39, %v1202_v15  ;;  %v4203_v13 = vpack.i.bf16 %v1202_v15, %v4776_v24 }
 0x28a   : > { %4154 = vrot.lane.b32.xlu1 %v4148_v17, %s4982_s21  ;;  %4179 = vrot.lane.b32.xlu0 %v4178_v60, %s4984_s23 }
 0x28e   : > { %4159 = vrot.lane.b32.xlu1 %v4158_v61, %s4980_s20  ;;  %4194 = vrot.lane.b32.xlu0 %v4178_v60, %s4982_s21 }
 0x290   : > { %v5699_v30 = vld [vmem:[#allocation2 + $0x18] sm:$0xf]  ;;  %v5709_v7 = vld [vmem:[#allocation2 + $0x10] sm:$0xff] }
 0x291   : > { %v5716_v9 = vcombine.high %v5709_v7, %v5709_v7  ;;  %v1232_v20 = vcombine.low %v5709_v7, %v5709_v7  ;;  %v1233_v10 = vcombine.low %v5699_v30, %v5699_v30 }
 0x292   : > { %4164 = vrot.lane.b32.xlu1 %v4163_v3, %s4981_s25  ;;  %1273 = vrot.lane.b32.xlu0 %v5699_v30, %s4983_s10 }
 0x293   : > { %v4213_v12 = vpack.i.bf16 %v5716_v9, %v5709_v7  ;;  %v4218_v23 = vpack.i.bf16 %v5709_v7, %v1232_v20 }
 0x296   : > { %4169 = vrot.lane.b32.xlu1 %v4158_v61, %s4977_s19  ;;  %4199 = vrot.lane.b32.xlu0 %v4198_v50, %s4980_s20 }
 0x29a   : > { %4174 = vrot.lane.b32.xlu1 %v4173_v8, %s4983_s10  ;;  %4209 = vrot.lane.b32.xlu0 %v4198_v50, %s4977_s19 }
 0x29e   : > { %4184 = vrot.lane.b32.xlu1 %v4158_v61, %s4978_s13  ;;  %4214 = vrot.lane.b32.xlu0 %v4213_v12, %s4983_s10 }
 0x2a2   : > { %4189 = vrot.lane.b32.xlu1 %v4163_v3, %s4979_s17  ;;  %4224 = vrot.lane.b32.xlu0 %v4198_v50, %s4978_s13 }
 0x2a6   : > { %1449 = vrot.lane.b32.xlu1 %v5631_v0, %s4977_s19  ;;  %1365 = vrot.lane.b32.xlu0 %v5635_v32, %s4979_s17  ;;  %v5741_v0 = vpop.permute.xlu0 %1422 }
 0x2aa   : > { %4204 = vrot.lane.b32.xlu1 %v4203_v13, %s4981_s25  ;;  %1246 = vrot.lane.b32.xlu0 %v1233_v10, %s4982_s21 }
 0x2ae   : > { %4219 = vrot.lane.b32.xlu1 %v4218_v23, %s4984_s23 }
 0x2b2   : > { %4229 = vrot.lane.b32.xlu1 %v4203_v13, %s4979_s17 }
 0x2b6   : > { %1300 = vrot.lane.b32.xlu1 %v1233_v10, %s4984_s23 }
 0x2ba   : > { %4234 = vrot.lane.b32.xlu1 %v4218_v23, %s4982_s21 }
 0x2e2   : > { %v4120_v32 = vpop.permute.xlu0 %4119 }
 0x2e3   : > { %v4121_v63 = vunpack.i.l.bf16 %v4120_v32  ;;  %v4122_v61 = vunpack.i.h.bf16 %v4120_v32 }
 0x2e5   : > { %v1397_v8 = vsel %vm635_vm4, %v4121_v63, %v4122_v61 }
 0x2e6   : > { %v4125_v25 = vpop.permute.xlu0 %4124 }
 0x2e7   : > { %v4126_v34 = vunpack.i.l.bf16 %v4125_v25  ;;  %v4127_v44 = vunpack.i.h.bf16 %v4125_v25 }
 0x2e9   : > { %v1485_v28 = vsel %vm705_vm1, %v4121_v63, %v4126_v34  ;;  %v1424_v50 = vsel %vm663_vm5, %v4126_v34, %v4127_v44 }
 0x2ea   : > { %v4130_v56 = vpop.permute.xlu0 %4129  ;;  %v1486_v20 = vsel %vm705_vm1, %v1397_v8, %v1424_v50 }
 0x2eb   : > { %v4131_v5 = vunpack.i.l.bf16 %v4130_v56  ;;  %v4132_v25 = vunpack.i.h.bf16 %v4130_v56 }
 0x2ed   : > { %v1492_v29 = vsel %vm705_vm1, %v4131_v5, 1.0 }
 0x2ee   : > { %v5745_v17 = vpop.permute.xlu0 %4134  ;;  %v4238_v35 = vpack.i.bf16 %v1492_v29, %v1485_v28 }
 0x2ef   : > { %v4137_v50 = vunpack.i.h.bf16 %v5745_v17 }
 0x2f0   : > { %4239 = vrot.lane.b32.xlu1 %v4238_v35, %s4985_s16  ;;  %v4136_v35 = vunpack.i.l.bf16 %v5745_v17 }
 0x2f2   : > { %v5750_v52 = vpop.permute.xlu0 %4139 }
 0x2f3   : > { %v4142_v34 = vunpack.i.h.bf16 %v5750_v52  ;;  %v4141_v63 = vunpack.i.l.bf16 %v5750_v52 }
 0x2f5   : > { %v1478_v52 = vsel %vm705_vm1, %v4136_v35, %v4141_v63 }
 0x2f8   : > { %v5752_v53 = vpop.permute.xlu1 %4149  ;;  %v5754_v54 = vpop.permute.xlu0 %4144 }
 0x2f9   : > { %v4146_v8 = vunpack.i.l.bf16 %v5754_v54 }
 0x2fc   : > { %v5756_v36 = vpop.permute.xlu1 %4154  ;;  %v4180_v55 = vpop.permute.xlu0 %4179 }
 0x2fd   : > { %v4181_v28 = vunpack.i.l.bf16 %v4180_v55 }
 0x300   : > { %v5758_v15 = vpop.permute.xlu1 %4159  ;;  %v5760_v60 = vpop.permute.xlu0 %4194 }
 0x301   : > { %v7078_v59 = vunpack.i.l.bf16 %v5758_v15  ;;  %v4196_v27 = vunpack.i.l.bf16 %v5760_v60  ;;  %v4162_v6 = vunpack.i.h.bf16 %v5758_v15 }
 0x303   : > { %v1398_v12 = vsel %vm635_vm4, %v4122_v61, %v7078_v59  ;;  %v4152_v61 = vunpack.i.h.bf16 %v5752_v53  ;;  %v4197_v59 = vunpack.i.h.bf16 %v5760_v60  ;;  %v7093_v60 = vunpack.i.l.bf16 %v5756_v36 }
 0x304   : > { %v5763_v3 = vpop.permute.xlu1 %4164  ;;  %v5778_v23 = vpop.permute.xlu0 %1273 }
 0x305   : > { %v7077_v39 = vunpack.i.l.bf16 %v5763_v3  ;;  %v1249_v1 = vsel %vm481_vm6, %v4196_v27, %v4197_v59 }
 0x307   : > { %v1425_v24 = vsel %vm663_vm5, %v4127_v44, %v7077_v39  ;;  %v1302_v39 = vsel %vm7128_vm8, %v4152_v61, %v4181_v28  ;;  %v1333_v61 = vsel %vm569_vm2, %v4136_v35, %v4137_v50 }
 0x308   : > { %v5774_v13 = vpop.permute.xlu1 %4169  ;;  %v1487_v10 = vsel %vm705_vm1, %v1398_v12, %v1425_v24  ;;  %v4182_v12 = vunpack.i.h.bf16 %v4180_v55  ;;  %v5791_v24 = vpop.permute.xlu0 %4199  ;;  %v4147_v55 = vunpack.i.h.bf16 %v5754_v54 }
 0x309   : > { %v4253_v32 = vpack.i.bf16 %v1487_v10, %v1486_v20  ;;  %v7085_v29 = vunpack.i.l.bf16 %v5774_v13  ;;  %v1451_v20 = vsel %vm691_vm0, %v4131_v5, %v4132_v25  ;;  %v1367_v10 = vsel %vm604_vm3, %v4141_v63, %v4142_v34 }
 0x30a   : > { %v7092_v63 = vunpack.i.l.bf16 %v5752_v53  ;;  %v4172_v40 = vunpack.i.h.bf16 %v5774_v13 }
 0x30b   : > { %4254 = vrot.lane.b32.xlu1 %v4253_v32, %s4985_s16  ;;  %v1452_v17 = vsel %vm691_vm0, %v4132_v25, %v7085_v29  ;;  %v4167_v25 = vunpack.i.h.bf16 %v5763_v3  ;;  %v1303_v29 = vsel %vm7128_vm8, %v4181_v28, %v4182_v12 }
 0x30c   : > { %v5785_v44 = vpop.permute.xlu1 %4174  ;;  %v1494_v54 = vsel %vm705_vm1, %v1452_v17, 1.0  ;;  %v1276_v17 = vsel %vm7097_vm7, %v4146_v8, %v4147_v55  ;;  %v1304_v28 = vsel %vm7128_vm8, %v4182_v12, %v7092_v63  ;;  %v7181_v12 = vunpack.i.l.bf16 %v5763_v3 }
 0x30d   : > { %v4177_v56 = vunpack.i.h.bf16 %v5785_v44 }
 0x30e   : > { %v1426_v63 = vsel %vm663_vm5, %v7181_v12, %v4167_v25 }
 0x30f   : > { %v1275_v21 = vsel %vm7097_vm7, %v4177_v56, %v4146_v8  ;;  %v1493_v56 = vsel %vm705_vm1, %v1451_v20, 1.0  ;;  %v7180_v8 = vunpack.i.l.bf16 %v5758_v15 }
 0x310   : > { %v5805_v11 = vpop.permute.xlu1 %4184  ;;  %v1471_v5 = vsel %vm705_vm1, %v1275_v21, %v1302_v39  ;;  %v1479_v21 = vsel %vm705_vm1, %v1333_v61, %v1367_v10  ;;  %v7179_v39 = vunpack.i.l.bf16 %v5785_v44  ;;  %v4248_v10 = vpack.i.bf16 %v1494_v54, %v1493_v56 }
 0x311   : > { %v4243_v32 = vpack.i.bf16 %v1478_v52, %v1471_v5  ;;  %v4157_v52 = vunpack.i.h.bf16 %v5756_v36  ;;  %v4210_v5 = vpop.permute.xlu0 %4209  ;;  %v1472_v61 = vsel %vm705_vm1, %v1276_v17, %v1303_v29  ;;  %v7182_v29 = vunpack.i.l.bf16 %v5805_v11 }
 0x312   : > { %v1277_v35 = vsel %vm7097_vm7, %v4147_v55, %v7179_v39  ;;  %v1250_v39 = vsel %vm481_vm6, %v4197_v59, %v7093_v60  ;;  %v1399_v55 = vsel %vm635_vm4, %v7180_v8, %v4162_v6  ;;  %v1465_v54 = vsel %vm705_vm1, %v5677_v43, %v1249_v1 }
 0x313   : > { %4244 = vrot.lane.b32.xlu0 %v4243_v32, %s4985_s16  ;;  %v1473_v38 = vsel %vm705_vm1, %v1277_v35, %v1304_v28  ;;  %v1334_v56 = vsel %vm569_vm2, %v4137_v50, %v7182_v29  ;;  %v1248_v15 = vsel %vm481_vm6, %v4157_v52, %v4196_v27  ;;  %v4201_v35 = vunpack.i.l.bf16 %v5791_v24 }
 0x314   : > { %v5823_v20 = vpop.permute.xlu1 %4189  ;;  %v4211_v3 = vunpack.i.l.bf16 %v4210_v5  ;;  %v4202_v50 = vunpack.i.h.bf16 %v5791_v24  ;;  %v4258_v12 = vpack.i.bf16 %v1473_v38, %v1472_v61  ;;  %v4212_v29 = vunpack.i.h.bf16 %v4210_v5 }
 0x315   : > { %v4191_v32 = vunpack.i.l.bf16 %v5823_v20  ;;  %v5859_v60 = vpop.permute.xlu0 %4214  ;;  %v7183_v1 = vunpack.i.l.bf16 %v5774_v13  ;;  %v1464_v43 = vsel %vm705_vm1, %v5669_v2, %v1248_v15  ;;  %v1400_v38 = vsel %vm635_vm4, %v4162_v6, %v4201_v35 }
 0x316   : > { %v1401_v61 = vsel %vm635_vm4, %v4201_v35, %v4202_v50  ;;  %v1402_v2 = vsel %vm635_vm4, %v4202_v50, %v5747_v45 }
 0x317   : > { %4249 = vrot.lane.b32.xlu0 %v4248_v10, %s4985_s16  ;;  %v1368_v59 = vsel %vm604_vm3, %v4142_v34, %v4191_v32  ;;  %v1466_v10 = vsel %vm705_vm1, %v5680_v33, %v1250_v39  ;;  %v1488_v34 = vsel %vm705_vm1, %v1399_v55, %v1426_v63  ;;  %v1453_v27 = vsel %vm691_vm0, %v7183_v1, %v4172_v40 }
 0x318   : > { %v1450_v17 = vpop.permute.xlu1 %1449  ;;  %v1480_v28 = vsel %vm705_vm1, %v1334_v56, %v1368_v59  ;;  %v4268_v24 = vpack.i.bf16 %v1466_v10, %v1465_v54  ;;  %v1454_v63 = vsel %vm691_vm0, %v4172_v40, %v4211_v3  ;;  %v1495_v13 = vsel %vm705_vm1, %v1453_v27, 1.0 }
 0x319   : > { %v4263_v8 = vpack.i.bf16 %v1480_v28, %v1479_v21  ;;  %v4273_v21 = vpack.i.bf16 %v1488_v34, %v1464_v43  ;;  %v4217_v39 = vunpack.i.h.bf16 %v5859_v60  ;;  %v4216_v55 = vunpack.i.l.bf16 %v5859_v60  ;;  %v5886_v45 = vpop.permute.xlu0 %4224 }
 0x31a   : > { %v1455_v56 = vsel %vm691_vm0, %v4211_v3, %v4212_v29  ;;  %v1496_v59 = vsel %vm705_vm1, %v1454_v63, 1.0  ;;  %v4192_v60 = vunpack.i.h.bf16 %v5823_v20  ;;  %v1456_v15 = vsel %vm691_vm0, %v4212_v29, %v1450_v17 }
 0x31b   : > { %4264 = vrot.lane.b32.xlu1 %v4263_v8, %s4985_s16  ;;  %4259 = vrot.lane.b32.xlu0 %v4258_v12, %s4985_s16  ;;  %v4187_v12 = vunpack.i.h.bf16 %v5805_v11  ;;  %v7184_v1 = vunpack.i.l.bf16 %v5785_v44  ;;  %v4227_v29 = vunpack.i.h.bf16 %v5886_v45  ;;  %v7185_v27 = vunpack.i.l.bf16 %v5752_v53 }
 0x31c   : > { %v4205_v33 = vpop.permute.xlu1 %4204  ;;  %v4226_v44 = vunpack.i.l.bf16 %v5886_v45 }
 0x31d   : > { %v4207_v52 = vunpack.i.h.bf16 %v4205_v33  ;;  %v4206_v5 = vunpack.i.l.bf16 %v4205_v33  ;;  %v1278_v17 = vsel %vm7097_vm7, %v7184_v1, %v4216_v55  ;;  %v1279_v33 = vsel %vm7097_vm7, %v4216_v55, %v4217_v39 }
 0x31e   : > { %v7186_v55 = vunpack.i.l.bf16 %v5805_v11  ;;  %v1337_v11 = vsel %vm569_vm2, %v4226_v44, %v4227_v29 }
 0x31f   : > { %4269 = vrot.lane.b32.xlu1 %v4268_v24, %s4985_s16  ;;  %4274 = vrot.lane.b32.xlu0 %v4273_v21, %s4985_s16  ;;  %v1427_v40 = vsel %vm663_vm5, %v4167_v25, %v4206_v5  ;;  %v1428_v6 = vsel %vm663_vm5, %v4206_v5, %v4207_v52  ;;  %v1429_v54 = vsel %vm663_vm5, %v4207_v52, %v5741_v0  ;;  %v1497_v0 = vsel %vm705_vm1, %v1455_v56, 1.0 }
 0x320   : > { %v4220_v35 = vpop.permute.xlu1 %4219  ;;  %v1489_v3 = vsel %vm705_vm1, %v1400_v38, %v1427_v40  ;;  %v1490_v28 = vsel %vm705_vm1, %v1401_v61, %v1428_v6  ;;  %v1491_v34 = vsel %vm705_vm1, %v1402_v2, %v1429_v54  ;;  %v1498_v21 = vsel %vm705_vm1, %v1456_v15, 1.0  ;;  %v1366_v6 = vpop.permute.xlu0 %1365 }
 0x321   : > { %v4222_v10 = vunpack.i.h.bf16 %v4220_v35  ;;  %v4221_v25 = vunpack.i.l.bf16 %v4220_v35  ;;  %v4278_v50 = vpack.i.bf16 %v1495_v13, %v1489_v3  ;;  %v4283_v8 = vpack.i.bf16 %v1490_v28, %v1496_v59 }
 0x322   : > { %v1369_v52 = vsel %vm604_vm3, %v4191_v32, %v4192_v60  ;;  %v4288_v53 = vpack.i.bf16 %v1497_v0, %v1491_v34  ;;  %v1335_v56 = vsel %vm569_vm2, %v7186_v55, %v4187_v12  ;;  %v1280_v54 = vsel %vm7097_vm7, %v4217_v39, %v5778_v23 }
 0x323   : > { %4279 = vrot.lane.b32.xlu1 %v4278_v50, %s4985_s16  ;;  %4284 = vrot.lane.b32.xlu0 %v4283_v8, %s4985_s16  ;;  %v1305_v43 = vsel %vm7128_vm8, %v7185_v27, %v4221_v25  ;;  %v1306_v24 = vsel %vm7128_vm8, %v4221_v25, %v4222_v10  ;;  %v1481_v59 = vsel %vm705_vm1, %v1335_v56, %v1369_v52 }
 0x324   : > { %v4230_v38 = vpop.permute.xlu1 %4229  ;;  %v1474_v63 = vsel %vm705_vm1, %v1278_v17, %v1305_v43  ;;  %v1475_v2 = vsel %vm705_vm1, %v1279_v33, %v1306_v24  ;;  %v1336_v35 = vsel %vm569_vm2, %v4187_v12, %v4226_v44  ;;  %v1247_v0 = vpop.permute.xlu0 %1246  ;;  %v7187_v17 = vunpack.i.l.bf16 %v5756_v36  ;;  %v3814_v36 = vld [vmem:[%s7060_s6 + $0x4] sm:$0xf] }
 0x325   : > { %v4232_v5 = vunpack.i.h.bf16 %v4230_v38  ;;  %v4231_v13 = vunpack.i.l.bf16 %v4230_v38  ;;  %v4293_v61 = vpack.i.bf16 %v1474_v63, %v1498_v21  ;;  %v4298_v45 = vpack.i.bf16 %v1481_v59, %v1475_v2 }
 0x327   : > { %4289 = vrot.lane.b32.xlu1 %v4288_v53, %s4985_s16  ;;  %4294 = vrot.lane.b32.xlu0 %v4293_v61, %s4985_s16  ;;  %v1370_v40 = vsel %vm604_vm3, %v4192_v60, %v4231_v13  ;;  %v1371_v20 = vsel %vm604_vm3, %v4231_v13, %v4232_v5  ;;  %v1372_v34 = vsel %vm604_vm3, %v4232_v5, %v1366_v6 }
 0x328   : > { %v1301_v32 = vpop.permute.xlu1 %1300  ;;  %v1482_v28 = vsel %vm705_vm1, %v1336_v35, %v1370_v40  ;;  %v1483_v25 = vsel %vm705_vm1, %v1337_v11, %v1371_v20  ;;  %v1484_v21 = vsel %vm705_vm1, %v4227_v29, %v1372_v34 }
 0x329   : > { %v1307_v15 = vsel %vm7128_vm8, %v4222_v10, %v1301_v32  ;;  %v1477_v3 = vsel %vm705_vm1, %v5778_v23, %v1301_v32 }
 0x32a   : > { %v1476_v60 = vsel %vm705_vm1, %v1280_v54, %v1307_v15  ;;  %v4308_v12 = vpack.i.bf16 %v1483_v25, %v1477_v3 }
 0x32b   : > { %4299 = vrot.lane.b32.xlu1 %v4298_v45, %s4985_s16  ;;  %v4303_v50 = vpack.i.bf16 %v1476_v60, %v1482_v28 }
 0x32c   : > { %v4235_v39 = vpop.permute.xlu1 %4234 }
 0x32d   : > { %v4237_v8 = vunpack.i.h.bf16 %v4235_v39  ;;  %v4236_v10 = vunpack.i.l.bf16 %v4235_v39  ;;  %4304 = vrot.lane.b32.xlu0 %v4303_v50, %s4985_s16 }
 0x32f   : > { %4309 = vrot.lane.b32.xlu1 %v4308_v12, %s4985_s16  ;;  %v1252_v23 = vsel %vm481_vm6, %v4236_v10, %v4237_v8  ;;  %v1253_v1 = vsel %vm481_vm6, %v4237_v8, %v1247_v0  ;;  %v1251_v27 = vsel %vm481_vm6, %v7187_v17, %v4236_v10 }
 0x330   : > { %v1468_v43 = vsel %vm705_vm1, %v5709_v7, %v1252_v23  ;;  %v1469_v33 = vsel %vm705_vm1, %v5716_v9, %v1253_v1  ;;  %v1467_v24 = vsel %vm705_vm1, %v5706_v46, %v1251_v27  ;;  %v1470_v7 = vsel %vm705_vm1, %v5699_v30, %v1247_v0 }
 0x331   : > { %v4318_v44 = vpack.i.bf16 %v1469_v33, %v1468_v43  ;;  %v4313_v38 = vpack.i.bf16 %v1467_v24, %v1484_v21 }
 0x333   : > { %4319 = vrot.lane.b32.xlu1 %v4318_v44, %s4985_s16  ;;  %4314 = vrot.lane.b32.xlu0 %v4313_v38, %s4985_s16 }
 0x337   : > { %1923 = vperm.xlu1 %4117, %v3814_v36   ;;  %1546 = vrot.lane.b32.xlu0 %v1470_v7, %s4985_s16 }
 0x362   : > { %v4240_v9 = vpop.permute.xlu1 %4239 }
 0x363   : > { %v4242_v13 = vunpack.i.h.bf16 %v4240_v9  ;;  %v4241_v53 = vunpack.i.l.bf16 %v4240_v9 }
 0x37d   : > { %v4255_v46 = vpop.permute.xlu1 %4254 }
 0x37e   : > { %v4257_v29 = vunpack.i.h.bf16 %v4255_v46  ;;  %v4256_v52 = vunpack.i.l.bf16 %v4255_v46 }
 0x380   : > { %v1623_v55 = vsel %vm7094_vm9, %v4256_v52, %v4257_v29  ;;  %v1622_v40 = vsel %vm7094_vm9, %v4241_v53, %v4256_v52 }
 0x385   : > { %v4245_v63 = vpop.permute.xlu0 %4244 }
 0x386   : > { %v4247_v20 = vunpack.i.h.bf16 %v4245_v63  ;;  %v4246_v6 = vunpack.i.l.bf16 %v4245_v63 }
 0x389   : > { %v4250_v5 = vpop.permute.xlu0 %4249 }
 0x38a   : > { %v4252_v61 = vunpack.i.h.bf16 %v4250_v5  ;;  %v4251_v2 = vunpack.i.l.bf16 %v4250_v5 }
 0x38c   : > { %v1629_v56 = vsel %vm7094_vm9, %v4251_v2, %v4252_v61  ;;  %v1628_v30 = vsel %vm7094_vm9, %v4242_v13, %v4251_v2 }
 0x38d   : > { %v5957_v32 = vpop.permute.xlu1 %4264  ;;  %v5959_v59 = vpop.permute.xlu0 %4259  ;;  %v5961_v54 = vpack.c.bf16 %v1629_v56, %v1623_v55  ;;  %v5963_v15 = vpack.c.bf16 %v1628_v30, %v1622_v40  ;;  %v1696_v55 = vld [vmem:[%s5227_s18] sm:$0xf]  ;;  %s4903_s18 = sshll.u32 %s4987_s9, 4  ;;  %s4904_s18 = int_to_ptr.vmem [resolvable:$false] %s4903_s18 }
 0x38e   : > { %v4267_v45 = vunpack.i.h.bf16 %v5957_v32  ;;  %v4266_v35 = vunpack.i.l.bf16 %v5957_v32  ;;  %v4262_v11 = vunpack.i.h.bf16 %v5959_v59  ;;  %v4261_v3 = vunpack.i.l.bf16 %v5959_v59  ;;  %s4905_s24 = scalar_lea.vmem %s4904_s18, 768 }
 0x38f   : > { %1798 = vmatprep.subr.bf16.mxu1 %v5961_v54 }
 0x390   : > { %1799 = vmatpush1.bf16.msra.mxu1 %v5963_v15  ;;  %v1611_v60 = vsel %vm7094_vm9, %v4261_v3, %v4262_v11  ;;  %v1617_v28 = vsel %vm7094_vm9, %v4266_v35, %v4267_v45  ;;  %v1610_v25 = vsel %vm7094_vm9, %v4246_v6, %v4261_v3  ;;  %v1616_v50 = vsel %vm7094_vm9, %v4247_v20, %v4266_v35 }
 0x391   : > { %v5979_v39 = vpop.permute.xlu1 %4269  ;;  %v4275_v8 = vpop.permute.xlu0 %4274  ;;  %v5981_v10 = vpack.c.bf16 %v1617_v28, %v1611_v60  ;;  %v5983_v12 = vpack.c.bf16 %v1616_v50, %v1610_v25  ;;  %v1697_v28 = vpack.c.bf16 %v1696_v55, %v1696_v55 }
 0x392   : > { %v4272_v34 = vunpack.i.h.bf16 %v5979_v39  ;;  %v4271_v0 = vunpack.i.l.bf16 %v5979_v39  ;;  %v4276_v23 = vunpack.i.l.bf16 %v4275_v8  ;;  %v4277_v1 = vunpack.i.h.bf16 %v4275_v8 }
 0x393   : > { %1800 = vmatprep.subr.bf16.mxu1 %v5981_v10 }
 0x394   : > { %1801 = vmatpush1.bf16.msra.mxu1 %v5983_v12  ;;  %v1605_v17 = vsel %vm7094_vm9, %v4271_v0, %v4272_v34  ;;  %v1604_v27 = vsel %vm7094_vm9, %v4276_v23, %v4271_v0  ;;  %v1624_v7 = vsel %vm7094_vm9, %v4257_v29, %v4277_v1 }
 0x395   : > { %v4280_v43 = vpop.permute.xlu1 %4279  ;;  %v4285_v33 = vpop.permute.xlu0 %4284  ;;  %v5994_v24 = vpack.c.bf16 %v1605_v17, %v5514_v51  ;;  %v5997_v21 = vpack.c.bf16 %v1604_v27, %v5509_v49 }
 0x396   : > { %v4282_v44 = vunpack.i.h.bf16 %v4280_v43  ;;  %v4281_v38 = vunpack.i.l.bf16 %v4280_v43  ;;  %v4286_v36 = vunpack.i.l.bf16 %v4285_v33  ;;  %v4287_v13 = vunpack.i.h.bf16 %v4285_v33 }
 0x397   : > { %1802 = vmatprep.subr.bf16.mxu1 %v5994_v24 }
 0x398   : > { %v1630_v9 = vsel %vm7094_vm9, %v4252_v61, %v4282_v44  ;;  %1803 = vmatpush1.bf16.msra.mxu1 %v5997_v21  ;;  %v1625_v46 = vsel %vm7094_vm9, %v4277_v1, %v4281_v38  ;;  %v1631_v51 = vsel %vm7094_vm9, %v4282_v44, %v4286_v36  ;;  %v1626_v50 = vsel %vm7094_vm9, %v4281_v38, %v4287_v13 }
 0x399   : > { %v4290_v63 = vpop.permute.xlu1 %4289  ;;  %v4295_v52 = vpop.permute.xlu0 %4294  ;;  %1804 = vmatprep.subr.bf16.mxu1 %v5526_v14  ;;  %v6006_v49 = vpack.c.bf16 %v1631_v51, %v1625_v46  ;;  %v6008_v5 = vpack.c.bf16 %v1630_v9, %v1624_v7  ;;  %v7192_v44 = vmov 0  }
 0x39a   : > { %v4292_v53 = vunpack.i.h.bf16 %v4290_v63  ;;  %v4291_v29 = vunpack.i.l.bf16 %v4290_v63  ;;  %v4296_v2 = vunpack.i.l.bf16 %v4295_v52  ;;  %v4297_v35 = vunpack.i.h.bf16 %v4295_v52 }
 0x39b   : > { %1839 = vmatprep.subr.bf16.mxu0 %v6006_v49 }
 0x39c   : > { %1805 = vmatpush1.bf16.msra.mxu1 %v5532_v4  ;;  %1840 = vmatpush1.bf16.msra.mxu0 %v6008_v5  ;;  %v1627_v61 = vsel %vm7094_vm9, %v4287_v13, %v4291_v29  ;;  %v1633_v40 = vsel %vm7094_vm9, %v4292_v53, %v4296_v2  ;;  %v1632_v6 = vsel %vm7094_vm9, %v4286_v36, %v4292_v53 }
 0x39d   : > { %v4300_v56 = vpop.permute.xlu1 %4299  ;;  %1806 = vmatprep.subr.bf16.mxu1 %v5544_v16  ;;  %v6018_v60 = vpack.c.bf16 %v1633_v40, %v1627_v61  ;;  %v6026_v23 = vpack.c.bf16 %v1632_v6, %v1626_v50  ;;  %v1612_v27 = vsel %vm7094_vm9, %v4262_v11, %v4297_v35 }
 0x39e   : > { %v4302_v30 = vunpack.i.h.bf16 %v4300_v56  ;;  %v4301_v20 = vunpack.i.l.bf16 %v4300_v56 }
 0x39f   : > { %v4305_v3 = vpop.permute.xlu0 %4304  ;;  %7188 = vst [vmem:[#allocation35_spill] sm:$0xff] %v6018_v60  ;;  %7189 = vst [vmem:[#allocation36_spill] sm:$0xff] %v6026_v23 }
 0x3a0   : > { %v4306_v25 = vunpack.i.l.bf16 %v4305_v3  ;;  %1807 = vmatpush1.bf16.msra.mxu1 %v5557_v26  ;;  %v1618_v8 = vsel %vm7094_vm9, %v4267_v45, %v4302_v30  ;;  %v1613_v1 = vsel %vm7094_vm9, %v4297_v35, %v4301_v20  ;;  %v4307_v38 = vunpack.i.h.bf16 %v4305_v3 }
 0x3a1   : > { %v4310_v0 = vpop.permute.xlu1 %4309  ;;  %1880 = vmatprep.subr.bf16.mxu1 %v6018_v60  ;;  %v6037_v45 = vpack.c.bf16 %v1618_v8, %v1612_v27 }
 0x3a2   : > { %v1619_v17 = vsel %vm7094_vm9, %v4302_v30, %v4306_v25  ;;  %v4312_v43 = vunpack.i.h.bf16 %v4310_v0  ;;  %v4311_v32 = vunpack.i.l.bf16 %v4310_v0  ;;  %v1614_v29 = vsel %vm7094_vm9, %v4301_v20, %v4307_v38 }
 0x3a3   : > { %3815 = vmatmul.mubr.msk.bf16.vlgmr.msra.gmra.mxu1 %vm1788_vm14, %v1697_v28  ;;  %v6034_v33 = vpack.c.bf16 %v1619_v17, %v1613_v1  ;;  %7191 = vst [vmem:[#allocation38_spill] sm:$0xff] %v6037_v45 }
 0x3a4   : > { %1881 = vmatpush1.bf16.msra.mxu1 %v6026_v23  ;;  %1906 = vmatprep.mubr.bf16.mxu1 %v7192_v44  ;;  %v1620_v46 = vsel %vm7094_vm9, %v4306_v25, %v4312_v43  ;;  %v1615_v13 = vsel %vm7094_vm9, %v4307_v38, %v4311_v32 }
 0x3a5   : > { %7190 = vst [vmem:[#allocation37_spill] sm:$0xff] %v6034_v33  ;;  %v4320_v36 = vpop.permute.xlu1 %4319  ;;  %v4315_v7 = vpop.permute.xlu0 %4314  ;;  %1841 = vmatprep.subr.bf16.mxu0 %v6034_v33 }
 0x3a6   : > { %v4321_v59 = vunpack.i.l.bf16 %v4320_v36  ;;  %v4317_v9 = vunpack.i.h.bf16 %v4315_v7  ;;  %v4316_v11 = vunpack.i.l.bf16 %v4315_v7  ;;  %1842 = vmatpush1.bf16.msra.mxu0 %v6037_v45  ;;  %v4322_v51 = vunpack.i.h.bf16 %v4320_v36 }
 0x3a8   : > { %v1606_v63 = vsel %vm7094_vm9, %v4272_v34, %v4317_v9  ;;  %v1607_v52 = vsel %vm7094_vm9, %v4317_v9, %v4321_v59  ;;  %v1621_v53 = vsel %vm7094_vm9, %v4312_v43, %v4316_v11  ;;  %v6059_v34 = vpack.c.bf16 %v1620_v46, %v1614_v29  ;;  %v7203_v29 = vld [vmem:[#allocation32_spill] sm:$0xff] }
 0x3a9   : > { %v1547_v2 = vpop.permute.xlu0 %1546  ;;  %v6051_v61 = vpack.c.bf16 %v1607_v52, %v5550_v62  ;;  %v6053_v55 = vpack.c.bf16 %v1621_v53, %v1615_v13  ;;  %v6056_v56 = vpack.c.bf16 %v1606_v63, %v5553_v18  ;;  %v1608_v40 = vsel %vm7094_vm9, %v4321_v59, %v4322_v51  ;;  %v7201_v13 = vld [vmem:[#allocation31_spill] sm:$0xff] }
 0x3aa   : > { %v1609_v39 = vsel %vm7094_vm9, %v4322_v51, %v1547_v2  ;;  %7196 = vst [vmem:[#allocation42_spill] sm:$0xff] %v6059_v34  ;;  %v6072_v62 = vpack.c.bf16 %v1608_v40, %v5590_v37 }
 0x3ab   : > { %7193 = vst [vmem:[#allocation39_spill] sm:$0xff] %v6051_v61  ;;  %7194 = vst [vmem:[#allocation40_spill] sm:$0xff] %v6053_v55  ;;  %v6063_v30 = vpack.c.bf16 %v1609_v39, %v5595_v58  ;;  %1843 = vmatprep.subr.bf16.mxu0 %v6051_v61  ;;  %1882 = vmatprep.subr.bf16.mxu1 %v6053_v55 }
 0x3ac   : > { %7195 = vst [vmem:[#allocation41_spill] sm:$0xff] %v6056_v56  ;;  %1844 = vmatpush1.bf16.msra.mxu0 %v6056_v56  ;;  %1883 = vmatpush1.bf16.msra.mxu1 %v6059_v34  ;;  %7198 = vst [vmem:[#allocation44_spill] sm:$0xff] %v6072_v62 }
 0x3ad   : > { %7197 = vst [vmem:[#allocation43_spill] sm:$0xff] %v6063_v30  ;;  %1845 = vmatprep.subr.bf16.mxu0 %v5577_v47  ;;  %1884 = vmatprep.subr.bf16.mxu1 %v6063_v30 }
 0x3b0   : > { %1846 = vmatpush1.bf16.msra.mxu0 %v5579_v48  ;;  %1885 = vmatpush1.bf16.msra.mxu1 %v6072_v62 }
 0x3b1   : > { %1847 = vmatprep.subr.bf16.mxu0 %v5592_v57  ;;  %1886 = vmatprep.subr.bf16.mxu1 %v5612_v19 }
 0x3b2   : > { %v1924_v18 = vpop.permute.xlu1 %1923 }
 0x3b4   : > { %1848 = vmatpush1.bf16.msra.mxu0 %v5587_v41  ;;  %1887 = vmatpush1.bf16.msra.mxu1 %v5614_v22 }
 0x3b5   : > { %1888 = vmatprep.subr.bf16.mxu1 %v5622_v31 }
 0x3b7   : > { %3816 = vmatmul.mubr.msk.bf16.vlgmr.msra.gmra.mxu0 %vm1788_vm14, %v1697_v28 }
 0x3b8   : > { %1889 = vmatpush1.bf16.msra.mxu1 %v5624_v42  ;;  %2640 = vmatprep.mubr.bf16.mxu0 %v7192_v44 }
 0x3bb   : > { %3817 = vmatmul.mubr.msk.bf16.vlgmr.msra.gmra.mxu1 %vm1788_vm14, %v1697_v28 }
 0x3bc   : > { %2681 = vmatprep.mubr.bf16.mxu1 %v7192_v44 }
 0x463   : > { %v1826_v37 = vpop.f32.mrf.mxu1 }
 0x464   : > { %vm1915_vm10 = vcmp.gt.f32.partialorder %v1826_v37, 0.0  ;;  %v1926_v58 = vmul.f32 %v1924_v18, %v1826_v37 }
 0x465   : > { %v1828_v20 = vpop.f32.mrf.mxu1 }
 0x466   : > { %v1932_v6 = vsel %vm1915_vm10, %v1826_v37, %v1926_v58  ;;  %vm1916_vm9 = vcmp.gt.f32.partialorder %v1828_v20, 0.0  ;;  %v1927_v35 = vmul.f32 %v1924_v18, %v1828_v20 }
 0x467   : > { %v1830_v3 = vpop.f32.mrf.mxu1  ;;  %v1938_v8 = vsel %vm7096_vm13, %v1932_v6, 0.0  ;;  %vm7204_vm13 = vcmp.eq.s32.totalorder %v7203_v29, 1 }
 0x468   : > { %v1933_v25 = vsel %vm1916_vm9, %v1828_v20, %v1927_v35  ;;  %v4778_v32 = vcombine.low %v1938_v8, %v1938_v8 }
 0x469   : > { %v1939_v1 = vsel %vm7095_vm15, %v1933_v25, 0.0  ;;  %v1831_v17 = vpop.f32.mrf.mxu1  ;;  %vm7202_vm15 = vcmp.eq.s32.totalorder %v7201_v13, 1 }
 0x46a   : > { %v1950_v28 = vcombine.low %v1938_v8, %v1939_v1  ;;  %v4777_v27 = vcombine.low %v1939_v1, %v1939_v1 }
 0x46c   : > { %1956 = vst [vmem:[#allocation2 + $0x4] sm:$0xff] %v1950_v28  ;;  %v4323_v43 = vpack.i.bf16 %v4777_v27, %v1950_v28  ;;  %v4333_v38 = vpack.i.bf16 %v1950_v28, %v4778_v32 }
 0x46e   : > { %4324 = vrot.lane.b32.xlu0 %v4323_v43, %s4977_s19  ;;  %4329 = vrot.lane.b32.xlu1 %v4323_v43, %s4978_s13 }
 0x472   : > { %4334 = vrot.lane.b32.xlu0 %v4333_v38, %s4979_s17  ;;  %4339 = vrot.lane.b32.xlu1 %v4323_v43, %s4980_s20 }
 0x476   : > { %4344 = vrot.lane.b32.xlu0 %v4333_v38, %s4981_s25  ;;  %v6103_v38 = vld [vmem:[#allocation2] sm:$0xff] }
 0x477   : > { %v1867_v36 = vpop.f32.mrf.mxu0 }
 0x478   : > { %vm1917_vm9 = vcmp.gt.f32.partialorder %v1867_v36, 0.0  ;;  %v1928_v7 = vmul.f32 %v1924_v18, %v1867_v36 }
 0x479   : > { %v1869_v59 = vpop.f32.mrf.mxu0 }
 0x47a   : > { %v1934_v9 = vsel %vm1917_vm9, %v1867_v36, %v1928_v7  ;;  %vm1918_vm14 = vcmp.gt.f32.partialorder %v1869_v59, 0.0  ;;  %v1929_v11 = vmul.f32 %v1924_v18, %v1869_v59 }
 0x47b   : > { %v1871_v46 = vpop.f32.mrf.mxu0  ;;  %v1908_v51 = vpop.f32.mrf.mxu1  ;;  %v1940_v53 = vsel %vm7202_vm15, %v1934_v9, 0.0 }
 0x47c   : > { %v1935_v63 = vsel %vm1918_vm14, %v1869_v59, %v1929_v11  ;;  %vm1919_vm10 = vcmp.gt.f32.partialorder %v1908_v51, 0.0  ;;  %v1930_v52 = vmul.f32 %v1924_v18, %v1908_v51  ;;  %v4780_v32 = vcombine.low %v1940_v53, %v1940_v53 }
 0x47d   : > { %v1941_v2 = vsel %vm7204_vm13, %v1935_v63, 0.0  ;;  %v1872_v39 = vpop.f32.mrf.mxu0  ;;  %v1910_v40 = vpop.f32.mrf.mxu1 }
 0x47e   : > { %v1951_v37 = vcombine.low %v1940_v53, %v1941_v2  ;;  %v1936_v58 = vsel %vm1919_vm10, %v1908_v51, %v1930_v52  ;;  %vm1920_vm7 = vcmp.gt.f32.partialorder %v1910_v40, 0.0  ;;  %v1931_v20 = vmul.f32 %v1924_v18, %v1910_v40 }
 0x47f   : > { %v1912_v6 = vpop.f32.mrf.mxu1  ;;  %v4779_v3 = vcombine.low %v1941_v2, %v1941_v2  ;;  %v1942_v8 = vsel %vm1186_vm12, %v1936_v58, 0.0  ;;  %v6108_v18 = vcombine.high %v6103_v38, %v6103_v38  ;;  %v1980_v2 = vcombine.low %v6103_v38, %v6103_v38 }
 0x480   : > { %1957 = vst [vmem:[#allocation2 + $0xc] sm:$0xff] %v1951_v37  ;;  %v1937_v35 = vsel %vm1920_vm7, %v1910_v40, %v1931_v20  ;;  %v4363_v36 = vpack.i.bf16 %v1951_v37, %v4780_v32  ;;  %v4782_v63 = vcombine.low %v1942_v8, %v1942_v8  ;;  %vm7212_vm7 = vcmask 1031168  }
 0x481   : > { %v1943_v17 = vsel %vm1187_vm11, %v1937_v35, 0.0  ;;  %v1913_v28 = vpop.f32.mrf.mxu1  ;;  %v4353_v43 = vpack.i.bf16 %v4779_v3, %v1951_v37  ;;  %v1969_v3 = vld [vmem:[#allocation2 + $0x1c] sm:$0xf]  ;;  %vm7222_vm13 = vmmov %vm7212_vm7 }
 0x482   : > { %v1952_v27 = vcombine.low %v1942_v8, %v1943_v17  ;;  %v4781_v46 = vcombine.low %v1943_v17, %v1943_v17  ;;  %v2102_v8 = vcombine.low %v1969_v3, %v1969_v3  ;;  %vm7224_vm15 = vmmov %vm7212_vm7 }
 0x483   : > { %4354 = vrot.lane.b32.xlu1 %v4353_v43, %s4977_s19  ;;  %vm7225_vm9 = vmmov %vm7212_vm7 }
 0x484   : > { %1958 = vst [vmem:[#allocation2 + $0x14] sm:$0xff] %v1952_v27  ;;  %v4398_v51 = vpack.i.bf16 %v4781_v46, %v1952_v27  ;;  %v4408_v53 = vpack.i.bf16 %v1952_v27, %v4782_v63  ;;  %v4433_v17 = vpack.i.bf16 %v2102_v8, %v1952_v27  ;;  %v4438_v28 = vpack.i.bf16 %v1969_v3, %v4781_v46  ;;  %vm7228_vm14 = vmmov %vm7212_vm7 }
 0x485   : > { %vm7229_vm10 = vmmov %vm7212_vm7 }
 0x487   : > { %v6110_v7 = vld [vmem:[#allocation2 + $0x8] sm:$0xff]  ;;  %4364 = vrot.lane.b32.xlu1 %v4363_v36, %s4979_s17 }
 0x488   : > { %v4348_v59 = vpack.i.bf16 %v6110_v7, %v6108_v18  ;;  %v1981_v9 = vcombine.low %v6110_v7, %v6110_v7  ;;  %v6137_v37 = vcombine.high %v6110_v7, %v6110_v7 }
 0x48a   : > { %4349 = vrot.lane.b32.xlu0 %v4348_v59, %s4983_s10  ;;  %v4378_v11 = vpack.i.bf16 %v1981_v9, %v6103_v38 }
 0x48b   : > { %4374 = vrot.lane.b32.xlu1 %v4363_v36, %s4981_s25  ;;  %v6125_v52 = vld [vmem:[#allocation2 + $0x10] sm:$0xff] }
 0x48c   : > { %v4388_v39 = vpack.i.bf16 %v1980_v2, %v6125_v52  ;;  %v1982_v40 = vcombine.low %v6125_v52, %v6125_v52  ;;  %v4393_v58 = vpack.i.bf16 %v6125_v52, %v6137_v37  ;;  %v6145_v6 = vcombine.high %v6125_v52, %v6125_v52 }
 0x48e   : > { %4359 = vrot.lane.b32.xlu0 %v4353_v43, %s4978_s13  ;;  %v4413_v20 = vpack.i.bf16 %v1982_v40, %v6110_v7  ;;  %v4418_v35 = vpack.i.bf16 %v6103_v38, %v6145_v6 }
 0x48f   : > { %4379 = vrot.lane.b32.xlu1 %v4378_v11, %s4982_s21 }
 0x492   : > { %4369 = vrot.lane.b32.xlu0 %v4353_v43, %s4980_s20  ;;  %v6158_v43 = vld [vmem:[#allocation2 + $0x18] sm:$0xf] }
 0x493   : > { %4384 = vrot.lane.b32.xlu1 %v4378_v11, %s4984_s23  ;;  %v1983_v32 = vcombine.low %v6158_v43, %v6158_v43 }
 0x496   : > { %4399 = vrot.lane.b32.xlu0 %v4398_v51, %s4977_s19 }
 0x497   : > { %2141 = vrot.lane.b32.xlu1 %v1952_v27, %s4980_s20 }
 0x49a   : > { %4409 = vrot.lane.b32.xlu0 %v4408_v53, %s4979_s17 }
 0x49b   : > { %4389 = vrot.lane.b32.xlu1 %v4388_v39, %s4982_s21 }
 0x49e   : > { %2168 = vrot.lane.b32.xlu0 %v4782_v63, %s4981_s25 }
 0x49f   : > { %4394 = vrot.lane.b32.xlu1 %v4393_v58, %s4983_s10 }
 0x4a2   : > { %4414 = vrot.lane.b32.xlu0 %v4413_v20, %s4982_s21 }
 0x4a3   : > { %4404 = vrot.lane.b32.xlu1 %v4398_v51, %s4978_s13 }
 0x4a6   : > { %4419 = vrot.lane.b32.xlu0 %v4418_v35, %s4983_s10 }
 0x4a7   : > { %4429 = vrot.lane.b32.xlu1 %v4388_v39, %s4984_s23 }
 0x4aa   : > { %4424 = vrot.lane.b32.xlu0 %v4413_v20, %s4984_s23 }
 0x4ab   : > { %2115 = vrot.lane.b32.xlu1 %v2102_v8, %s4979_s17 }
 0x4ae   : > { %2199 = vrot.lane.b32.xlu0 %v1969_v3, %s4977_s19 }
 0x4af   : > { %4434 = vrot.lane.b32.xlu1 %v4433_v17, %s4981_s25 }
 0x4b2   : > { %4439 = vrot.lane.b32.xlu0 %v4438_v28, %s4980_s20 }
 0x4b3   : > { %2023 = vrot.lane.b32.xlu1 %v6158_v43, %s4983_s10 }
 0x4b6   : > { %1996 = vrot.lane.b32.xlu0 %v1983_v32, %s4982_s21 }
 0x4ba   : > { %2050 = vrot.lane.b32.xlu0 %v1983_v32, %s4984_s23 }
 0x4e0   : > { %v4325_v36 = vpop.permute.xlu0 %4324  ;;  %v6171_v63 = vpop.permute.xlu1 %4329 }
 0x4e1   : > { %v4327_v59 = vunpack.i.h.bf16 %v4325_v36  ;;  %v4326_v27 = vunpack.i.l.bf16 %v4325_v36 }
 0x4e3   : > { %v2201_v9 = vsel %vm691_vm0, %v4326_v27, %v4327_v59  ;;  %v2242_v11 = vsel %vm705_vm1, %v4326_v27, 1.0 }
 0x4e4   : > { %v2243_v46 = vsel %vm705_vm1, %v2201_v9, 1.0  ;;  %v6173_v53 = vpop.permute.xlu0 %4334  ;;  %v6175_v2 = vpop.permute.xlu1 %4339 }
 0x4e5   : > { %v4443_v51 = vpack.i.bf16 %v2243_v46, %v2242_v11  ;;  %v4342_v42 = vunpack.i.h.bf16 %v6175_v2  ;;  %v4341_v30 = vunpack.i.l.bf16 %v6175_v2 }
 0x4e7   : > { %4444 = vrot.lane.b32.xlu1 %v4443_v51, %s4985_s16  ;;  %v4332_v51 = vunpack.i.h.bf16 %v6171_v63 }
 0x4e8   : > { %v6177_v20 = vpop.permute.xlu0 %4344 }
 0x4e9   : > { %v4346_v0 = vunpack.i.l.bf16 %v6177_v20 }
 0x4f5   : > { %v4355_v39 = vpop.permute.xlu1 %4354 }
 0x4f6   : > { %v4357_v40 = vunpack.i.h.bf16 %v4355_v39  ;;  %v4356_v58 = vunpack.i.l.bf16 %v4355_v39 }
 0x4f8   : > { %v2202_v35 = vsel %vm691_vm0, %v4327_v59, %v4356_v58  ;;  %v2203_v3 = vsel %vm691_vm0, %v4356_v58, %v4357_v40  ;;  %v4337_v59 = vunpack.i.h.bf16 %v6173_v53 }
 0x4f9   : > { %v2244_v8 = vsel %vm705_vm1, %v2202_v35, 1.0  ;;  %v2245_v17 = vsel %vm705_vm1, %v2203_v3, 1.0  ;;  %v6183_v28 = vpop.permute.xlu1 %4364 }
 0x4fa   : > { %v4448_v32 = vpack.i.bf16 %v2245_v17, %v2244_v8  ;;  %v7098_v27 = vunpack.i.h.bf16 %v6183_v28  ;;  %v4366_v9 = vunpack.i.l.bf16 %v6183_v28  ;;  %v7215_v44 = vunpack.i.h.bf16 %v6183_v28 }
 0x4fc   : > { %v6185_v36 = vpop.permute.xlu0 %4349  ;;  %4449 = vrot.lane.b32.xlu0 %v4448_v32, %s4985_s16  ;;  %v2118_v35 = vsel %vm604_vm3, %v4337_v59, %v4366_v9  ;;  %v2119_v3 = vsel %vm604_vm3, %v4366_v9, %v7098_v27  ;;  %v4347_v9 = vunpack.i.h.bf16 %v6177_v20  ;;  %v7211_v20 = vunpack.i.l.bf16 %v6171_v63 }
 0x4fd   : > { %v6190_v11 = vpop.permute.xlu1 %4374 }
 0x4fe   : > { %v4376_v17 = vunpack.i.l.bf16 %v6190_v11 }
 0x500   : > { %v6193_v46 = vpop.permute.xlu0 %4359  ;;  %v2175_v50 = vsel %vm663_vm5, %v4347_v9, %v4376_v17 }
 0x501   : > { %v7103_v39 = vunpack.i.h.bf16 %v6193_v46  ;;  %v4361_v58 = vunpack.i.l.bf16 %v6193_v46  ;;  %v6204_v32 = vpop.permute.xlu1 %4379 }
 0x503   : > { %v2084_v1 = vsel %vm569_vm2, %v4332_v51, %v4361_v58  ;;  %v2085_v25 = vsel %vm569_vm2, %v4361_v58, %v7103_v39 }
 0x504   : > { %v6214_v27 = vpop.permute.xlu0 %4369  ;;  %v2230_v8 = vsel %vm705_vm1, %v2084_v1, %v2118_v35  ;;  %v2231_v13 = vsel %vm705_vm1, %v2085_v25, %v2119_v3  ;;  %v7207_v25 = vunpack.i.h.bf16 %v6190_v11  ;;  %v7209_v3 = vunpack.i.l.bf16 %v6204_v32 }
 0x505   : > { %v7110_v31 = vunpack.i.h.bf16 %v6214_v27  ;;  %v4371_v58 = vunpack.i.l.bf16 %v6214_v27  ;;  %v4453_v39 = vpack.i.bf16 %v2231_v13, %v2230_v8  ;;  %v6223_v29 = vpop.permute.xlu1 %4384  ;;  %v7208_v13 = vunpack.i.h.bf16 %v6204_v32 }
 0x506   : > { %v2176_v35 = vsel %vm663_vm5, %v4376_v17, %v7207_v25 }
 0x507   : > { %v2148_v22 = vsel %vm635_vm4, %v4342_v42, %v4371_v58  ;;  %v2149_v1 = vsel %vm635_vm4, %v4371_v58, %v7110_v31  ;;  %4454 = vrot.lane.b32.xlu0 %v4453_v39, %s4985_s16  ;;  %v1999_v8 = vsel %vm481_vm6, %v7209_v3, %v7208_v13  ;;  %v7210_v31 = vunpack.i.l.bf16 %v6173_v53 }
 0x508   : > { %v6239_v19 = vpop.permute.xlu0 %4399  ;;  %v2237_v62 = vsel %vm705_vm1, %v2148_v22, %v2175_v50  ;;  %v2238_v58 = vsel %vm705_vm1, %v2149_v1, %v2176_v35  ;;  %v2215_v13 = vsel %vm705_vm1, %v6108_v18, %v1999_v8  ;;  %v2083_v22 = vsel %vm569_vm2, %v7211_v20, %v4332_v51 }
 0x509   : > { %v2117_v17 = vsel %vm604_vm3, %v7210_v31, %v4337_v59  ;;  %v7113_v39 = vunpack.i.l.bf16 %v6239_v19  ;;  %v4458_v25 = vpack.i.bf16 %v2238_v58, %v2237_v62  ;;  %v6250_v3 = vpop.permute.xlu1 %2141  ;;  %v2235_v31 = vsel %vm705_vm1, %v4341_v30, %v4346_v0 }
 0x50a   : > { %v2229_v18 = vsel %vm705_vm1, %v2083_v22, %v2117_v17  ;;  %v4463_v1 = vpack.i.bf16 %v2215_v13, %v2235_v31  ;;  %v7114_v8 = vunpack.i.l.bf16 %v6223_v29  ;;  %v7119_v17 = vunpack.i.l.bf16 %v6185_v36 }
 0x50b   : > { %v2204_v50 = vsel %vm691_vm0, %v4357_v40, %v7113_v39  ;;  %4459 = vrot.lane.b32.xlu0 %v4458_v25, %s4985_s16  ;;  %v4387_v40 = vunpack.i.h.bf16 %v6223_v29  ;;  %v4352_v25 = vunpack.i.h.bf16 %v6185_v36 }
 0x50c   : > { %v2246_v62 = vsel %vm705_vm1, %v2204_v50, 1.0  ;;  %v6261_v2 = vpop.permute.xlu0 %4409 }
 0x50d   : > { %v4468_v59 = vpack.i.bf16 %v2229_v18, %v2246_v62  ;;  %v6264_v35 = vpop.permute.xlu1 %4389  ;;  %v2053_v13 = vsel %vm7128_vm8, %v7114_v8, %v4387_v40  ;;  %v2174_v18 = vsel %vm663_vm5, %v4346_v0, %v4347_v9  ;;  %v2147_v0 = vsel %vm635_vm4, %v4341_v30, %v4342_v42 }
 0x50e   : > { %v7122_v50 = vunpack.i.l.bf16 %v6264_v35  ;;  %v4392_v39 = vunpack.i.h.bf16 %v6264_v35  ;;  %v7213_v9 = vunpack.i.h.bf16 %v6190_v11  ;;  %v7214_v60 = vunpack.i.l.bf16 %v6261_v2 }
 0x50f   : > { %4469 = vrot.lane.b32.xlu1 %v4468_v59, %s4985_s16  ;;  %4464 = vrot.lane.b32.xlu0 %v4463_v1, %s4985_s16  ;;  %v2026_v59 = vsel %vm7212_vm7, %v7119_v17, %v4352_v25  ;;  %v2236_v30 = vsel %vm705_vm1, %v2147_v0, %v2174_v18  ;;  %v4402_v11 = vunpack.i.h.bf16 %v6239_v19  ;;  %vm7232_vm7 = vcmask 154624  }
 0x510   : > { %v6268_v51 = vpop.permute.xlu0 %2168  ;;  %v2222_v31 = vsel %vm705_vm1, %v2026_v59, %v2053_v13  ;;  %v2120_v26 = vsel %vm604_vm3, %v7215_v44, %v7214_v60 }
 0x511   : > { %v6272_v58 = vpop.permute.xlu1 %4394  ;;  %v2177_v17 = vsel %vm663_vm5, %v7213_v9, %v6268_v51 }
 0x512   : > { %v4397_v18 = vunpack.i.h.bf16 %v6272_v58 }
 0x514   : > { %v4415_v20 = vpop.permute.xlu0 %4414 }
 0x515   : > { %v4417_v22 = vunpack.i.h.bf16 %v4415_v20  ;;  %v6281_v62 = vpop.permute.xlu1 %4404  ;;  %v4416_v23 = vunpack.i.l.bf16 %v4415_v20 }
 0x516   : > { %v4406_v55 = vunpack.i.l.bf16 %v6281_v62 }
 0x517   : > { %v2002_v1 = vsel %vm481_vm6, %v4417_v22, %v7122_v50 }
 0x518   : > { %v6291_v8 = vpop.permute.xlu0 %4419  ;;  %v2218_v34 = vsel %vm705_vm1, %v6125_v52, %v2002_v1  ;;  %v7216_v52 = vunpack.i.h.bf16 %v6193_v46  ;;  %v7218_v46 = vunpack.i.l.bf16 %v6204_v32 }
 0x519   : > { %v4488_v50 = vpack.i.bf16 %v2222_v31, %v2218_v34  ;;  %v6312_v42 = vpop.permute.xlu1 %4429  ;;  %v7217_v34 = vunpack.i.h.bf16 %v6214_v27  ;;  %v4421_v28 = vunpack.i.l.bf16 %v6291_v8  ;;  %v7219_v27 = vunpack.i.h.bf16 %v6204_v32 }
 0x51a   : > { %v2086_v13 = vsel %vm569_vm2, %v7216_v52, %v4406_v55  ;;  %v1998_v31 = vsel %vm481_vm6, %v4392_v39, %v7218_v46  ;;  %v2001_v39 = vsel %vm481_vm6, %v4416_v23, %v4417_v22 }
 0x51b   : > { %v2150_v20 = vsel %vm635_vm4, %v7217_v34, %v6250_v3  ;;  %4489 = vrot.lane.b32.xlu0 %v4488_v50, %s4985_s16  ;;  %v2232_v60 = vsel %vm705_vm1, %v2086_v13, %v2120_v26  ;;  %v2000_v0 = vsel %vm481_vm6, %v7219_v27, %v4416_v23  ;;  %v4431_v50 = vunpack.i.l.bf16 %v6312_v42 }
 0x51c   : > { %v2239_v44 = vsel %vm705_vm1, %v2150_v20, %v2177_v17  ;;  %v4425_v59 = vpop.permute.xlu0 %4424  ;;  %v4473_v1 = vpack.i.bf16 %v2236_v30, %v2232_v60  ;;  %v7220_v26 = vunpack.i.l.bf16 %v6173_v53  ;;  %v7221_v17 = vunpack.i.l.bf16 %v6171_v63 }
 0x51d   : > { %v4427_v9 = vunpack.i.h.bf16 %v4425_v59  ;;  %v4426_v52 = vunpack.i.l.bf16 %v4425_v59  ;;  %v2116_v34 = vpop.permute.xlu1 %2115  ;;  %v4396_v30 = vunpack.i.l.bf16 %v6272_v58  ;;  %v2029_v32 = vsel %vm7222_vm13, %v4397_v18, %v4421_v28  ;;  %vm7233_vm13 = vmmov %vm7232_vm7 }
 0x51e   : > { %v2228_v13 = vsel %vm705_vm1, %v7221_v17, %v7220_v26  ;;  %4474 = vrot.lane.b32.xlu1 %v4473_v1, %s4985_s16  ;;  %v7223_v20 = vunpack.i.l.bf16 %v6239_v19  ;;  %v2214_v23 = vsel %vm705_vm1, %v6103_v38, %v1998_v31  ;;  %v2216_v58 = vsel %vm705_vm1, %v6110_v7, %v2000_v0 }
 0x51f   : > { %v2056_v53 = vsel %vm7128_vm8, %v4427_v9, %v4431_v50  ;;  %v4478_v63 = vpack.i.bf16 %v2228_v13, %v2239_v44  ;;  %v2054_v59 = vsel %vm7128_vm8, %v4387_v40, %v4426_v52  ;;  %v2217_v19 = vsel %vm705_vm1, %v6137_v37, %v2001_v39 }
 0x520   : > { %v2205_v60 = vsel %vm691_vm0, %v7223_v20, %v4402_v11  ;;  %v2200_v46 = vpop.permute.xlu0 %2199  ;;  %v2225_v22 = vsel %vm705_vm1, %v2029_v32, %v2056_v53  ;;  %v2055_v26 = vsel %vm7128_vm8, %v4426_v52, %v4427_v9  ;;  %v2027_v31 = vsel %vm7224_vm15, %v4352_v25, %v4396_v30  ;;  %vm7234_vm15 = vmmov %vm7232_vm7 }
 0x521   : > { %v2206_v1 = vsel %vm691_vm0, %v4402_v11, %v2200_v46  ;;  %v4498_v27 = vpack.i.bf16 %v2214_v23, %v2225_v22  ;;  %v4435_v38 = vpop.permute.xlu1 %4434  ;;  %v2247_v17 = vsel %vm705_vm1, %v2205_v60, 1.0  ;;  %v2028_v11 = vsel %vm7225_vm9, %v4396_v30, %v4397_v18  ;;  %vm7235_vm9 = vmmov %vm7232_vm7 }
 0x522   : > { %v2248_v44 = vsel %vm705_vm1, %v2206_v1, 1.0  ;;  %4479 = vrot.lane.b32.xlu1 %v4478_v63, %s4985_s16  ;;  %v4437_v7 = vunpack.i.h.bf16 %v4435_v38  ;;  %v4436_v40 = vunpack.i.l.bf16 %v4435_v38  ;;  %v4432_v0 = vunpack.i.h.bf16 %v6312_v42 }
 0x523   : > { %4499 = vrot.lane.b32.xlu0 %v4498_v27, %s4985_s16  ;;  %v4483_v13 = vpack.i.bf16 %v2217_v19, %v2216_v58  ;;  %v2223_v9 = vsel %vm705_vm1, %v2027_v31, %v2054_v59  ;;  %v4503_v52 = vpack.i.bf16 %v2248_v44, %v2247_v17  ;;  %v2224_v20 = vsel %vm705_vm1, %v2028_v11, %v2055_v26 }
 0x524   : > { %v4440_v37 = vpop.permute.xlu0 %4439  ;;  %v4412_v25 = vunpack.i.h.bf16 %v6261_v2  ;;  %v4422_v60 = vunpack.i.h.bf16 %v6291_v8  ;;  %v2178_v30 = vsel %vm663_vm5, %v6268_v51, %v4436_v40  ;;  %v2179_v53 = vsel %vm663_vm5, %v4436_v40, %v4437_v7 }
 0x525   : > { %v4442_v39 = vunpack.i.h.bf16 %v4440_v37  ;;  %v4441_v32 = vunpack.i.l.bf16 %v4440_v37  ;;  %v4407_v63 = vunpack.i.h.bf16 %v6281_v62  ;;  %v4493_v23 = vpack.i.bf16 %v2224_v20, %v2223_v9  ;;  %v2024_v51 = vpop.permute.xlu1 %2023  ;;  %v3818_v37 = vld [vmem:[%s7060_s6 + $0x8] sm:$0xf] }
 0x526   : > { %4484 = vrot.lane.b32.xlu1 %v4483_v13, %s4985_s16  ;;  %v2122_v27 = vsel %vm604_vm3, %v4412_v25, %v2116_v34  ;;  %v7227_v19 = vunpack.i.l.bf16 %v6185_v36  ;;  %v2030_v17 = vsel %vm7229_vm10, %v4421_v28, %v2024_v51  ;;  %v7230_v36 = vunpack.i.l.bf16 %v6261_v2  ;;  %vm7237_vm10 = vmmov %vm7232_vm7 }
 0x527   : > { %v2151_v18 = vsel %vm635_vm4, %v6250_v3, %v4441_v32  ;;  %v2152_v42 = vsel %vm635_vm4, %v4441_v32, %v4442_v39  ;;  %4504 = vrot.lane.b32.xlu0 %v4503_v52, %s4985_s16  ;;  %v7226_v3 = vunpack.i.l.bf16 %v6223_v29  ;;  %v2087_v44 = vsel %vm569_vm2, %v4406_v55, %v4407_v63 }
 0x528   : > { %v1997_v46 = vpop.permute.xlu0 %1996  ;;  %v2240_v22 = vsel %vm705_vm1, %v2151_v18, %v2178_v30  ;;  %v2241_v58 = vsel %vm705_vm1, %v2152_v42, %v2179_v53  ;;  %v2025_v26 = vsel %vm7228_vm14, %v4422_v60, %v7227_v19  ;;  %v2234_v31 = vsel %vm705_vm1, %v4407_v63, %v2122_v27  ;;  %vm7236_vm14 = vmmov %vm7232_vm7 }
 0x529   : > { %v4513_v59 = vpack.i.bf16 %v2241_v58, %v2240_v22  ;;  %v2052_v1 = vsel %vm7128_vm8, %v4432_v0, %v7226_v3  ;;  %v2121_v40 = vsel %vm604_vm3, %v7230_v36, %v4412_v25  ;;  %v7231_v62 = vunpack.i.l.bf16 %v6264_v35 }
 0x52a   : > { %4494 = vrot.lane.b32.xlu1 %v4493_v23, %s4985_s16  ;;  %v2221_v29 = vsel %vm705_vm1, %v2025_v26, %v2052_v1  ;;  %v2220_v2 = vsel %vm705_vm1, %v6158_v43, %v1997_v46 }
 0x52b   : > { %4514 = vrot.lane.b32.xlu0 %v4513_v59, %s4985_s16  ;;  %v2003_v55 = vsel %vm481_vm6, %v7231_v62, %v1997_v46 }
 0x52c   : > { %v2051_v38 = vpop.permute.xlu0 %2050  ;;  %v2219_v28 = vsel %vm705_vm1, %v6145_v6, %v2003_v55 }
 0x52d   : > { %v2057_v34 = vsel %vm7128_vm8, %v4431_v50, %v2051_v38  ;;  %v2227_v7 = vsel %vm705_vm1, %v2024_v51, %v2051_v38  ;;  %v2233_v50 = vsel %vm705_vm1, %v2087_v44, %v2121_v40  ;;  %v4518_v35 = vpack.i.bf16 %v2220_v2, %v2219_v28 }
 0x52e   : > { %v2226_v11 = vsel %vm705_vm1, %v2030_v17, %v2057_v34  ;;  %2298 = vrot.lane.b32.xlu1 %v2221_v29, %s4985_s16  ;;  %v4508_v8 = vpack.i.bf16 %v2234_v31, %v2233_v50 }
 0x52f   : > { %v4523_v0 = vpack.i.bf16 %v2227_v7, %v2226_v11 }
 0x531   : > { %4524 = vrot.lane.b32.xlu0 %v4523_v0, %s4985_s16 }
 0x532   : > { %4509 = vrot.lane.b32.xlu1 %v4508_v8, %s4985_s16 }
 0x536   : > { %4519 = vrot.lane.b32.xlu1 %v4518_v35, %s4985_s16 }
 0x53a   : > { %2739 = vperm.xlu1 %4117, %v3818_v37  }
 0x559   : > { %v4445_v13 = vpop.permute.xlu1 %4444 }
 0x55a   : > { %v4447_v9 = vunpack.i.h.bf16 %v4445_v13  ;;  %v4446_v52 = vunpack.i.l.bf16 %v4445_v13 }
 0x55c   : > { %v6418_v6 = vsel %vm7232_vm7, %v4446_v52, %v4447_v9 }
 0x55d   : > { %v2580_v32 = vpack.c.bf16 %v6418_v6, %v6418_v6 }
 0x55f   : > { %v2591_v60 = vsel %vm705_vm1, %v2580_v32, 0 }
 0x56e   : > { %v4450_v39 = vpop.permute.xlu0 %4449 }
 0x56f   : > { %v4451_v43 = vunpack.i.l.bf16 %v4450_v39  ;;  %v4452_v18 = vunpack.i.h.bf16 %v4450_v39 }
 0x571   : > { %v6423_v20 = vsel %vm7233_vm13, %v4447_v9, %v4451_v43  ;;  %v6430_v42 = vsel %vm7234_vm15, %v4451_v43, %v4452_v18  ;;  %vm7238_vm13 = vmmov %vm7232_vm7 }
 0x572   : > { %v2581_v25 = vpack.c.bf16 %v6423_v20, %v6423_v20  ;;  %v2582_v63 = vpack.c.bf16 %v6430_v42, %v6430_v42  ;;  %vm7239_vm15 = vmmov %vm7232_vm7 }
 0x574   : > { %3819 = vmatprep.subr.msk.bf16.mxu0 %vm705_vm1, %v2581_v25  ;;  %v2597_v58 = vsel %vm705_vm1, %v2582_v63, 0 }
 0x575   : > { %2609 = vmatpush1.bf16.msra.mxu0 %v2591_v60 }
 0x579   : > { %v4455_v22 = vpop.permute.xlu0 %4454 }
 0x57a   : > { %v4456_v27 = vunpack.i.l.bf16 %v4455_v22  ;;  %v4457_v34 = vunpack.i.h.bf16 %v4455_v22 }
 0x57d   : > { %v4460_v59 = vpop.permute.xlu0 %4459 }
 0x57e   : > { %v4461_v51 = vunpack.i.l.bf16 %v4460_v59  ;;  %v4462_v26 = vunpack.i.h.bf16 %v4460_v59 }
 0x580   : > { %v2374_v55 = vsel %vm7232_vm7, %v4461_v51, %v4462_v26 }
 0x581   : > { %v6432_v30 = vpop.permute.xlu1 %4469  ;;  %v4465_v44 = vpop.permute.xlu0 %4464 }
 0x582   : > { %v4471_v53 = vunpack.i.l.bf16 %v6432_v30  ;;  %v4472_v3 = vunpack.i.h.bf16 %v6432_v30  ;;  %v4466_v36 = vunpack.i.l.bf16 %v4465_v44  ;;  %v4467_v32 = vunpack.i.h.bf16 %v4465_v44 }
 0x584   : > { %v6440_v46 = vsel %vm7235_vm9, %v4452_v18, %v4471_v53  ;;  %v2367_v29 = vsel %vm7236_vm14, %v4472_v3, %v4456_v27  ;;  %vm7240_vm9 = vmmov %vm7232_vm7 }
 0x585   : > { %v2583_v23 = vpack.c.bf16 %v6440_v46, %v6440_v46  ;;  %vm7241_vm14 = vmmov %vm7232_vm7 }
 0x587   : > { %3821 = vmatprep.subr.msk.bf16.mxu1 %vm705_vm1, %v2583_v23 }
 0x588   : > { %2650 = vmatpush1.bf16.msra.mxu1 %v2597_v58 }
 0x58d   : > { %v6460_v11 = vpop.permute.xlu0 %4489 }
 0x58e   : > { %v4492_v25 = vunpack.i.h.bf16 %v6460_v11  ;;  %v4491_v60 = vunpack.i.l.bf16 %v6460_v11  ;;  %v7264_v11 = vld [vmem:[#allocation40_spill] sm:$0xff] }
 0x590   : > { %v6447_v1 = vpop.permute.xlu1 %4474 }
 0x591   : > { %v4477_v19 = vunpack.i.h.bf16 %v6447_v1  ;;  %v4476_v38 = vunpack.i.l.bf16 %v6447_v1 }
 0x593   : > { %v2373_v31 = vsel %vm7237_vm10, %v4477_v19, %v4461_v51  ;;  %v2372_v50 = vsel %vm7238_vm13, %v4466_v36, %v4477_v19  ;;  %v2369_v8 = vsel %vm7240_vm9, %v4457_v34, %v4476_v38  ;;  %vm7242_vm10 = vmmov %vm7232_vm7 }
 0x594   : > { %v6453_v17 = vpop.permute.xlu1 %4479  ;;  %v6455_v7 = vpack.c.bf16 %v2373_v31, %v2367_v29  ;;  %v2368_v2 = vsel %vm7242_vm10, %v4456_v27, %v4457_v34  ;;  %vm7243_vm13 = vmmov %vm7232_vm7 }
 0x595   : > { %v4482_v40 = vunpack.i.h.bf16 %v6453_v17  ;;  %v4481_v62 = vunpack.i.l.bf16 %v6453_v17  ;;  %v6476_v9 = vpack.c.bf16 %v2374_v55, %v2368_v2  ;;  %v6478_v52 = vpop.permute.xlu0 %4499  ;;  %vm7245_vm9 = vmmov %vm7232_vm7 }
 0x596   : > { %2610 = vmatprep.subr.bf16.mxu0 %v6455_v7  ;;  %v4502_v63 = vunpack.i.h.bf16 %v6478_v52  ;;  %v4501_v23 = vunpack.i.l.bf16 %v6478_v52  ;;  %vm7247_vm10 = vmmov %vm7232_vm7  ;;  %v7268_v52 = vld [vmem:[#allocation25_spill] sm:$0xff] }
 0x597   : > { %v2366_v0 = vsel %vm7239_vm15, %v4482_v40, %v4472_v3  ;;  %v2375_v28 = vsel %vm7241_vm14, %v4462_v26, %v4481_v62  ;;  %vm7244_vm15 = vmmov %vm7232_vm7 }
 0x598   : > { %v6472_v35 = vpack.c.bf16 %v2372_v50, %v2366_v0  ;;  %v4485_v37 = vpop.permute.xlu1 %4484  ;;  %v6474_v13 = vpack.c.bf16 %v2375_v28, %v2369_v8  ;;  %vm7246_vm14 = vmmov %vm7232_vm7  ;;  %v2354_v36 = vsel %vm7232_vm7, %v4502_v63, %v4467_v32 }
 0x599   : > { %v4487_v39 = vunpack.i.h.bf16 %v4485_v37  ;;  %v4486_v43 = vunpack.i.l.bf16 %v4485_v37  ;;  %v4505_v50 = vpop.permute.xlu0 %4504  ;;  %v2446_v37 = vld [vmem:[%s379_s26] sm:$0xf] }
 0x59a   : > { %2611 = vmatpush1.bf16.msra.mxu0 %v6472_v35  ;;  %2651 = vmatprep.subr.bf16.mxu1 %v6474_v13  ;;  %v4507_v8 = vunpack.i.h.bf16 %v4505_v50  ;;  %v4506_v28 = vunpack.i.l.bf16 %v4505_v50 }
 0x59b   : > { %2652 = vmatpush1.bf16.msra.mxu1 %v6476_v9  ;;  %v2356_v59 = vsel %vm7232_vm7, %v4486_v43, %v4487_v39  ;;  %v2355_v3 = vsel %vm7243_vm13, %v4467_v32, %v4486_v43  ;;  %v2357_v19 = vsel %vm7246_vm14, %v4487_v39, %v4491_v60  ;;  %vm7248_vm13 = vmmov %vm7232_vm7  ;;  %vm2586_vm14 = vcmask 982016  }
 0x59c   : > { %v4495_v18 = vpop.permute.xlu1 %4494 }
 0x59d   : > { %v4497_v22 = vunpack.i.h.bf16 %v4495_v18  ;;  %v4496_v58 = vunpack.i.l.bf16 %v4495_v18  ;;  %v4515_v2 = vpop.permute.xlu0 %4514 }
 0x59e   : > { %v4517_v63 = vunpack.i.h.bf16 %v4515_v2 }
 0x59f   : > { %v2362_v27 = vsel %vm7244_vm15, %v4496_v58, %v4497_v22  ;;  %v2361_v51 = vsel %vm7245_vm9, %v4492_v25, %v4496_v58  ;;  %v2363_v26 = vsel %vm7247_vm10, %v4497_v22, %v4501_v23  ;;  %vm7249_vm15 = vmmov %vm7232_vm7  ;;  %v4516_v22 = vunpack.i.l.bf16 %v4515_v2 }
 0x5a0   : > { %v6497_v44 = vpack.c.bf16 %v2362_v27, %v2356_v59  ;;  %v2299_v29 = vpop.permute.xlu1 %2298  ;;  %v6499_v31 = vpack.c.bf16 %v2361_v51, %v2355_v3  ;;  %v6501_v34 = vpack.c.bf16 %v2363_v26, %v2357_v19  ;;  %v6531_v39 = vsel %vm7249_vm15, %v4471_v53, %v4506_v28  ;;  %vm7250_vm9 = vmmov %vm7232_vm7  ;;  %v7251_v51 = vld [vmem:[#allocation20_spill] sm:$0xff] }
 0x5a1   : > { %v2360_v40 = vsel %vm7248_vm13, %v2299_v29, %v4492_v25  ;;  %v6534_v43 = vsel %vm7250_vm9, %v4506_v28, %v4507_v8  ;;  %v2447_v58 = vpack.c.bf16 %v2446_v37, %v2446_v37  ;;  %v2584_v59 = vpack.c.bf16 %v6531_v39, %v6531_v39  ;;  %vm7252_vm10 = vmmov %vm7232_vm7 }
 0x5a2   : > { %v6505_v55 = vpack.c.bf16 %v2360_v40, %v2354_v36  ;;  %2612 = vmatprep.subr.bf16.mxu0 %v6499_v31  ;;  %2653 = vmatprep.subr.bf16.mxu1 %v6501_v34  ;;  %v2585_v30 = vpack.c.bf16 %v6534_v43, %v6534_v43  ;;  %v2377_v36 = vsel %vm7232_vm7, %v4516_v22, %v4517_v63  ;;  %vm7253_vm13 = vmmov %vm7232_vm7  ;;  %v7255_v28 = vmov 0   ;;  %v7266_v63 = vld [vmem:[#allocation43_spill] sm:$0xff] }
 0x5a3   : > { %2654 = vmatpush1.bf16.msra.mxu1 %v6497_v44  ;;  %v4525_v53 = vpop.permute.xlu0 %4524  ;;  %v2603_v50 = vsel %vm705_vm1, %v2584_v59, 0  ;;  %vm7254_vm15 = vmmov %vm7232_vm7 }
 0x5a4   : > { %2613 = vmatpush1.bf16.msra.mxu0 %v6505_v55  ;;  %2655 = vmatprep.subr.bf16.mxu1 %v6006_v49  ;;  %v4510_v0 = vpop.permute.xlu1 %4509  ;;  %v4527_v26 = vunpack.i.h.bf16 %v4525_v53  ;;  %v4526_v29 = vunpack.i.l.bf16 %v4525_v53  ;;  %vm7256_vm9 = vmmov %vm7232_vm7  ;;  %v7271_v53 = vld [vmem:[#allocation28_spill] sm:$0xff] }
 0x5a5   : > { %2614 = vmatprep.subr.bf16.mxu0 %v5961_v54  ;;  %v4512_v32 = vunpack.i.h.bf16 %v4510_v0  ;;  %v4511_v25 = vunpack.i.l.bf16 %v4510_v0  ;;  %v2376_v2 = vsel %vm7256_vm9, %v4481_v62, %v4516_v22  ;;  %v7267_v22 = vld [vmem:[#allocation44_spill] sm:$0xff] }
 0x5a7   : > { %2656 = vmatpush1.bf16.msra.mxu1 %v6008_v5  ;;  %v2371_v19 = vsel %vm7252_vm10, %v4511_v25, %v4512_v32  ;;  %v2370_v40 = vsel %vm7253_vm13, %v4476_v38, %v4511_v25  ;;  %vm7258_vm10 = vmmov %vm7232_vm7  ;;  %v7262_v25 = vld [vmem:[#allocation35_spill] sm:$0xff] }
 0x5a8   : > { %2615 = vmatpush1.bf16.msra.mxu0 %v5963_v15  ;;  %2657 = vmatprep.subr.bf16.mxu1 %v6034_v33  ;;  %v4520_v18 = vpop.permute.xlu1 %4519  ;;  %v6554_v0 = vpack.c.bf16 %v2377_v36, %v2371_v19  ;;  %v6562_v1 = vpack.c.bf16 %v2376_v2, %v2370_v40  ;;  %v2365_v38 = vsel %vm7258_vm10, %v4526_v29, %v4527_v26  ;;  %vm7260_vm13 = vmmov %vm7232_vm7 }
 0x5a9   : > { %2616 = vmatprep.subr.bf16.mxu0 %v5981_v10  ;;  %v4522_v3 = vunpack.i.h.bf16 %v4520_v18  ;;  %v4521_v27 = vunpack.i.l.bf16 %v4520_v18  ;;  %v2364_v17 = vsel %vm7260_vm13, %v4501_v23, %v4526_v29  ;;  %v7263_v18 = vld [vmem:[#allocation36_spill] sm:$0xff]  ;;  %v7269_v23 = vld [vmem:[#allocation26_spill] sm:$0xff] }
 0x5aa   : > { %7257 = vst [vmem:[#allocation20_spill] sm:$0xff] %v6562_v1 }
 0x5ab   : > { %2658 = vmatpush1.bf16.msra.mxu1 %v6037_v45  ;;  %v2359_v8 = vsel %vm7254_vm15, %v4521_v27, %v4522_v3  ;;  %v2358_v37 = vsel %vm7232_vm7, %v4491_v60, %v4521_v27  ;;  %v7265_v60 = vld [vmem:[#allocation42_spill] sm:$0xff] }
 0x5ac   : > { %2617 = vmatpush1.bf16.msra.mxu0 %v5983_v12  ;;  %2659 = vmatprep.subr.bf16.mxu1 %v6051_v61  ;;  %v6568_v32 = vpack.c.bf16 %v2365_v38, %v2359_v8  ;;  %v6575_v62 = vpack.c.bf16 %v2364_v17, %v2358_v37  ;;  %v7272_v17 = vld [vmem:[#allocation31_spill] sm:$0xff] }
 0x5ad   : > { %2618 = vmatprep.subr.bf16.mxu0 %v5994_v24 }
 0x5ae   : > { %7259 = vst [vmem:[#allocation45_spill] sm:$0xff] %v6568_v32  ;;  %7261 = vst [vmem:[#allocation46_spill] sm:$0xff] %v6575_v62 }
 0x5af   : > { %2660 = vmatpush1.bf16.msra.mxu1 %v6056_v56 }
 0x5b0   : > { %2619 = vmatpush1.bf16.msra.mxu0 %v5997_v21  ;;  %2661 = vmatprep.subr.bf16.mxu1 %v5577_v47 }
 0x5b1   : > { %2620 = vmatprep.subr.bf16.mxu0 %v5526_v14 }
 0x5b3   : > { %2662 = vmatpush1.bf16.msra.mxu1 %v5579_v48 }
 0x5b4   : > { %2621 = vmatpush1.bf16.msra.mxu0 %v5532_v4  ;;  %2663 = vmatprep.subr.bf16.mxu1 %v5592_v57 }
 0x5b5   : > { %2622 = vmatprep.subr.bf16.mxu0 %v5544_v16  ;;  %v2740_v59 = vpop.permute.xlu1 %2739 }
 0x5b7   : > { %2664 = vmatpush1.bf16.msra.mxu1 %v5587_v41  ;;  %v7278_v41 = vld [vmem:[#allocation30_spill] sm:$0xff] }
 0x5b8   : > { %2623 = vmatpush1.bf16.msra.mxu0 %v7251_v51 }
 0x5b9   : > { %3823 = vmatprep.subr.msk.bf16.mxu0 %vm705_vm1, %v2585_v30  ;;  %v7270_v30 = vld [vmem:[#allocation27_spill] sm:$0xff] }
 0x5ba   : > { %3822 = vmatmul.mubr.msk.bf16.vlgmr.msra.gmra.mxu1 %vm2586_vm14, %v2447_v58 }
 0x5bb   : > { %3820 = vmatmul.mubr.msk.bf16.vlgmr.msra.gmra.mxu0 %vm2586_vm14, %v2447_v58 }
 0x5bc   : > { %2691 = vmatpush1.bf16.msra.mxu0 %v2603_v50  ;;  %2722 = vmatprep.mubr.bf16.mxu0 %v7255_v28 }
 0x5bd   : > { %2692 = vmatprep.subr.bf16.mxu0 %v6554_v0 }
 0x5c0   : > { %2693 = vmatpush1.bf16.msra.mxu0 %v6562_v1 }
 0x5c1   : > { %2694 = vmatprep.subr.bf16.mxu0 %v6568_v32 }
 0x5c4   : > { %2695 = vmatpush1.bf16.msra.mxu0 %v6575_v62 }
 0x5c5   : > { %2696 = vmatprep.subr.bf16.mxu0 %v7262_v25 }
 0x5c8   : > { %2697 = vmatpush1.bf16.msra.mxu0 %v7263_v18 }
 0x5c9   : > { %2698 = vmatprep.subr.bf16.mxu0 %v7264_v11 }
 0x5cc   : > { %2699 = vmatpush1.bf16.msra.mxu0 %v7265_v60 }
 0x5cd   : > { %2700 = vmatprep.subr.bf16.mxu0 %v7266_v63 }
 0x5d0   : > { %2701 = vmatpush1.bf16.msra.mxu0 %v7267_v22  ;;  %v7276_v22 = vld [vmem:[#allocation29_spill] sm:$0xff] }
 0x5d1   : > { %2702 = vmatprep.subr.bf16.mxu0 %v7268_v52  ;;  %vm7277_vm8 = vcmp.eq.s32.totalorder %v7276_v22, 1 }
 0x5d4   : > { %2703 = vmatpush1.bf16.msra.mxu0 %v7269_v23 }
 0x5d5   : > { %2704 = vmatprep.subr.bf16.mxu0 %v7270_v30 }
 0x5d8   : > { %2705 = vmatpush1.bf16.msra.mxu0 %v7271_v53  ;;  %v7274_v53 = vld [vmem:[#allocation32_spill] sm:$0xff] }
 0x5d9   : > { %vm7275_vm13 = vcmp.eq.s32.totalorder %v7274_v53, 1 }
 0x5db   : > { %3824 = vmatmul.mubr.msk.bf16.vlgmr.msra.gmra.mxu0 %vm2586_vm14, %v2447_v58  ;;  %vm7273_vm14 = vcmp.eq.s32.totalorder %v7272_v17, 1 }
 0x67a   : > { %v2683_v3 = vpop.f32.mrf.mxu1 }
 0x67b   : > { %vm2733_vm15 = vcmp.gt.f32.partialorder %v2683_v3, 0.0  ;;  %v2744_v27 = vmul.f32 %v2740_v59, %v2683_v3  ;;  %v2642_v19 = vpop.f32.mrf.mxu0 }
 0x67c   : > { %vm2731_vm9 = vcmp.gt.f32.partialorder %v2642_v19, 0.0  ;;  %v2742_v26 = vmul.f32 %v2740_v59, %v2642_v19  ;;  %v2685_v29 = vpop.f32.mrf.mxu1 }
 0x67d   : > { %v2750_v36 = vsel %vm2733_vm15, %v2683_v3, %v2744_v27  ;;  %vm2734_vm10 = vcmp.gt.f32.partialorder %v2685_v29, 0.0  ;;  %v2745_v40 = vmul.f32 %v2740_v59, %v2685_v29  ;;  %v2644_v50 = vpop.f32.mrf.mxu0  ;;  %vm7279_vm15 = vcmp.eq.s32.totalorder %v7278_v41, 1 }
 0x67e   : > { %v2748_v8 = vsel %vm2731_vm9, %v2642_v19, %v2742_v26  ;;  %vm2732_vm7 = vcmp.gt.f32.partialorder %v2644_v50, 0.0  ;;  %v2743_v28 = vmul.f32 %v2740_v59, %v2644_v50  ;;  %v2687_v2 = vpop.f32.mrf.mxu1  ;;  %v2756_v58 = vsel %vm7273_vm14, %v2750_v36, 0.0 }
 0x67f   : > { %v2751_v38 = vsel %vm2734_vm10, %v2685_v29, %v2745_v40  ;;  %v2646_v37 = vpop.f32.mrf.mxu0  ;;  %v2754_v3 = vsel %vm7277_vm8, %v2748_v8, 0.0  ;;  %vm7287_vm10 = vcmask 900096  }
 0x680   : > { %v2757_v30 = vsel %vm7275_vm13, %v2751_v38, 0.0  ;;  %v2749_v23 = vsel %vm2732_vm7, %v2644_v50, %v2743_v28  ;;  %v2688_v52 = vpop.f32.mrf.mxu1  ;;  %v4784_v50 = vcombine.low %v2754_v3, %v2754_v3  ;;  %vm7288_vm7 = vmmov %vm7287_vm10 }
 0x681   : > { %v6595_v27 = vcombine.low %v2756_v58, %v2757_v30  ;;  %v2755_v19 = vsel %vm7279_vm15, %v2749_v23, 0.0  ;;  %v2647_v26 = vpop.f32.mrf.mxu0  ;;  %v4785_v28 = vcombine.low %v2757_v30, %v2757_v30  ;;  %vm7289_vm14 = vmmov %vm7288_vm7 }
 0x682   : > { %v2766_v2 = vcombine.low %v2754_v3, %v2755_v19  ;;  %v4783_v23 = vcombine.low %v2755_v19, %v2755_v19  ;;  %v4786_v26 = vcombine.low %v2756_v58, %v2756_v58 }
 0x683   : > { %2773 = vst [vmem:[#allocation2 + $0xc] sm:$0xff] %v6595_v27  ;;  %v4573_v19 = vpack.i.bf16 %v4785_v28, %v6595_v27 }
 0x684   : > { %2772 = vst [vmem:[#allocation2 + $0x4] sm:$0xff] %v2766_v2  ;;  %v4538_v40 = vpack.i.bf16 %v4783_v23, %v2766_v2  ;;  %v4543_v8 = vpack.i.bf16 %v2766_v2, %v4784_v50 }
 0x68b   : > { %v6600_v29 = vld [vmem:[#allocation2] sm:$0xff]  ;;  %v6602_v36 = vld [vmem:[#allocation2 + $0x8] sm:$0xff] }
 0x68c   : > { %v2796_v52 = vcombine.low %v6600_v29, %v6600_v29  ;;  %v2797_v22 = vcombine.low %v6602_v36, %v6602_v36  ;;  %v6619_v38 = vcombine.high %v6600_v29, %v6600_v29 }
 0x68e   : > { %v4533_v53 = vpack.i.bf16 %v2796_v52, %v6602_v36  ;;  %v4528_v41 = vpack.i.bf16 %v2797_v22, %v6600_v29  ;;  %v4553_v30 = vpack.i.bf16 %v6602_v36, %v6619_v38  ;;  %v2785_v22 = vld [vmem:[#allocation2 + $0x1c] sm:$0xf] }
 0x68f   : > { %v6633_v58 = vcombine.low %v2785_v22, %v2785_v22 }
 0x690   : > { %4534 = vrot.lane.b32.xlu1 %v4533_v53, %s4982_s21  ;;  %4529 = vrot.lane.b32.xlu0 %v4528_v41, %s4982_s21 }
 0x694   : > { %3007 = vrot.lane.b32.xlu1 %v6595_v27, %s4977_s19  ;;  %4539 = vrot.lane.b32.xlu0 %v4538_v40, %s4980_s20 }
 0x698   : > { %4559 = vrot.lane.b32.xlu1 %v4533_v53, %s4984_s23  ;;  %4544 = vrot.lane.b32.xlu0 %v4543_v8, %s4981_s25 }
 0x69b   : > { %v2724_v37 = vpop.f32.mrf.mxu0 }
 0x69c   : > { %vm2735_vm8 = vcmp.gt.f32.partialorder %v2724_v37, 0.0  ;;  %v2746_v17 = vmul.f32 %v2740_v59, %v2724_v37  ;;  %2891 = vrot.lane.b32.xlu1 %v6595_v27, %s4978_s13  ;;  %4549 = vrot.lane.b32.xlu0 %v4538_v40, %s4977_s19 }
 0x69d   : > { %v2726_v3 = vpop.f32.mrf.mxu0 }
 0x69e   : > { %v2752_v2 = vsel %vm2735_vm8, %v2724_v37, %v2746_v17  ;;  %vm2736_vm9 = vcmp.gt.f32.partialorder %v2726_v3, 0.0  ;;  %v2747_v52 = vmul.f32 %v2740_v59, %v2726_v3  ;;  %v4578_v17 = vpack.i.bf16 %v6595_v27, %v4786_v26 }
 0x69f   : > { %v2728_v53 = vpop.f32.mrf.mxu0  ;;  %v2758_v63 = vsel %vm1186_vm12, %v2752_v2, 0.0 }
 0x6a0   : > { %v2753_v23 = vsel %vm2736_vm9, %v2726_v3, %v2747_v52  ;;  %4574 = vrot.lane.b32.xlu1 %v4573_v19, %s4980_s20  ;;  %4554 = vrot.lane.b32.xlu0 %v4553_v30, %s4983_s10  ;;  %v6640_v3 = vcombine.high %v6602_v36, %v6602_v36  ;;  %v6645_v19 = vcombine.low %v2758_v63, %v2758_v63  ;;  %vm7302_vm9 = vmmov %vm7288_vm7 }
 0x6a1   : > { %v2759_v60 = vsel %vm1187_vm11, %v2753_v23, 0.0  ;;  %v2729_v37 = vpop.f32.mrf.mxu0  ;;  %vm7285_vm11 = vcmask 1031168  }
 0x6a2   : > { %v6635_v59 = vcombine.low %v2758_v63, %v2759_v60  ;;  %v4583_v2 = vpack.i.bf16 %v6600_v29, %v6640_v3  ;;  %v4788_v50 = vcombine.low %v2759_v60, %v2759_v60  ;;  %vm7286_vm12 = vmmov %vm7285_vm11 }
 0x6a3   : > { %vm7291_vm13 = vmmov %vm7285_vm11 }
 0x6a4   : > { %2774 = vst [vmem:[#allocation2 + $0x14] sm:$0xff] %v6635_v59  ;;  %4579 = vrot.lane.b32.xlu1 %v4578_v17, %s4981_s25  ;;  %4564 = vrot.lane.b32.xlu0 %v4538_v40, %s4978_s13  ;;  %v4608_v37 = vpack.i.bf16 %v6635_v59, %v6645_v19 }
 0x6a8   : > { %4569 = vrot.lane.b32.xlu0 %v4543_v8, %s4979_s17  ;;  %4584 = vrot.lane.b32.xlu1 %v4583_v2, %s4983_s10  ;;  %v4598_v8 = vpack.i.bf16 %v6635_v59, %v4785_v28 }
 0x6ab   : > { %v6655_v30 = vld [vmem:[#allocation2 + $0x10] sm:$0xff]  ;;  %v6657_v53 = vld [vmem:[#allocation2 + $0x18] sm:$0xf] }
 0x6ac   : > { %4589 = vrot.lane.b32.xlu0 %v4528_v41, %s4984_s23  ;;  %2923 = vrot.lane.b32.xlu1 %v4786_v26, %s4979_s17  ;;  %v2798_v63 = vcombine.low %v6655_v30, %v6655_v30  ;;  %v2799_v23 = vcombine.low %v6657_v53, %v6657_v53  ;;  %v4603_v41 = vpack.i.bf16 %v4788_v50, %v6635_v59 }
 0x6ad   : > { %v4613_v26 = vpack.i.bf16 %v2785_v22, %v4788_v50 }
 0x6ae   : > { %v4593_v40 = vpack.i.bf16 %v6655_v30, %v2798_v63 }
 0x6b0   : > { %4594 = vrot.lane.b32.xlu0 %v4593_v40, %s4982_s21  ;;  %2812 = vrot.lane.b32.xlu1 %v2799_v23, %s4982_s21  ;;  %s3833_s21 = smul.u32 24, %s5211_s22 }
 0x6b4   : > { %4599 = vrot.lane.b32.xlu0 %v4598_v8, %s4977_s19  ;;  %2961 = vrot.lane.b32.xlu1 %v2785_v22, %s4980_s20 }
 0x6b8   : > { %4604 = vrot.lane.b32.xlu0 %v4603_v41, %s4980_s20  ;;  %2988 = vrot.lane.b32.xlu1 %v6633_v58, %s4981_s25 }
 0x6bc   : > { %4609 = vrot.lane.b32.xlu0 %v4608_v37, %s4981_s25  ;;  %4614 = vrot.lane.b32.xlu1 %v4613_v26, %s4977_s19 }
 0x702   : > { %v6679_v60 = vpop.permute.xlu1 %4534  ;;  %v4530_v28 = vpop.permute.xlu0 %4529 }
 0x703   : > { %v4537_v17 = vunpack.i.h.bf16 %v6679_v60  ;;  %v7133_v2 = vunpack.i.l.bf16 %v6679_v60  ;;  %v4532_v63 = vunpack.i.h.bf16 %v4530_v28  ;;  %v4531_v41 = vunpack.i.l.bf16 %v4530_v28 }
 0x705   : > { %v2816_v22 = vsel %vm481_vm6, %v4532_v63, %v7133_v2  ;;  %v2815_v52 = vsel %vm481_vm6, %v4531_v41, %v4532_v63  ;;  %v2814_v57 = vsel %vm481_vm6, %v4537_v17, %v4531_v41  ;;  %v6699_v63 = vcombine.high %v6655_v30, %v6655_v30 }
 0x706   : > { %v6688_v37 = vpop.permute.xlu1 %3007  ;;  %v4540_v26 = vpop.permute.xlu0 %4539  ;;  %v3030_v48 = vsel %vm705_vm1, %v6600_v29, %v2814_v57  ;;  %v3031_v11 = vsel %vm705_vm1, %v6619_v38, %v2815_v52  ;;  %v3032_v28 = vsel %vm705_vm1, %v6602_v36, %v2816_v22 }
 0x707   : > { %3100 = vrot.lane.b32.xlu1 %v3030_v48, %s4985_s16  ;;  %v4618_v47 = vpack.i.bf16 %v3032_v28, %v3031_v11  ;;  %v4623_v29 = vpack.i.bf16 %v6699_v63, %v6655_v30  ;;  %v4541_v25 = vunpack.i.l.bf16 %v4540_v26 }
 0x709   : > { %4619 = vrot.lane.b32.xlu0 %v4618_v47, %s4985_s16 }
 0x70a   : > { %v6702_v17 = vpop.permute.xlu1 %4559  ;;  %v4545_v41 = vpop.permute.xlu0 %4544 }
 0x70b   : > { %2839 = vrot.lane.b32.xlu1 %v6657_v53, %s4983_s10  ;;  %v4547_v28 = vunpack.i.h.bf16 %v4545_v41 }
 0x70d   : > { %4624 = vrot.lane.b32.xlu0 %v4623_v29, %s4983_s10  ;;  %v4546_v29 = vunpack.i.l.bf16 %v4545_v41  ;;  %s7005_s10 = scalar_lea.vmem [#allocation11], %s3833_s21 }
 0x70e   : > { %v6709_v36 = vpop.permute.xlu1 %2891  ;;  %v4550_v48 = vpop.permute.xlu0 %4549 }
 0x70f   : > { %v4552_v11 = vunpack.i.h.bf16 %v4550_v48  ;;  %v4551_v38 = vunpack.i.l.bf16 %v4550_v48  ;;  %2866 = vrot.lane.b32.xlu1 %v2799_v23, %s4984_s23  ;;  %v3051_v61 = vsel %vm705_vm1, %v4541_v25, %v4546_v29 }
 0x711   : > { %4629 = vrot.lane.b32.xlu0 %v4593_v40, %s4984_s23  ;;  %v3018_v52 = vsel %vm691_vm0, %v4552_v11, %v6688_v37  ;;  %v3017_v22 = vsel %vm691_vm0, %v4551_v38, %v4552_v11  ;;  %v7282_v11 = vpack.i.bf16 %v6633_v58, %v6635_v59  ;;  %v2990_v40 = vsel %vm663_vm5, %v4546_v29, %v4547_v28  ;;  %s3645_s23 = sshll.u32 %s7005_s10, 4  ;;  %s3646_s23 = int_to_ptr.vmem [resolvable:$true] %s3645_s23 }
 0x712   : > { %v6713_v47 = vpop.permute.xlu1 %4574  ;;  %v4555_v57 = vpop.permute.xlu0 %4554  ;;  %v3060_v48 = vsel %vm705_vm1, %v3018_v52, 1.0  ;;  %v3059_v23 = vsel %vm705_vm1, %v3017_v22, 1.0  ;;  %v7283_v52 = vpack.i.bf16 %v6645_v19, %v6595_v27  ;;  %s4899_s29 = scalar_lea.vmem %s3646_s23, 384  ;;  %p4906_p2 = scmp.lt.s32.totalorder %s3646_s23, %s4904_s18 }
 0x713   : > { %2897 = vrot.lane.b32.xlu1 %v4788_v50, %s4978_s13  ;;  %v4542_v50 = vunpack.i.h.bf16 %v4540_v26  ;;  %v4648_v22 = vpack.i.bf16 %v3060_v48, %v3059_v23  ;;  %v7284_v58 = vunpack.i.l.bf16 %v6713_v47  ;;  %v4556_v48 = vunpack.i.l.bf16 %v4555_v57  ;;  %p4900_p8 = scmp.ne.s32.totalorder %s3646_s23, %s4899_s29  ;;  %p4907_p4 = scmp.lt.s32.totalorder %s4905_s24, %s4899_s29 }
 0x714   : > { %v4562_v23 = vunpack.i.h.bf16 %v6702_v17 }
 0x715   : > { %4634 = vrot.lane.b32.xlu0 %v4598_v8, %s4978_s13  ;;  %v3058_v8 = vsel %vm705_vm1, %v4551_v38, 1.0  ;;  %v2964_v59 = vsel %vm635_vm4, %v4542_v50, %v7284_v58  ;;  %v2963_v19 = vsel %vm635_vm4, %v4541_v25, %v4542_v50  ;;  %p4901_p5 = pnand %p4900_p8, %p7352_p11  ;;  %p4908_p9 = por %p4907_p4, %p4906_p2 }
 0x716   : > { %v6723_v2 = vpop.permute.xlu1 %4579  ;;  %v4565_v18 = vpop.permute.xlu0 %4564  ;;  %v4653_v62 = vpack.i.bf16 %v3058_v8, %v3051_v61  ;;  %v3052_v58 = vsel %vm705_vm1, %v2963_v19, %v2990_v40  ;;  %v7140_v61 = vunpack.i.l.bf16 %v6702_v17 }
 0x717   : > { %v7137_v56 = vunpack.i.l.bf16 %v6723_v2  ;;  %4644 = vrot.lane.b32.xlu1 %v7282_v11, %s4979_s17  ;;  %v4567_v26 = vunpack.i.h.bf16 %v4565_v18  ;;  %v4566_v29 = vunpack.i.l.bf16 %v4565_v18  ;;  %p4902_p7 = pneg %p4901_p5 }
 0x719   : > { %v2991_v41 = vsel %vm663_vm5, %v4547_v28, %v7137_v56  ;;  %4639 = vrot.lane.b32.xlu0 %v7283_v52, %s4979_s17  ;;  %v4557_v28 = vunpack.i.h.bf16 %v4555_v57  ;;  %s439_s17 = scalar_lea.vmem %s7059_s5, %s3832_s3  ;;  %p4909_p1 = pnand %p4908_p9, %p4902_p7 }
 0x71a   : > { %v4570_v38 = vpop.permute.xlu0 %4569  ;;  %v6743_v11 = vpop.permute.xlu1 %4584  ;;  %v3053_v27 = vsel %vm705_vm1, %v2964_v59, %v2991_v41  ;;  %v2900_v41 = vsel %vm569_vm2, %v4567_v26, %v6709_v36 }
 0x71b   : > { %v4572_v56 = vunpack.i.h.bf16 %v4570_v38  ;;  %v4571_v45 = vunpack.i.l.bf16 %v4570_v38  ;;  %4649 = vrot.lane.b32.xlu1 %v4648_v22, %s4985_s16  ;;  %v4587_v52 = vunpack.i.h.bf16 %v6743_v11  ;;  %v4663_v57 = vpack.i.bf16 %v3053_v27, %v3052_v58 }
 0x71c   : > { %v2842_v40 = vsel %vm7285_vm11, %v4556_v48, %v4557_v28  ;;  %v2899_v38 = vsel %vm569_vm2, %v4566_v29, %v4567_v26 }
 0x71d   : > { %4654 = vrot.lane.b32.xlu0 %v4653_v62, %s4985_s16  ;;  %v2933_v18 = vsel %vm604_vm3, %v4571_v45, %v4572_v56  ;;  %v2841_v8 = vsel %vm7286_vm12, %v4587_v52, %v4556_v48  ;;  %vm7304_vm12 = vmmov %vm7288_vm7 }
 0x71e   : > { %v4590_v22 = vpop.permute.xlu0 %4589  ;;  %v6756_v25 = vpop.permute.xlu1 %2923 }
 0x71f   : > { %v4592_v50 = vunpack.i.h.bf16 %v4590_v22  ;;  %v4591_v59 = vunpack.i.l.bf16 %v4590_v22  ;;  %v2934_v62 = vsel %vm604_vm3, %v4572_v56, %v6756_v25  ;;  %v3044_v56 = vsel %vm705_vm1, %v4566_v29, %v4571_v45 }
 0x720   : > { %v3046_v19 = vsel %vm705_vm1, %v2900_v41, %v2934_v62  ;;  %v7290_v22 = vunpack.i.l.bf16 %v6743_v11  ;;  %v3045_v41 = vsel %vm705_vm1, %v2899_v38, %v2933_v18  ;;  %v7292_v45 = vunpack.i.l.bf16 %v6679_v60 }
 0x721   : > { %v2870_v32 = vsel %vm7287_vm10, %v4592_v50, %v7140_v61  ;;  %v2868_v27 = vsel %vm7288_vm7, %v4562_v23, %v4591_v59  ;;  %v2869_v58 = vsel %vm7289_vm14, %v4591_v59, %v4592_v50  ;;  %4664 = vrot.lane.b32.xlu0 %v4663_v57, %s4985_s16  ;;  %v4673_v61 = vpack.i.bf16 %v3046_v19, %v3045_v41 }
 0x722   : > { %v2843_v26 = vsel %vm7291_vm13, %v4557_v28, %v7290_v22  ;;  %v4595_v48 = vpop.permute.xlu0 %4594  ;;  %v2813_v52 = vpop.permute.xlu1 %2812  ;;  %v3037_v62 = vsel %vm705_vm1, %v2841_v8, %v2868_v27  ;;  %v3038_v50 = vsel %vm705_vm1, %v2842_v40, %v2869_v58  ;;  %v6794_v40 = vld [vmem:[%s439_s17] sm:$0xff] }
 0x723   : > { %v4597_v33 = vunpack.i.h.bf16 %v4595_v48  ;;  %v4596_v1 = vunpack.i.l.bf16 %v4595_v48  ;;  %v4658_v23 = vpack.i.bf16 %v3044_v56, %v3037_v62  ;;  %v3039_v57 = vsel %vm705_vm1, %v2843_v26, %v2870_v32 }
 0x724   : > { %v4668_v38 = vpack.i.bf16 %v3039_v57, %v3038_v50  ;;  %v3263_v27 = vcombine.high %v6794_v40, %v6794_v40  ;;  %v3036_v58 = vsel %vm705_vm1, %v6657_v53, %v2813_v52 }
 0x725   : > { %v2817_v29 = vsel %vm481_vm6, %v7292_v45, %v4596_v1  ;;  %v2818_v28 = vsel %vm481_vm6, %v4596_v1, %v4597_v33  ;;  %v2819_v18 = vsel %vm481_vm6, %v4597_v33, %v2813_v52  ;;  %4674 = vrot.lane.b32.xlu0 %v4673_v61, %s4985_s16  ;;  %4659 = vrot.lane.b32.xlu1 %v4658_v23, %s4985_s16  ;;  %vm3447_vm6 = vcmask 261120  }
 0x726   : > { %v4600_v8 = vpop.permute.xlu0 %4599  ;;  %v2962_v59 = vpop.permute.xlu1 %2961  ;;  %v3033_v32 = vsel %vm705_vm1, %v6640_v3, %v2817_v29  ;;  %v3034_v60 = vsel %vm705_vm1, %v6655_v30, %v2818_v28  ;;  %v3035_v19 = vsel %vm705_vm1, %v6699_v63, %v2819_v18  ;;  %v6809_v41 = vpack.c.bf16 %v3263_v27, %v3263_v27 }
 0x727   : > { %v4602_v1 = vunpack.i.h.bf16 %v4600_v8  ;;  %v4601_v33 = vunpack.i.l.bf16 %v4600_v8  ;;  %v4678_v61 = vpack.i.bf16 %v3034_v60, %v3033_v32  ;;  %v4683_v48 = vpack.i.bf16 %v3036_v58, %v3035_v19 }
 0x728   : > { %v4577_v52 = vunpack.i.h.bf16 %v6713_v47  ;;  %3825 = vmatprep.mubr.msk.bf16.mxu1 %vm3447_vm6, %v6809_v41  ;;  %3826 = vmatprep.mubr.msk.bf16.mxu0 %vm3447_vm6, %v6809_v41  ;;  %v7293_v8 = vunpack.i.l.bf16 %v6713_v47  ;;  %v7294_v60 = vunpack.i.l.bf16 %v6723_v2 }
 0x729   : > { %v3019_v3 = vsel %vm691_vm0, %v6688_v37, %v4601_v33  ;;  %v3020_v30 = vsel %vm691_vm0, %v4601_v33, %v4602_v1  ;;  %4669 = vrot.lane.b32.xlu1 %v4668_v38, %s4985_s16  ;;  %4679 = vrot.lane.b32.xlu0 %v4678_v61, %s4985_s16  ;;  %v4582_v37 = vunpack.i.h.bf16 %v6723_v2 }
 0x72a   : > { %v3061_v56 = vsel %vm705_vm1, %v3019_v3, 1.0  ;;  %v3062_v22 = vsel %vm705_vm1, %v3020_v30, 1.0  ;;  %v4605_v63 = vpop.permute.xlu0 %4604  ;;  %v2989_v26 = vpop.permute.xlu1 %2988  ;;  %v2965_v32 = vsel %vm635_vm4, %v7293_v8, %v4577_v52 }
 0x72b   : > { %v4688_v53 = vpack.i.bf16 %v3062_v22, %v3061_v56  ;;  %v4607_v62 = vunpack.i.h.bf16 %v4605_v63  ;;  %v4606_v23 = vunpack.i.l.bf16 %v4605_v63  ;;  %v2992_v33 = vsel %vm663_vm5, %v7294_v60, %v4582_v37 }
 0x72c   : > { %v3054_v63 = vsel %vm705_vm1, %v2965_v32, %v2992_v33 }
 0x72d   : > { %4684 = vrot.lane.b32.xlu1 %v4683_v48, %s4985_s16  ;;  %4689 = vrot.lane.b32.xlu0 %v4688_v53, %s4985_s16  ;;  %v2967_v38 = vsel %vm635_vm4, %v4606_v23, %v4607_v62  ;;  %v2968_v61 = vsel %vm635_vm4, %v4607_v62, %v2962_v59  ;;  %v2966_v47 = vsel %vm635_vm4, %v4577_v52, %v4606_v23 }
 0x72e   : > { %v4610_v50 = vpop.permute.xlu0 %4609  ;;  %v4615_v57 = vpop.permute.xlu1 %4614 }
 0x72f   : > { %v4612_v45 = vunpack.i.h.bf16 %v4610_v50  ;;  %v4611_v29 = vunpack.i.l.bf16 %v4610_v50  ;;  %v4617_v28 = vunpack.i.h.bf16 %v4615_v57  ;;  %v4616_v18 = vunpack.i.l.bf16 %v4615_v57 }
 0x731   : > { %v2993_v19 = vsel %vm663_vm5, %v4582_v37, %v4611_v29  ;;  %v2994_v27 = vsel %vm663_vm5, %v4611_v29, %v4612_v45  ;;  %v2995_v58 = vsel %vm663_vm5, %v4612_v45, %v2989_v26  ;;  %v3021_v3 = vsel %vm691_vm0, %v4602_v1, %v4616_v18  ;;  %vm7298_vm5 = vmmov %vm7285_vm11 }
 0x732   : > { %v3022_v30 = vsel %vm691_vm0, %v4616_v18, %v4617_v28  ;;  %v3056_v2 = vsel %vm705_vm1, %v2967_v38, %v2994_v27  ;;  %v3057_v56 = vsel %vm705_vm1, %v2968_v61, %v2995_v58  ;;  %v3055_v59 = vsel %vm705_vm1, %v2966_v47, %v2993_v19  ;;  %vm7299_vm15 = vmmov %vm7298_vm5 }
 0x733   : > { %v4698_v22 = vpack.i.bf16 %v3057_v56, %v3056_v2  ;;  %v3063_v48 = vsel %vm705_vm1, %v3021_v3, 1.0  ;;  %v3064_v53 = vsel %vm705_vm1, %v3022_v30, 1.0  ;;  %v4693_v26 = vpack.i.bf16 %v3055_v59, %v3054_v63  ;;  %vm7300_vm8 = vmmov %vm7298_vm5 }
 0x734   : > { %v4703_v1 = vpack.i.bf16 %v3064_v53, %v3063_v48  ;;  %vm7295_vm0 = vcmask 154624   ;;  %v7297_v19 = vunpack.i.l.bf16 %v6743_v11  ;;  %vm7303_vm11 = vmmov %vm7288_vm7 }
 0x735   : > { %4699 = vrot.lane.b32.xlu1 %v4698_v22, %s4985_s16  ;;  %4694 = vrot.lane.b32.xlu0 %v4693_v26, %s4985_s16  ;;  %vm7296_vm4 = vmmov %vm7295_vm0 }
 0x736   : > { %vm7308_vm10 = vmmov %vm7295_vm0 }
 0x737   : > { %vm7309_vm7 = vmmov %vm7295_vm0 }
 0x738   : > { %vm7310_vm14 = vmmov %vm7295_vm0 }
 0x739   : > { %4704 = vrot.lane.b32.xlu1 %v4703_v1, %s4985_s16  ;;  %vm7311_vm13 = vmmov %vm7295_vm0 }
 0x779   : > { %v3101_v52 = vpop.permute.xlu1 %3100 }
 0x77b   : > { %v6842_v37 = vpop.permute.xlu0 %4619 }
 0x77c   : > { %v4622_v62 = vunpack.i.h.bf16 %v6842_v37  ;;  %v4621_v23 = vunpack.i.l.bf16 %v6842_v37 }
 0x77d   : > { %v2840_v50 = vpop.permute.xlu1 %2839 }
 0x77e   : > { %v3170_v57 = vsel %vm7295_vm0, %v3101_v52, %v4621_v23  ;;  %v3171_v45 = vsel %vm7296_vm4, %v4621_v23, %v4622_v62  ;;  %vm7312_vm4 = vmmov %vm7295_vm0 }
 0x77f   : > { %v3429_v29 = vpack.c.bf16 %v3170_v57, %v6418_v6  ;;  %v4625_v28 = vpop.permute.xlu0 %4624  ;;  %v3430_v18 = vpack.c.bf16 %v3171_v45, %v6423_v20  ;;  %v7301_v20 = vunpack.i.l.bf16 %v6702_v17 }
 0x780   : > { %v4627_v8 = vunpack.i.h.bf16 %v4625_v28  ;;  %v4626_v32 = vunpack.i.l.bf16 %v4625_v28 }
 0x781   : > { %3451 = vmatprep.subr.bf16.mxu1 %v3430_v18  ;;  %v2867_v60 = vpop.permute.xlu1 %2866 }
 0x782   : > { %3452 = vmatpush1.bf16.msra.mxu1 %v3429_v29  ;;  %v2844_v27 = vsel %vm7298_vm5, %v7297_v19, %v4626_v32  ;;  %v2845_v58 = vsel %vm7299_vm15, %v4626_v32, %v4627_v8  ;;  %v2846_v3 = vsel %vm7300_vm8, %v4627_v8, %v2840_v50  ;;  %vm7313_vm5 = vmmov %vm7295_vm0 }
 0x783   : > { %v4630_v33 = vpop.permute.xlu0 %4629  ;;  %3453 = vmatprep.subr.bf16.mxu1 %v6455_v7  ;;  %v3043_v7 = vsel %vm705_vm1, %v2840_v50, %v2867_v60  ;;  %vm7314_vm15 = vmmov %vm7295_vm0 }
 0x784   : > { %v4632_v38 = vunpack.i.h.bf16 %v4630_v33  ;;  %v4631_v61 = vunpack.i.l.bf16 %v4630_v33  ;;  %vm7315_vm8 = vmmov %vm7295_vm0 }
 0x785   : > { %v2898_v6 = vpop.permute.xlu1 %2897 }
 0x786   : > { %v2871_v47 = vsel %vm7302_vm9, %v7301_v20, %v4631_v61  ;;  %v2872_v30 = vsel %vm7303_vm11, %v4631_v61, %v4632_v38  ;;  %v2873_v2 = vsel %vm7304_vm12, %v4632_v38, %v2867_v60  ;;  %3454 = vmatpush1.bf16.msra.mxu1 %v6472_v35  ;;  %vm7332_vm9 = vmmov %vm7295_vm0 }
 0x787   : > { %v4635_v11 = vpop.permute.xlu0 %4634  ;;  %3455 = vmatprep.subr.bf16.mxu1 %v6499_v31  ;;  %v3042_v56 = vsel %vm705_vm1, %v2846_v3, %v2873_v2  ;;  %v3040_v22 = vsel %vm705_vm1, %v2844_v27, %v2871_v47  ;;  %v3041_v63 = vsel %vm705_vm1, %v2845_v58, %v2872_v30  ;;  %vm7333_vm11 = vmmov %vm7295_vm0 }
 0x788   : > { %v4713_v17 = vpack.i.bf16 %v3043_v7, %v3042_v56  ;;  %v4708_v59 = vpack.i.bf16 %v3041_v63, %v3040_v22  ;;  %v4636_v48 = vunpack.i.l.bf16 %v4635_v11  ;;  %v4637_v26 = vunpack.i.h.bf16 %v4635_v11  ;;  %vm7336_vm12 = vmmov %vm7295_vm0 }
 0x789   : > { %v4645_v53 = vpop.permute.xlu1 %4644 }
 0x78a   : > { %v4647_v1 = vunpack.i.h.bf16 %v4645_v53  ;;  %3456 = vmatpush1.bf16.msra.mxu1 %v6505_v55  ;;  %4714 = vrot.lane.b32.xlu1 %v4713_v17, %s4985_s16  ;;  %v4646_v35 = vunpack.i.l.bf16 %v4645_v53  ;;  %v2901_v50 = vsel %vm569_vm2, %v6709_v36, %v4636_v48  ;;  %v2903_v45 = vsel %vm569_vm2, %v4637_v26, %v2898_v6 }
 0x78b   : > { %4709 = vrot.lane.b32.xlu0 %v4708_v59, %s4985_s16  ;;  %v4640_v31 = vpop.permute.xlu0 %4639  ;;  %3457 = vmatprep.subr.bf16.mxu1 %v5961_v54  ;;  %v2902_v54 = vsel %vm569_vm2, %v4636_v48, %v4637_v26  ;;  %vm7306_vm2 = vmmov %vm7295_vm0 }
 0x78c   : > { %v4642_v52 = vunpack.i.h.bf16 %v4640_v31  ;;  %v4641_v23 = vunpack.i.l.bf16 %v4640_v31  ;;  %v2938_v57 = vsel %vm604_vm3, %v4646_v35, %v4647_v1 }
 0x78d   : > { %v3050_v8 = vsel %vm705_vm1, %v2898_v6, %v2938_v57 }
 0x78e   : > { %v2935_v55 = vsel %vm604_vm3, %v6756_v25, %v4641_v23  ;;  %v2936_v29 = vsel %vm604_vm3, %v4641_v23, %v4642_v52  ;;  %v2937_v28 = vsel %vm604_vm3, %v4642_v52, %v4646_v35  ;;  %3458 = vmatpush1.bf16.msra.mxu1 %v5963_v15  ;;  %v6890_v15 = vpop.permute.xlu1 %4649  ;;  %vm7307_vm3 = vmmov %vm7295_vm0 }
 0x78f   : > { %v4655_v18 = vpop.permute.xlu0 %4654  ;;  %3459 = vmatprep.subr.bf16.mxu1 %v5981_v10  ;;  %v3049_v36 = vsel %vm705_vm1, %v2903_v45, %v2937_v28  ;;  %v3047_v32 = vsel %vm705_vm1, %v2901_v50, %v2935_v55  ;;  %v3048_v25 = vsel %vm705_vm1, %v2902_v54, %v2936_v29  ;;  %v3260_v10 = vld [vmem:[%s7061_s7] sm:$0xf]  ;;  %v4651_v27 = vunpack.i.l.bf16 %v6890_v15  ;;  %vm7305_vm1 = vmmov %vm7295_vm0 }
 0x790   : > { %v4723_v60 = vpack.i.bf16 %v3050_v8, %v3049_v36  ;;  %v4718_v33 = vpack.i.bf16 %v3048_v25, %v3047_v32  ;;  %v4656_v20 = vunpack.i.l.bf16 %v4655_v18  ;;  %v6944_v29 = vpack.c.bf16 %v6794_v40, %v6794_v40  ;;  %v7324_v36 = vld [vmem:[#allocation36_spill] sm:$0xff]  ;;  %v7325_v8 = vld [vmem:[#allocation21_spill] sm:$0xff] }
 0x791   : > { %v7326_v32 = vld [vmem:[#allocation40_spill] sm:$0xff] }
 0x792   : > { %3460 = vmatpush1.bf16.msra.mxu1 %v5983_v12  ;;  %4724 = vrot.lane.b32.xlu1 %v4723_v60, %s4985_s16  ;;  %v4652_v12 = vunpack.i.h.bf16 %v6890_v15 }
 0x793   : > { %4719 = vrot.lane.b32.xlu0 %v4718_v33, %s4985_s16  ;;  %v6893_v38 = vpop.permute.xlu0 %4664  ;;  %3461 = vmatprep.subr.bf16.mxu1 %v5994_v24  ;;  %v4657_v24 = vunpack.i.h.bf16 %v4655_v18  ;;  %v7327_v33 = vld [vmem:[#allocation22_spill] sm:$0xff] }
 0x794   : > { %v4667_v61 = vunpack.i.h.bf16 %v6893_v38  ;;  %v4666_v19 = vunpack.i.l.bf16 %v6893_v38  ;;  %v7338_v38 = vld [vmem:[#allocation26_spill] sm:$0xff] }
 0x795   : > { %v3194_v17 = vsel %vm7308_vm10, %v4657_v24, %v4651_v27  ;;  %v7331_v24 = vld [vmem:[#allocation43_spill] sm:$0xff]  ;;  %vm7344_vm10 = vmmov %vm7295_vm0 }
 0x796   : > { %3462 = vmatpush1.bf16.msra.mxu1 %v5997_v21  ;;  %v3189_v3 = vsel %vm7305_vm1, %v4666_v19, %v4667_v61  ;;  %v3188_v22 = vsel %vm7307_vm3, %v4656_v20, %v4666_v19  ;;  %vm7339_vm1 = vmmov %vm7295_vm0 }
 0x797   : > { %v6904_v58 = vpop.permute.xlu0 %4674  ;;  %3463 = vmatprep.subr.bf16.mxu1 %v5526_v14  ;;  %v4660_v6 = vpop.permute.xlu1 %4659  ;;  %3582 = vperm.xlu0 %4728, %v3260_v10   ;;  %v3195_v14 = vsel %vm7306_vm2, %v4651_v27, %v4652_v12  ;;  %v3441_v52 = vpack.c.bf16 %v3194_v17, %v3188_v22  ;;  %v7328_v10 = vld [vmem:[#allocation42_spill] sm:$0xff]  ;;  %v7337_v22 = vld [vmem:[#allocation25_spill] sm:$0xff]  ;;  %vm7341_vm2 = vmmov %vm7295_vm0 }
 0x798   : > { %v4677_v21 = vunpack.i.h.bf16 %v6904_v58  ;;  %v4676_v47 = vunpack.i.l.bf16 %v6904_v58  ;;  %v3442_v63 = vpack.c.bf16 %v3195_v14, %v3189_v3  ;;  %v4662_v53 = vunpack.i.h.bf16 %v4660_v6  ;;  %vm7342_vm3 = vmmov %vm7295_vm0 }
 0x799   : > { %v4661_v26 = vunpack.i.l.bf16 %v4660_v6  ;;  %v7330_v6 = vld [vmem:[#allocation24_spill] sm:$0xff] }
 0x79a   : > { %3464 = vmatpush1.bf16.msra.mxu1 %v5532_v4 }
 0x79b   : > { %3465 = vmatprep.subr.bf16.mxu1 %v5544_v16  ;;  %v6914_v30 = vpop.permute.xlu1 %4669  ;;  %v4680_v2 = vpop.permute.xlu0 %4679 }
 0x79c   : > { %v4672_v4 = vunpack.i.h.bf16 %v6914_v30  ;;  %v4671_v7 = vunpack.i.l.bf16 %v6914_v30  ;;  %v4682_v11 = vunpack.i.h.bf16 %v4680_v2  ;;  %v4681_v56 = vunpack.i.l.bf16 %v4680_v2 }
 0x79e   : > { %v3172_v16 = vsel %vm7309_vm7, %v4622_v62, %v4681_v56  ;;  %3466 = vmatpush1.bf16.msra.mxu1 %v7251_v51  ;;  %v3173_v59 = vsel %vm7310_vm14, %v4681_v56, %v4682_v11  ;;  %v3177_v48 = vsel %vm7311_vm13, %v4671_v7, %v4672_v4  ;;  %v3183_v51 = vsel %vm7295_vm0, %v4676_v47, %v4677_v21  ;;  %vm7345_vm7 = vmmov %vm7295_vm0 }
 0x79f   : > { %v3431_v1 = vpack.c.bf16 %v3172_v16, %v6430_v42  ;;  %3479 = vmatprep.subr.bf16.mxu1 %v3442_v63  ;;  %v4685_v35 = vpop.permute.xlu1 %4684  ;;  %v3432_v31 = vpack.c.bf16 %v3173_v59, %v6440_v46  ;;  %v3176_v62 = vsel %vm7312_vm4, %v4661_v26, %v4671_v7  ;;  %v3436_v50 = vpack.c.bf16 %v3183_v51, %v3177_v48  ;;  %v7334_v7 = vld [vmem:[#allocation23_spill] sm:$0xff]  ;;  %v7343_v26 = vld [vmem:[#allocation28_spill] sm:$0xff]  ;;  %vm7346_vm14 = vmmov %vm7295_vm0 }
 0x7a0   : > { %v4687_v37 = vunpack.i.h.bf16 %v4685_v35  ;;  %v4686_v23 = vunpack.i.l.bf16 %v4685_v35  ;;  %v3182_v42 = vsel %vm7314_vm15, %v4662_v53, %v4676_v47  ;;  %v7340_v59 = vld [vmem:[#allocation27_spill] sm:$0xff]  ;;  %vm7347_vm13 = vmmov %vm7295_vm0 }
 0x7a1   : > { %3492 = vmatprep.subr.bf16.mxu0 %v3432_v31  ;;  %v3435_v46 = vpack.c.bf16 %v3182_v42, %v3176_v62  ;;  %vm7348_vm4 = vmmov %vm7295_vm0 }
 0x7a2   : > { %3480 = vmatpush2.bf16.msra.mxu1 %v3441_v52  ;;  %3493 = vmatpush1.bf16.msra.mxu0 %v3431_v1  ;;  %v3175_v57 = vsel %vm7313_vm5, %v4686_v23, %v4687_v37  ;;  %v3174_v45 = vsel %vm7315_vm8, %v4682_v11, %v4686_v23  ;;  %v7335_v11 = vld [vmem:[#allocation44_spill] sm:$0xff]  ;;  %vm7349_vm5 = vmmov %vm7295_vm0 }
 0x7a3   : > { %3481 = vmatprep.subr.bf16.mxu1 %v3436_v50  ;;  %3494 = vmatprep.subr.bf16.mxu0 %v6474_v13  ;;  %v3434_v55 = vpack.c.bf16 %v3175_v57, %v6534_v43  ;;  %v3433_v28 = vpack.c.bf16 %v3174_v45, %v6531_v39  ;;  %v7316_v13 = vld [vmem:[#allocation20_spill] sm:$0xff]  ;;  %v7318_v39 = vld [vmem:[#allocation45_spill] sm:$0xff]  ;;  %v7319_v43 = vld [vmem:[#allocation38_spill] sm:$0xff] }
 0x7a4   : > { %vm7350_vm15 = vmmov %vm7295_vm0 }
 0x7a5   : > { %vm7351_vm8 = vmmov %vm7295_vm0 }
 0x7a6   : > { %3482 = vmatpush2.bf16.msra.mxu1 %v3435_v46  ;;  %3495 = vmatpush1.bf16.msra.mxu0 %v6476_v9  ;;  %v4690_v9 = vpop.permute.xlu0 %4689 }
 0x7a7   : > { %3533 = vmatprep.subr.bf16.mxu1 %v3434_v55  ;;  %3496 = vmatprep.subr.bf16.mxu0 %v6501_v34  ;;  %v7317_v34 = vld [vmem:[#allocation37_spill] sm:$0xff]  ;;  %v4700_v54 = vpop.permute.xlu1 %4699  ;;  %v4692_v60 = vunpack.i.h.bf16 %v4690_v9  ;;  %v4691_v25 = vunpack.i.l.bf16 %v4690_v9 }
 0x7a8   : > { %v4702_v63 = vunpack.i.h.bf16 %v4700_v54  ;;  %v4701_v17 = vunpack.i.l.bf16 %v4700_v54 }
 0x7a9   : > { %3484 = vmatmul.mubr.bf16.vlgmr.msra.gmra.mxu1 %v6944_v29  ;;  %v3197_v3 = vsel %vm7332_vm9, %v4691_v25, %v4692_v60  ;;  %v3196_v56 = vsel %vm7336_vm12, %v4652_v12, %v4691_v25 }
 0x7aa   : > { %3497 = vmatpush1.bf16.msra.mxu0 %v6497_v44  ;;  %3534 = vmatpush1.bf16.msra.mxu1 %v3433_v28  ;;  %v7320_v44 = vld [vmem:[#allocation46_spill] sm:$0xff]  ;;  %v4695_v40 = vpop.permute.xlu0 %4694  ;;  %v3193_v48 = vsel %vm7341_vm2, %v4701_v17, %v4702_v63 }
 0x7ab   : > { %3498 = vmatprep.subr.bf16.mxu0 %v6006_v49  ;;  %3535 = vmatprep.subr.bf16.mxu1 %v6554_v0  ;;  %v7321_v49 = vld [vmem:[#allocation39_spill] sm:$0xff]  ;;  %v4696_v18 = vunpack.i.l.bf16 %v4695_v40  ;;  %v4705_v27 = vpop.permute.xlu1 %4704 }
 0x7ac   : > { %3827 = vmatprep.mubr.msk.bf16.mxu1 %vm3447_vm6, %v6809_v41  ;;  %v7322_v0 = vld [vmem:[#allocation35_spill] sm:$0xff]  ;;  %v4697_v41 = vunpack.i.h.bf16 %v4695_v40  ;;  %vm7329_vm6 = vmmov %vm7295_vm0  ;;  %v4707_v2 = vunpack.i.h.bf16 %v4705_v27  ;;  %v4706_v14 = vunpack.i.l.bf16 %v4705_v27 }
 0x7ad   : > { %v3190_v20 = vsel %vm7333_vm11, %v4667_v61, %v4696_v18 }
 0x7ae   : > { %3499 = vmatpush1.bf16.msra.mxu0 %v6008_v5  ;;  %3536 = vmatpush1.bf16.msra.mxu1 %v7316_v13  ;;  %v7323_v5 = vld [vmem:[#allocation41_spill] sm:$0xff]  ;;  %v3191_v19 = vsel %vm7329_vm6, %v4696_v18, %v4697_v41  ;;  %v3443_v16 = vpack.c.bf16 %v3196_v56, %v3190_v20  ;;  %v3199_v61 = vsel %vm7339_vm1, %v4706_v14, %v4707_v2 }
 0x7af   : > { %3500 = vmatprep.subr.bf16.mxu0 %v7317_v34  ;;  %3537 = vmatprep.subr.bf16.mxu1 %v7318_v39  ;;  %v3444_v47 = vpack.c.bf16 %v3197_v3, %v3191_v19  ;;  %v3198_v53 = vsel %vm7342_vm3, %v4692_v60, %v4706_v14  ;;  %v3446_v15 = vpack.c.bf16 %v3199_v61, %v3193_v48  ;;  %v3598_v19 = vld [vmem:[%s5214_s15 + $0xc] sm:$0xff] }
 0x7b0   : > { %v3192_v12 = vsel %vm7344_vm10, %v4697_v41, %v4701_v17 }
 0x7b1   : > { %v3445_v1 = vpack.c.bf16 %v3198_v53, %v3192_v12 }
 0x7b2   : > { %3501 = vmatpush1.bf16.msra.mxu0 %v7319_v43  ;;  %3538 = vmatpush1.bf16.msra.mxu1 %v7320_v44 }
 0x7b3   : > { %3502 = vmatprep.subr.bf16.mxu0 %v7321_v49  ;;  %3539 = vmatprep.subr.bf16.mxu1 %v7322_v0 }
 0x7b6   : > { %3503 = vmatpush1.bf16.msra.mxu0 %v7323_v5  ;;  %3540 = vmatpush1.bf16.msra.mxu1 %v7324_v36 }
 0x7b7   : > { %3504 = vmatprep.subr.bf16.mxu0 %v7325_v8  ;;  %3541 = vmatprep.subr.bf16.mxu1 %v7326_v32 }
 0x7ba   : > { %3505 = vmatpush1.bf16.msra.mxu0 %v7327_v33  ;;  %3542 = vmatpush1.bf16.msra.mxu1 %v7328_v10 }
 0x7bb   : > { %3506 = vmatprep.subr.bf16.mxu0 %v7330_v6  ;;  %3543 = vmatprep.subr.bf16.mxu1 %v7331_v24 }
 0x7be   : > { %3507 = vmatpush1.bf16.msra.mxu0 %v7334_v7  ;;  %3544 = vmatpush1.bf16.msra.mxu1 %v7335_v11  ;;  %v3604_v7 = vcombine.high %v3598_v19, %v3598_v19 }
 0x7bf   : > { %3520 = vmatprep.subr.bf16.mxu0 %v3444_v47  ;;  %3545 = vmatprep.subr.bf16.mxu1 %v7337_v22 }
 0x7c2   : > { %3521 = vmatpush2.bf16.msra.mxu0 %v3443_v16  ;;  %3546 = vmatpush1.bf16.msra.mxu1 %v7338_v38 }
 0x7c3   : > { %3547 = vmatprep.subr.bf16.mxu1 %v7340_v59 }
 0x7c6   : > { %3548 = vmatpush1.bf16.msra.mxu1 %v7343_v26 }
 0x7c7   : > { %3561 = vmatprep.subr.bf16.mxu1 %v3446_v15 }
 0x7ca   : > { %3562 = vmatpush2.bf16.msra.mxu1 %v3445_v1 }
 0x7fc   : > { %v4715_v35 = vpop.permute.xlu1 %4714 }
 0x7fd   : > { %v4710_v31 = vpop.permute.xlu0 %4709  ;;  %v4717_v52 = vunpack.i.h.bf16 %v4715_v35  ;;  %v4716_v37 = vunpack.i.l.bf16 %v4715_v35 }
 0x7fe   : > { %v4712_v23 = vunpack.i.h.bf16 %v4710_v31  ;;  %v4711_v51 = vunpack.i.l.bf16 %v4710_v31 }
 0x7ff   : > { %v3181_v55 = vsel %vm7345_vm7, %v4716_v37, %v4717_v52 }
 0x800   : > { %v3180_v28 = vsel %vm7346_vm14, %v4712_v23, %v4716_v37  ;;  %v3178_v13 = vsel %vm7347_vm13, %v4672_v4, %v4711_v51  ;;  %v3179_v9 = vsel %vm7295_vm0, %v4711_v51, %v4712_v23  ;;  %v3597_v4 = vld [vmem:[%s5214_s15 + $0x4] sm:$0xff] }
 0x801   : > { %v3603_v18 = vcombine.high %v3597_v4, %v3597_v4 }
 0x804   : > { %v4725_v62 = vpop.permute.xlu1 %4724 }
 0x805   : > { %v4727_v50 = vunpack.i.h.bf16 %v4725_v62  ;;  %v4726_v57 = vunpack.i.l.bf16 %v4725_v62  ;;  %v4720_v42 = vpop.permute.xlu0 %4719 }
 0x806   : > { %v4722_v46 = vunpack.i.h.bf16 %v4720_v42  ;;  %v4721_v45 = vunpack.i.l.bf16 %v4720_v42 }
 0x807   : > { %v3187_v34 = vsel %vm7348_vm4, %v4726_v57, %v4727_v50 }
 0x808   : > { %v3186_v39 = vsel %vm7349_vm5, %v4722_v46, %v4726_v57  ;;  %v3184_v43 = vsel %vm7350_vm15, %v4677_v21, %v4721_v45  ;;  %v3185_v44 = vsel %vm7351_vm8, %v4721_v45, %v4722_v46  ;;  %v3440_v40 = vpack.c.bf16 %v3187_v34, %v3181_v55 }
 0x809   : > { %v3437_v49 = vpack.c.bf16 %v3184_v43, %v3178_v13  ;;  %v3439_v0 = vpack.c.bf16 %v3186_v39, %v3180_v28  ;;  %v3438_v54 = vpack.c.bf16 %v3185_v44, %v3179_v9 }
 0x80a   : > { %3563 = vmatprep.subr.bf16.mxu1 %v3440_v40 }
 0x80b   : > { %3522 = vmatprep.subr.bf16.mxu0 %v3438_v54  ;;  %3564 = vmatpush2.bf16.msra.mxu1 %v3439_v0 }
 0x80c   : > { %3523 = vmatpush2.bf16.msra.mxu0 %v3437_v49 }
 0x80e   : > { %3566 = vmatmul.mubr.bf16.vlgmr.msra.gmra.mxu1 %v6944_v29 }
 0x80f   : > { %3525 = vmatmul.mubr.bf16.vlgmr.msra.gmra.mxu0 %v6944_v29  ;;  %v3599_v29 = vld [vmem:[%s5214_s15 + $0x14] sm:$0xff]  ;;  %s3834_s15 = smul.u32 384, %s5130_s0  ;;  %s3631_s0 = scalar_lea.sflag [#allocation6], %s5211_s22 }
 0x810   : > { %v3605_v47 = vcombine.high %v3599_v29, %v3599_v29 }
 0x811   : > { %s7015_s12 = scalar_lea.hbm %s7062_s8, %s3834_s15 }
 0x812   : > { %v3583_v30 = vpop.permute.xlu0 %3582 }
 0x869   : > { %v3485_v58 = vpop.f32.mrf.mxu1 }
 0x86a   : > { %vm3574_vm6 = vcmp.gt.f32.partialorder %v3485_v58, 0.0  ;;  %v3585_v21 = vmul.f32 %v3583_v30, %v3485_v58 }
 0x86b   : > { %v3487_v41 = vpop.f32.mrf.mxu1 }
 0x86c   : > { %vm3575_vm9 = vcmp.gt.f32.partialorder %v3487_v41, 0.0  ;;  %v3586_v5 = vmul.f32 %v3583_v30, %v3487_v41  ;;  %v3591_v36 = vsel %vm3574_vm6, %v3485_v58, %v3585_v21 }
 0x86d   : > { %v3609_v8 = vadd.f32 %v3597_v4, %v3591_v36  ;;  %v3489_v32 = vpop.f32.mrf.mxu1 }
 0x86e   : > { %v3592_v60 = vsel %vm3575_vm9, %v3487_v41, %v3586_v5 }
 0x86f   : > { %v3610_v25 = vadd.f32 %v3603_v18, %v3592_v60  ;;  %v3490_v33 = vpop.f32.mrf.mxu1 }
 0x871   : > { %v3621_v10 = vcombine.low %v3609_v8, %v3610_v25 }
 0x873   : > { %3627 = vst [vmem:[%s7005_s10] sm:$0xff] %v3621_v10 }
 0x8ce   : > { %v3567_v27 = vpop.f32.mrf.mxu1 }
 0x8cf   : > { %v3526_v6 = vpop.f32.mrf.mxu0  ;;  %vm3578_vm11 = vcmp.gt.f32.partialorder %v3567_v27, 0.0  ;;  %v3589_v24 = vmul.f32 %v3583_v30, %v3567_v27 }
 0x8d0   : > { %vm3576_vm12 = vcmp.gt.f32.partialorder %v3526_v6, 0.0  ;;  %v3587_v3 = vmul.f32 %v3583_v30, %v3526_v6  ;;  %v3569_v20 = vpop.f32.mrf.mxu1 }
 0x8d1   : > { %v3595_v2 = vsel %vm3578_vm11, %v3567_v27, %v3589_v24  ;;  %v3528_v14 = vpop.f32.mrf.mxu0  ;;  %vm3579_vm1 = vcmp.gt.f32.partialorder %v3569_v20, 0.0  ;;  %v3590_v11 = vmul.f32 %v3583_v30, %v3569_v20 }
 0x8d2   : > { %v3593_v56 = vsel %vm3576_vm12, %v3526_v6, %v3587_v3  ;;  %vm3577_vm2 = vcmp.gt.f32.partialorder %v3528_v14, 0.0  ;;  %v3588_v22 = vmul.f32 %v3583_v30, %v3528_v14  ;;  %v3571_v63 = vpop.f32.mrf.mxu1  ;;  %v3613_v38 = vadd.f32 %v3599_v29, %v3595_v2 }
 0x8d3   : > { %v3596_v17 = vsel %vm3579_vm1, %v3569_v20, %v3590_v11  ;;  %v3530_v16 = vpop.f32.mrf.mxu0  ;;  %v3611_v53 = vadd.f32 %v3598_v19, %v3593_v56 }
 0x8d4   : > { %v3594_v61 = vsel %vm3577_vm2, %v3528_v14, %v3588_v22  ;;  %v3614_v59 = vadd.f32 %v3605_v47, %v3596_v17  ;;  %v3572_v48 = vpop.f32.mrf.mxu1 }
 0x8d5   : > { %v3612_v15 = vadd.f32 %v3604_v7, %v3594_v61  ;;  %v3531_v26 = vpop.f32.mrf.mxu0 }
 0x8d6   : > { %v3623_v12 = vcombine.low %v3613_v38, %v3614_v59 }
 0x8d7   : > { %v3622_v1 = vcombine.low %v3611_v53, %v3612_v15 }
 0x8d8   : > { %3629 = vst [vmem:[%s7005_s10 + $0x10] sm:$0xff] %v3623_v12 }
 0x8d9   : > { %3628 = vst [vmem:[%s7005_s10 + $0x8] sm:$0xff] %v3622_v1 }
 0x8da   : > { %4912 = shalt.err (!%p4909_p1)
}
 0x8db   : > { %s4913_s26 = scalar_lea.hbm %s7015_s12, 384  ;;  %s4917_s19 = scalar_lea.hbm %s7062_s8, 768 }
 0x8dc   : > { %p4914_p0 = scmp.ne.s32.totalorder %s7015_s12, %s4913_s26  ;;  %p4918_p3 = scmp.lt.s32.totalorder %s7015_s12, %s7062_s8 }
 0x8dd   : > { %p4919_p12 = scmp.lt.s32.totalorder %s4917_s19, %s4913_s26 }
 0x8de   : > { %p4915_p6 = pnand %p4914_p0, %p7352_p11 }
 0x8df   : > { %p4920_p13 = por %p4919_p12, %p4918_p3 }
 0x8e0   : > { %p4916_p10 = pneg %p4915_p6 }
 0x8e2   : > { %p4921_p8 = pnand %p4920_p13, %p4916_p10 }
 0x8e4   : > { %4924 = shalt.err (!%p4921_p8)
}
 0x8e5   : > { %3845 = dma.vmem_to_hbm [thread:$0]  (%p7352_p11), %s3646_s23, 384, %s7015_s12, %s3631_s0  }
 0x8e6 PF: > { %s7353_s20 = sld [smem:[#allocation17_spill]]  ;;  %s3657_s25 = sand.u32 1, %s4959_s27  }
 0x8e7   : > { %p7354_p5 = scmp.ne.s32.totalorder %s7156_s14, 0  ;;  %s3658_s21 = scalar_lea.sflag [#allocation6], %s3657_s25 }
 0x8ec   : > { %p7355_p7 = scmp.ge.s32.totalorder %s7353_s20, 2 }
 0x8ee   : > { %p3862_p2 = pnand %p7355_p7, %p7354_p5 }
 0x8f0   : > { %p3863_p4 = pneg %p3862_p2 }
 0x8f2   : > { %4954 = dma.done.wait (%p3863_p4), %s3658_s21, 384  }
 0x8f3   : > { %4956 = vsyncadd (%p3863_p4), %s3658_s21, 4294966912  ;;  %s7356_s30 = sld [smem:[#allocation18_spill]]  ;;  %s7359_s27 = smov %s4963_s28 }
 0x8f4   : > { %s7357_s10 = sld [smem:[#allocation16_spill]] }
 0x8f5   : > { %s7358_s29 = sld [smem:[#allocation19_spill]] }
 0x8f9   : > { %p22_p9 = scmp.ge.s32.totalorder %s7356_s30, 4  }
 0x8fa   : > { %s7360_s28 = smov %s7357_s10 }
 0x8fb   :  { %24 = sbr.rel (!%p22_p9) target bundleno = 9 (0x9), region = 131 }
 0x900   :  { %3663 = vsyncpa [#allocation5], 1 }
 0x901   :  { %3665 = vsyncpa [#allocation5 + $0x1], 1 }
 0x902   :  { %3666 = vsyncpa [#allocation8], 1 }
 0x903   :  { %3667 = vsyncpa [#allocation6], 1 }
 0x904   :  { %3669 = vsyncpa [#allocation6 + $0x1], 1 }

</bundles_post_ra>
